<compile_context>
chip_gen: v7x
topology: tpu7x:2x2x1
jax: 0.10.0
libtpu: 0.0.40
codegen_flags: <defaults>
</compile_context>

<pallas_src>
import math

import jax
import jax.numpy as jnp
from jax.experimental import pallas as pl
from jax.experimental.pallas import tpu as pltpu

# ----------------------------- synthetic config -----------------------------
VOCAB = 64          # word-embedding vocabulary
MAX_POS = 64        # max position embeddings
NUM_TYPES = 2       # token-type embeddings
E = 16              # ALBERT embedding size
H = 32              # ALBERT hidden size
F = 64              # ALBERT FFN intermediate size
NH = 4              # attention heads
DH = H // NH        # head dim
N_ALBERT_LAYERS = 2 # ALBERT repeats ONE shared layer

HL = 128            # LstModel LSTM hidden size (module default)
NUM_CLASSES = 23    # LstModel fc output classes
C_PAD = 128         # lane-dense padded class dim (sliced back to 23 in the wrapper)

B = 2               # batch
S = 8               # sequence length
N = B * S


def _r8(n):
    return ((n + 7) // 8) * 8


# ----- row offsets inside the 128-lane parameter slab (all sublane-aligned) -----
R_WEMB = 0
R_POSTYP = R_WEMB + _r8(VOCAB)        # pos + token-type(0) embedding, precomputed [N, E]
R_EMB_LN = R_POSTYP + _r8(N)          # rows: gamma, beta
R_WPROJ = R_EMB_LN + 8
R_BPROJ = R_WPROJ + _r8(E)
R_WQKV = R_BPROJ + 8                  # fused [H, 3H] Q|K|V projection
R_BQKV = R_WQKV + _r8(H)
R_WO = R_BQKV + 8
R_BO = R_WO + _r8(H)
R_LN1 = R_BO + 8                      # rows: gamma, beta
R_W1 = R_LN1 + 8
R_B1 = R_W1 + _r8(H)
R_W2 = R_B1 + 8
R_B2 = R_W2 + _r8(F)
R_LN2 = R_B2 + 8                      # rows: gamma, beta
R_LSTMLN = R_LN2 + 8                  # rows: LayerNormal weight, bias
R_FCW = R_LSTMLN + 8
R_FCB = R_FCW + _r8(HL)
P_ROWS = R_FCB + 8                    # = 464

# ----- row offsets inside the 512-lane LSTM slab -----
L_WIH = 0
L_WHH = L_WIH + _r8(H)
L_LB = L_WHH + _r8(HL)
L_ROWS = L_LB + 8                     # = 168


# ------------------------------ helpers -------------------------------------
def _fs(shape):
    """Full-array block spec for a 1-D grid (constant index map)."""
    return pl.BlockSpec(shape, lambda i: (0,) * len(shape))


def _bert_layernorm(x, g, b, eps=1e-12):
    """Standard (biased-variance) layer norm used inside the ALBERT encoder."""
    mu = jnp.mean(x, axis=-1, keepdims=True)
    d = x - mu
    var = jnp.mean(d * d, axis=-1, keepdims=True)
    return d * jax.lax.rsqrt(var + eps) * g + b


# --------------------------- fused Pallas kernel ------------------------------
def fused_forward_kernel(ids_ref, bias_ref, p_ref, l_ref, out_ref):
    f32 = jnp.float32

    # ---------- ALBERT embeddings: in-kernel gather via one-hot matmul ----------
    ids = ids_ref[...]                                               # [N, 1] int32
    one_hot = (jax.lax.broadcasted_iota(jnp.int32, (N, VOCAB), 1) == ids).astype(f32)
    word = jnp.dot(one_hot, p_ref[R_WEMB:R_WEMB + VOCAB, 0:E],
                   preferred_element_type=f32)                       # [N, E]
    emb = word + p_ref[R_POSTYP:R_POSTYP + N, 0:E]                   # + (pos + type-0), precomputed
    emb = _bert_layernorm(emb, p_ref[R_EMB_LN:R_EMB_LN + 1, 0:E],
                          p_ref[R_EMB_LN + 1:R_EMB_LN + 2, 0:E])
    x = (jnp.dot(emb, p_ref[R_WPROJ:R_WPROJ + E, 0:H], preferred_element_type=f32)
         + p_ref[R_BPROJ:R_BPROJ + 1, 0:H])                          # [N, H]

    # ---------- shared-weight transformer layers ----------
    bias3 = bias_ref[...][:, None, :]                                # [B, 1, S] additive mask
    scale = 1.0 / math.sqrt(DH)
    wqkv = p_ref[R_WQKV:R_WQKV + H, 0:3 * H]
    bqkv = p_ref[R_BQKV:R_BQKV + 1, 0:3 * H]
    wo = p_ref[R_WO:R_WO + H, 0:H]
    bo = p_ref[R_BO:R_BO + 1, 0:H]
    ln1g = p_ref[R_LN1:R_LN1 + 1, 0:H]
    ln1b = p_ref[R_LN1 + 1:R_LN1 + 2, 0:H]
    w1 = p_ref[R_W1:R_W1 + H, 0:F]
    b1 = p_ref[R_B1:R_B1 + 1, 0:F]
    w2 = p_ref[R_W2:R_W2 + F, 0:H]
    b2 = p_ref[R_B2:R_B2 + 1, 0:H]
    ln2g = p_ref[R_LN2:R_LN2 + 1, 0:H]
    ln2b = p_ref[R_LN2 + 1:R_LN2 + 2, 0:H]

    for _ in range(N_ALBERT_LAYERS):                                 # shared params, unrolled
        qkv = jnp.dot(x, wqkv, preferred_element_type=f32) + bqkv    # [N, 3H], one fused matmul
        ctx_heads = []
        for h in range(NH):
            qh = qkv[:, h * DH:(h + 1) * DH].reshape(B, S, DH)
            kh = qkv[:, H + h * DH:H + (h + 1) * DH].reshape(B, S, DH)
            vh = qkv[:, 2 * H + h * DH:2 * H + (h + 1) * DH].reshape(B, S, DH)
            s = (jnp.einsum('bqd,bkd->bqk', qh, kh, preferred_element_type=f32)
                 * scale + bias3)                                    # [B, S, S]
            s = s - jnp.max(s, axis=-1, keepdims=True)
            p = jnp.exp(s)
            p = p * pl.reciprocal(jnp.sum(p, axis=-1, keepdims=True), approx=True)
            ctx_heads.append(jnp.einsum('bqk,bkd->bqd', p, vh,
                                        preferred_element_type=f32).reshape(N, DH))
        ctx = jnp.concatenate(ctx_heads, axis=1)                     # [N, H]
        attn = jnp.dot(ctx, wo, preferred_element_type=f32) + bo     # single output projection
        x1 = _bert_layernorm(x + attn, ln1g, ln1b)
        ff = jnp.dot(x1, w1, preferred_element_type=f32) + b1
        ff = jax.nn.gelu(ff, approximate=True)
        ff = jnp.dot(ff, w2, preferred_element_type=f32) + b2
        x = _bert_layernorm(x1 + ff, ln2g, ln2b)

    # ---------- LSTM(H -> HL): time-major, gates repacked (i, f, o | g) ----------
    x3 = x.reshape(B, S, H)
    x_tm = jnp.concatenate([x3[:, t, :] for t in range(S)], axis=0)  # [N, H], row = t*B + b
    gates_x = (jnp.dot(x_tm, l_ref[L_WIH:L_WIH + H, :], preferred_element_type=f32)
               + l_ref[L_LB:L_LB + 1, :])                            # hoisted input projection
    whh = l_ref[L_WHH:L_WHH + HL, :]                                 # [HL, 4*HL]

    h_t = jnp.zeros((B, HL), f32)                                    # state kept in registers
    c_t = jnp.zeros((B, HL), f32)
    hs = []
    for t in range(S):                                               # S=8, statically unrolled
        g = gates_x[t * B:(t + 1) * B, :] + jnp.dot(h_t, whh, preferred_element_type=f32)
        sg = jax.nn.sigmoid(g[:, 0:3 * HL])                          # i, f, o in one pass
        i_g = sg[:, 0:HL]
        f_g = sg[:, HL:2 * HL]
        o_g = sg[:, 2 * HL:3 * HL]
        g_g = jnp.tanh(g[:, 3 * HL:4 * HL])
        c_t = f_g * c_t + i_g * g_g
        h_t = o_g * jnp.tanh(c_t)
        hs.append(h_t)
    lstm_tm = jnp.concatenate(hs, axis=0)                            # [N, HL], row = t*B + b

    # ---------- LayerNormal (torch.std: ddof=1, clamp min=1e-6) + fc ----------
    mu = jnp.mean(lstm_tm, axis=-1, keepdims=True)
    d = lstm_tm - mu
    var = jnp.sum(d * d, axis=-1, keepdims=True) * (1.0 / (HL - 1))  # unbiased (torch.std)
    sigma = jnp.maximum(jnp.sqrt(var), 1e-6)                         # .clamp(min=esp)
    y = (d * pl.reciprocal(sigma, approx=True)
         * p_ref[R_LSTMLN:R_LSTMLN + 1, :] + p_ref[R_LSTMLN + 1:R_LSTMLN + 2, :])
    # lane-dense [N, 128] time-major store; wrapper restores (B, S) order and slices to 23.
    out_ref[...] = (jnp.dot(y, p_ref[R_FCW:R_FCW + HL, :], preferred_element_type=f32)
                    + p_ref[R_FCB:R_FCB + 1, :])


# ------------------------------ parameters -----------------------------------
def init_params(key):
    ks = iter(jax.random.split(key, 24))

    def nrm(shape, scale=0.05):
        return (scale * jax.random.normal(next(ks), shape)).astype(jnp.float32)

    # ---- synthetic shared-weight ALBERT encoder ----
    word_emb = nrm((VOCAB, E))
    pos_emb = nrm((MAX_POS, E))
    type_emb = nrm((NUM_TYPES, E))
    w_proj = nrm((E, H))
    wq, wk, wv, wo = nrm((H, H)), nrm((H, H)), nrm((H, H)), nrm((H, H))
    w1 = nrm((H, F))
    w2 = nrm((F, H))

    # (position + token-type 0) embedding precomputed for the fixed (B, S)
    postyp = (jnp.broadcast_to(pos_emb[:S][None], (B, S, E)).reshape(N, E)
              + type_emb[0:1, :])

    slab_p = jnp.zeros((P_ROWS, 128), jnp.float32)                   # all zero biases / betas free
    slab_p = slab_p.at[R_WEMB:R_WEMB + VOCAB, :E].set(word_emb)
    slab_p = slab_p.at[R_POSTYP:R_POSTYP + N, :E].set(postyp)
    slab_p = slab_p.at[R_EMB_LN, :E].set(1.0)                        # emb LN gamma
    slab_p = slab_p.at[R_WPROJ:R_WPROJ + E, :H].set(w_proj)
    slab_p = slab_p.at[R_WQKV:R_WQKV + H, :3 * H].set(jnp.concatenate([wq, wk, wv], axis=1))
    slab_p = slab_p.at[R_WO:R_WO + H, :H].set(wo)
    slab_p = slab_p.at[R_LN1, :H].set(1.0)
    slab_p = slab_p.at[R_W1:R_W1 + H, :F].set(w1)
    slab_p = slab_p.at[R_W2:R_W2 + F, :H].set(w2)
    slab_p = slab_p.at[R_LN2, :H].set(1.0)
    slab_p = slab_p.at[R_LSTMLN, :HL].set(1.0)                       # LayerNormal weight (ones)

    # fc: kaiming_normal_ weight, bias ~ N(0, 0.001); zero-padded to 128 lanes
    fc_w = (math.sqrt(2.0 / HL) * jax.random.normal(next(ks), (HL, NUM_CLASSES))).astype(jnp.float32)
    fc_b = (0.001 * jax.random.normal(next(ks), (NUM_CLASSES,))).astype(jnp.float32)
    slab_p = slab_p.at[R_FCW:R_FCW + HL, :NUM_CLASSES].set(fc_w)
    slab_p = slab_p.at[R_FCB, :NUM_CLASSES].set(fc_b)

    # ---- LSTM(H -> HL): generate in PyTorch gate order (i,f,g,o), repack to (i,f,o|g) ----
    sc = 1.0 / math.sqrt(HL)

    def lstm_rand(shape):
        return (sc * jax.random.normal(next(ks), shape)).astype(jnp.float32)

    wih_t = lstm_rand((H, 4 * HL))
    whh_t = lstm_rand((HL, 4 * HL))
    lstm_b = lstm_rand((1, 4 * HL)) + lstm_rand((1, 4 * HL))         # b_ih + b_hh

    def repack(w):                                                   # [i|f|g|o] -> [i|f|o|g]
        i, f, g, o = jnp.split(w, 4, axis=-1)
        return jnp.concatenate([i, f, o, g], axis=-1)

    slab_l = jnp.zeros((L_ROWS, 4 * HL), jnp.float32)
    slab_l = slab_l.at[L_WIH:L_WIH + H, :].set(repack(wih_t))
    slab_l = slab_l.at[L_WHH:L_WHH + HL, :].set(repack(whh_t))
    slab_l = slab_l.at[L_LB, :].set(repack(lstm_b)[0])

    return {"slab_p": slab_p, "slab_l": slab_l}


# ------------------------------ full forward ----------------------------------
@jax.jit
def albert_lstm_token_class_forward(params, bert_ids, bert_mask):
    bsz, seq = bert_ids.shape
    ids_col = bert_ids.reshape(bsz * seq, 1).astype(jnp.int32)
    attn_bias = (1.0 - bert_mask.astype(jnp.float32)) * -10000.0     # [B, S] additive key mask

    inputs = [ids_col, attn_bias, params["slab_p"], params["slab_l"]]

    logits_tm = pl.pallas_call(
        fused_forward_kernel,
        out_shape=jax.ShapeDtypeStruct((bsz * seq, C_PAD), jnp.float32),
        grid=(1,),
        in_specs=[_fs(a.shape) for a in inputs],
        out_specs=_fs((bsz * seq, C_PAD)),
        compiler_params=pltpu.CompilerParams(dimension_semantics=("arbitrary",)),
    )(*inputs)

    # kernel writes time-major rows (t*B + b); restore (B, S) order and drop padded classes
    return logits_tm.reshape(seq, bsz, C_PAD).transpose(1, 0, 2)[:, :, :NUM_CLASSES]


# ---------------------------------- main --------------------------------------
if __name__ == "__main__":
    key = jax.random.PRNGKey(0)
    pkey, ikey = jax.random.split(key)
    params = init_params(pkey)

    bert_ids = jax.random.randint(ikey, (B, S), 0, VOCAB, dtype=jnp.int32)
    bert_mask = jnp.ones((B, S), jnp.int32).at[1, S - 2:].set(0)     # pad last 2 tokens of ex 1

    out = albert_lstm_token_class_forward(params, bert_ids, bert_mask)
    out = jax.block_until_ready(out)

    assert out.shape == (B, S, NUM_CLASSES), out.shape
    assert bool(jnp.all(jnp.isfinite(out)))
    print("KERNEL_OK")
</pallas_src>

<mosaic_0001>
module attributes {stable_mosaic.version = 11 : i64} {
  func.func @fused_forward_kernel(%arg0: i32, %arg1: memref<16x1xi32, #tpu.memory_space<vmem>>, %arg2: memref<2x8xf32, #tpu.memory_space<vmem>>, %arg3: memref<464x128xf32, #tpu.memory_space<vmem>>, %arg4: memref<168x512xf32, #tpu.memory_space<vmem>>, %arg5: memref<16x128xf32, #tpu.memory_space<vmem>>) attributes {dimension_semantics = [#tpu.dimension_semantics<arbitrary>], iteration_bounds = array<i64: 1>, scalar_prefetch = 0 : i64, scratch_operands = 0 : i64, tpu.core_type = #tpu.core_type<tc>, window_params = [{pipeline_mode = #tpu.pipeline_mode<synchronous>, transform_indices = @transform_0, window_bounds = array<i64: 16, 1>}, {pipeline_mode = #tpu.pipeline_mode<synchronous>, transform_indices = @transform_1, window_bounds = array<i64: 2, 8>}, {pipeline_mode = #tpu.pipeline_mode<synchronous>, transform_indices = @transform_2, window_bounds = array<i64: 464, 128>}, {pipeline_mode = #tpu.pipeline_mode<synchronous>, transform_indices = @transform_3, window_bounds = array<i64: 168, 512>}, {pipeline_mode = #tpu.pipeline_mode<synchronous>, transform_indices = @transform_4, window_bounds = array<i64: 16, 128>}]} {
    %c0 = arith.constant 0 : index
    %c0_0 = arith.constant 0 : index
    %0 = vector.load %arg1[%c0, %c0_0] : memref<16x1xi32, #tpu.memory_space<vmem>>, vector<16x1xi32>
    %1 = tpu.iota {dimensions = array<i32: 1>} : vector<16x64xi32>
    %2 = vector.broadcast %0 : vector<16x1xi32> to vector<16x64xi32>
    %3 = arith.cmpi eq, %1, %2 : vector<16x64xi32>
    %4 = arith.extui %3 : vector<16x64xi1> to vector<16x64xi32>
    %5 = arith.sitofp %4 : vector<16x64xi32> to vector<16x64xf32>
    %c0_1 = arith.constant 0 : index
    %c0_2 = arith.constant 0 : index
    %6 = vector.load %arg3[%c0_1, %c0_2] : memref<464x128xf32, #tpu.memory_space<vmem>>, vector<64x16xf32>
    %cst = arith.constant dense<0.000000e+00> : vector<16x16xf32>
    %7 = tpu.matmul %5, %6, %cst {dimension_numbers = #tpu.dot_dimension_numbers<[1], [0], [0], [1], [0, 0, 1, 1], [], []>} : vector<16x64xf32>, vector<64x16xf32>, vector<16x16xf32> -> vector<16x16xf32>
    %c64 = arith.constant 64 : index
    %c0_3 = arith.constant 0 : index
    %8 = vector.load %arg3[%c64, %c0_3] : memref<464x128xf32, #tpu.memory_space<vmem>>, vector<16x16xf32>
    %9 = arith.addf %7, %8 : vector<16x16xf32>
    %c80 = arith.constant 80 : index
    %c0_4 = arith.constant 0 : index
    %10 = vector.load %arg3[%c80, %c0_4] : memref<464x128xf32, #tpu.memory_space<vmem>>, vector<1x16xf32>
    %c81 = arith.constant 81 : index
    %c0_5 = arith.constant 0 : index
    %11 = vector.load %arg3[%c81, %c0_5] : memref<464x128xf32, #tpu.memory_space<vmem>>, vector<1x16xf32>
    %cst_6 = arith.constant dense<0.000000e+00> : vector<16xf32>
    %12 = vector.multi_reduction <add>, %9, %cst_6 [1] : vector<16x16xf32> to vector<16xf32>
    %13 = vector.shape_cast %12 : vector<16xf32> to vector<16x1xf32>
    %cst_7 = arith.constant 1.600000e+01 : f32
    %14 = vector.broadcast %cst_7 : f32 to vector<16x1xf32>
    %15 = arith.divf %13, %14 : vector<16x1xf32>
    %16 = vector.broadcast %15 : vector<16x1xf32> to vector<16x16xf32>
    %17 = arith.subf %9, %16 : vector<16x16xf32>
    %18 = arith.mulf %17, %17 : vector<16x16xf32>
    %cst_8 = arith.constant dense<0.000000e+00> : vector<16xf32>
    %19 = vector.multi_reduction <add>, %18, %cst_8 [1] : vector<16x16xf32> to vector<16xf32>
    %20 = vector.shape_cast %19 : vector<16xf32> to vector<16x1xf32>
    %cst_9 = arith.constant 1.600000e+01 : f32
    %21 = vector.broadcast %cst_9 : f32 to vector<16x1xf32>
    %22 = arith.divf %20, %21 : vector<16x1xf32>
    %cst_10 = arith.constant 9.99999996E-13 : f32
    %23 = vector.broadcast %cst_10 : f32 to vector<16x1xf32>
    %24 = arith.addf %22, %23 : vector<16x1xf32>
    %25 = math.rsqrt %24 : vector<16x1xf32>
    %26 = vector.broadcast %25 : vector<16x1xf32> to vector<16x16xf32>
    %27 = arith.mulf %17, %26 : vector<16x16xf32>
    %28 = vector.broadcast %10 : vector<1x16xf32> to vector<16x16xf32>
    %29 = arith.mulf %27, %28 : vector<16x16xf32>
    %30 = vector.broadcast %11 : vector<1x16xf32> to vector<16x16xf32>
    %31 = arith.addf %29, %30 : vector<16x16xf32>
    %c88 = arith.constant 88 : index
    %c0_11 = arith.constant 0 : index
    %32 = vector.load %arg3[%c88, %c0_11] : memref<464x128xf32, #tpu.memory_space<vmem>>, vector<16x32xf32>
    %cst_12 = arith.constant dense<0.000000e+00> : vector<16x32xf32>
    %33 = tpu.matmul %31, %32, %cst_12 {dimension_numbers = #tpu.dot_dimension_numbers<[1], [0], [0], [1], [0, 0, 1, 1], [], []>} : vector<16x16xf32>, vector<16x32xf32>, vector<16x32xf32> -> vector<16x32xf32>
    %c104 = arith.constant 104 : index
    %c0_13 = arith.constant 0 : index
    %34 = vector.load %arg3[%c104, %c0_13] : memref<464x128xf32, #tpu.memory_space<vmem>>, vector<1x32xf32>
    %35 = vector.broadcast %34 : vector<1x32xf32> to vector<16x32xf32>
    %36 = arith.addf %33, %35 : vector<16x32xf32>
    %c0_14 = arith.constant 0 : index
    %c0_15 = arith.constant 0 : index
    %37 = vector.load %arg2[%c0_14, %c0_15] : memref<2x8xf32, #tpu.memory_space<vmem>>, vector<2x8xf32>
    %38 = vector.shape_cast %37 : vector<2x8xf32> to vector<2x1x8xf32>
    %c112 = arith.constant 112 : index
    %c0_16 = arith.constant 0 : index
    %39 = vector.load %arg3[%c112, %c0_16] : memref<464x128xf32, #tpu.memory_space<vmem>>, vector<32x96xf32>
    %c144 = arith.constant 144 : index
    %c0_17 = arith.constant 0 : index
    %40 = vector.load %arg3[%c144, %c0_17] : memref<464x128xf32, #tpu.memory_space<vmem>>, vector<1x96xf32>
    %c152 = arith.constant 152 : index
    %c0_18 = arith.constant 0 : index
    %41 = vector.load %arg3[%c152, %c0_18] : memref<464x128xf32, #tpu.memory_space<vmem>>, vector<32x32xf32>
    %c184 = arith.constant 184 : index
    %c0_19 = arith.constant 0 : index
    %42 = vector.load %arg3[%c184, %c0_19] : memref<464x128xf32, #tpu.memory_space<vmem>>, vector<1x32xf32>
    %c192 = arith.constant 192 : index
    %c0_20 = arith.constant 0 : index
    %43 = vector.load %arg3[%c192, %c0_20] : memref<464x128xf32, #tpu.memory_space<vmem>>, vector<1x32xf32>
    %c193 = arith.constant 193 : index
    %c0_21 = arith.constant 0 : index
    %44 = vector.load %arg3[%c193, %c0_21] : memref<464x128xf32, #tpu.memory_space<vmem>>, vector<1x32xf32>
    %c200 = arith.constant 200 : index
    %c0_22 = arith.constant 0 : index
    %45 = vector.load %arg3[%c200, %c0_22] : memref<464x128xf32, #tpu.memory_space<vmem>>, vector<32x64xf32>
    %c232 = arith.constant 232 : index
    %c0_23 = arith.constant 0 : index
    %46 = vector.load %arg3[%c232, %c0_23] : memref<464x128xf32, #tpu.memory_space<vmem>>, vector<1x64xf32>
    %c240 = arith.constant 240 : index
    %c0_24 = arith.constant 0 : index
    %47 = vector.load %arg3[%c240, %c0_24] : memref<464x128xf32, #tpu.memory_space<vmem>>, vector<64x32xf32>
    %c304 = arith.constant 304 : index
    %c0_25 = arith.constant 0 : index
    %48 = vector.load %arg3[%c304, %c0_25] : memref<464x128xf32, #tpu.memory_space<vmem>>, vector<1x32xf32>
    %c312 = arith.constant 312 : index
    %c0_26 = arith.constant 0 : index
    %49 = vector.load %arg3[%c312, %c0_26] : memref<464x128xf32, #tpu.memory_space<vmem>>, vector<1x32xf32>
    %c313 = arith.constant 313 : index
    %c0_27 = arith.constant 0 : index
    %50 = vector.load %arg3[%c313, %c0_27] : memref<464x128xf32, #tpu.memory_space<vmem>>, vector<1x32xf32>
    %cst_28 = arith.constant dense<0.000000e+00> : vector<16x96xf32>
    %51 = tpu.matmul %36, %39, %cst_28 {dimension_numbers = #tpu.dot_dimension_numbers<[1], [0], [0], [1], [0, 0, 1, 1], [], []>} : vector<16x32xf32>, vector<32x96xf32>, vector<16x96xf32> -> vector<16x96xf32>
    %52 = vector.broadcast %40 : vector<1x96xf32> to vector<16x96xf32>
    %53 = arith.addf %51, %52 : vector<16x96xf32>
    %54 = vector.extract_strided_slice %53 {offsets = [0, 0], sizes = [16, 8], strides = [1, 1]} : vector<16x96xf32> to vector<16x8xf32>
    %55 = vector.shape_cast %54 : vector<16x8xf32> to vector<2x8x8xf32>
    %56 = vector.extract_strided_slice %53 {offsets = [0, 32], sizes = [16, 8], strides = [1, 1]} : vector<16x96xf32> to vector<16x8xf32>
    %57 = vector.shape_cast %56 : vector<16x8xf32> to vector<2x8x8xf32>
    %58 = vector.extract_strided_slice %53 {offsets = [0, 64], sizes = [16, 8], strides = [1, 1]} : vector<16x96xf32> to vector<16x8xf32>
    %59 = vector.shape_cast %58 : vector<16x8xf32> to vector<2x8x8xf32>
    "tpu.trace_start"() <{level = 10 : i32, message = "bqd,bkd->bqk"}> : () -> ()
    %cst_29 = arith.constant dense<0.000000e+00> : vector<2x8x8xf32>
    %60 = tpu.matmul %55, %57, %cst_29 {dimension_numbers = #tpu.dot_dimension_numbers<[2], [2], [1], [1], [0, 0, 0, 1, 1, 1], [0], [0]>} : vector<2x8x8xf32>, vector<2x8x8xf32>, vector<2x8x8xf32> -> vector<2x8x8xf32>
    "tpu.trace_stop"() : () -> ()
    %cst_30 = arith.constant 0.353553385 : f32
    %61 = vector.broadcast %cst_30 : f32 to vector<2x8x8xf32>
    %62 = arith.mulf %60, %61 : vector<2x8x8xf32>
    %63 = vector.broadcast %38 : vector<2x1x8xf32> to vector<2x8x8xf32>
    %64 = arith.addf %62, %63 : vector<2x8x8xf32>
    %cst_31 = arith.constant dense<0xFF800000> : vector<2x8xf32>
    %65 = vector.multi_reduction <maximumf>, %64, %cst_31 [2] : vector<2x8x8xf32> to vector<2x8xf32>
    %66 = vector.shape_cast %65 : vector<2x8xf32> to vector<2x8x1xf32>
    %67 = vector.broadcast %66 : vector<2x8x1xf32> to vector<2x8x8xf32>
    %68 = arith.subf %64, %67 : vector<2x8x8xf32>
    %69 = math.exp %68 : vector<2x8x8xf32>
    %cst_32 = arith.constant dense<0.000000e+00> : vector<2x8xf32>
    %70 = vector.multi_reduction <add>, %69, %cst_32 [2] : vector<2x8x8xf32> to vector<2x8xf32>
    %71 = vector.shape_cast %70 : vector<2x8xf32> to vector<2x8x1xf32>
    %72 = tpu.reciprocal %71 {approx = true} : vector<2x8x1xf32> -> vector<2x8x1xf32>
    %73 = vector.broadcast %72 : vector<2x8x1xf32> to vector<2x8x8xf32>
    %74 = arith.mulf %69, %73 : vector<2x8x8xf32>
    "tpu.trace_start"() <{level = 10 : i32, message = "bqk,bkd->bqd"}> : () -> ()
    %cst_33 = arith.constant dense<0.000000e+00> : vector<2x8x8xf32>
    %75 = tpu.matmul %74, %59, %cst_33 {dimension_numbers = #tpu.dot_dimension_numbers<[2], [1], [1], [2], [0, 0, 0, 1, 1, 2], [0], [0]>} : vector<2x8x8xf32>, vector<2x8x8xf32>, vector<2x8x8xf32> -> vector<2x8x8xf32>
    "tpu.trace_stop"() : () -> ()
    %76 = vector.shape_cast %75 : vector<2x8x8xf32> to vector<16x8xf32>
    %77 = vector.extract_strided_slice %53 {offsets = [0, 8], sizes = [16, 8], strides = [1, 1]} : vector<16x96xf32> to vector<16x8xf32>
    %78 = vector.shape_cast %77 : vector<16x8xf32> to vector<2x8x8xf32>
    %79 = vector.extract_strided_slice %53 {offsets = [0, 40], sizes = [16, 8], strides = [1, 1]} : vector<16x96xf32> to vector<16x8xf32>
    %80 = vector.shape_cast %79 : vector<16x8xf32> to vector<2x8x8xf32>
    %81 = vector.extract_strided_slice %53 {offsets = [0, 72], sizes = [16, 8], strides = [1, 1]} : vector<16x96xf32> to vector<16x8xf32>
    %82 = vector.shape_cast %81 : vector<16x8xf32> to vector<2x8x8xf32>
    "tpu.trace_start"() <{level = 10 : i32, message = "bqd,bkd->bqk"}> : () -> ()
    %cst_34 = arith.constant dense<0.000000e+00> : vector<2x8x8xf32>
    %83 = tpu.matmul %78, %80, %cst_34 {dimension_numbers = #tpu.dot_dimension_numbers<[2], [2], [1], [1], [0, 0, 0, 1, 1, 1], [0], [0]>} : vector<2x8x8xf32>, vector<2x8x8xf32>, vector<2x8x8xf32> -> vector<2x8x8xf32>
    "tpu.trace_stop"() : () -> ()
    %cst_35 = arith.constant 0.353553385 : f32
    %84 = vector.broadcast %cst_35 : f32 to vector<2x8x8xf32>
    %85 = arith.mulf %83, %84 : vector<2x8x8xf32>
    %86 = vector.broadcast %38 : vector<2x1x8xf32> to vector<2x8x8xf32>
    %87 = arith.addf %85, %86 : vector<2x8x8xf32>
    %cst_36 = arith.constant dense<0xFF800000> : vector<2x8xf32>
    %88 = vector.multi_reduction <maximumf>, %87, %cst_36 [2] : vector<2x8x8xf32> to vector<2x8xf32>
    %89 = vector.shape_cast %88 : vector<2x8xf32> to vector<2x8x1xf32>
    %90 = vector.broadcast %89 : vector<2x8x1xf32> to vector<2x8x8xf32>
    %91 = arith.subf %87, %90 : vector<2x8x8xf32>
    %92 = math.exp %91 : vector<2x8x8xf32>
    %cst_37 = arith.constant dense<0.000000e+00> : vector<2x8xf32>
    %93 = vector.multi_reduction <add>, %92, %cst_37 [2] : vector<2x8x8xf32> to vector<2x8xf32>
    %94 = vector.shape_cast %93 : vector<2x8xf32> to vector<2x8x1xf32>
    %95 = tpu.reciprocal %94 {approx = true} : vector<2x8x1xf32> -> vector<2x8x1xf32>
    %96 = vector.broadcast %95 : vector<2x8x1xf32> to vector<2x8x8xf32>
    %97 = arith.mulf %92, %96 : vector<2x8x8xf32>
    "tpu.trace_start"() <{level = 10 : i32, message = "bqk,bkd->bqd"}> : () -> ()
    %cst_38 = arith.constant dense<0.000000e+00> : vector<2x8x8xf32>
    %98 = tpu.matmul %97, %82, %cst_38 {dimension_numbers = #tpu.dot_dimension_numbers<[2], [1], [1], [2], [0, 0, 0, 1, 1, 2], [0], [0]>} : vector<2x8x8xf32>, vector<2x8x8xf32>, vector<2x8x8xf32> -> vector<2x8x8xf32>
    "tpu.trace_stop"() : () -> ()
    %99 = vector.shape_cast %98 : vector<2x8x8xf32> to vector<16x8xf32>
    %100 = vector.extract_strided_slice %53 {offsets = [0, 16], sizes = [16, 8], strides = [1, 1]} : vector<16x96xf32> to vector<16x8xf32>
    %101 = vector.shape_cast %100 : vector<16x8xf32> to vector<2x8x8xf32>
    %102 = vector.extract_strided_slice %53 {offsets = [0, 48], sizes = [16, 8], strides = [1, 1]} : vector<16x96xf32> to vector<16x8xf32>
    %103 = vector.shape_cast %102 : vector<16x8xf32> to vector<2x8x8xf32>
    %104 = vector.extract_strided_slice %53 {offsets = [0, 80], sizes = [16, 8], strides = [1, 1]} : vector<16x96xf32> to vector<16x8xf32>
    %105 = vector.shape_cast %104 : vector<16x8xf32> to vector<2x8x8xf32>
    "tpu.trace_start"() <{level = 10 : i32, message = "bqd,bkd->bqk"}> : () -> ()
    %cst_39 = arith.constant dense<0.000000e+00> : vector<2x8x8xf32>
    %106 = tpu.matmul %101, %103, %cst_39 {dimension_numbers = #tpu.dot_dimension_numbers<[2], [2], [1], [1], [0, 0, 0, 1, 1, 1], [0], [0]>} : vector<2x8x8xf32>, vector<2x8x8xf32>, vector<2x8x8xf32> -> vector<2x8x8xf32>
    "tpu.trace_stop"() : () -> ()
    %cst_40 = arith.constant 0.353553385 : f32
    %107 = vector.broadcast %cst_40 : f32 to vector<2x8x8xf32>
    %108 = arith.mulf %106, %107 : vector<2x8x8xf32>
    %109 = vector.broadcast %38 : vector<2x1x8xf32> to vector<2x8x8xf32>
    %110 = arith.addf %108, %109 : vector<2x8x8xf32>
    %cst_41 = arith.constant dense<0xFF800000> : vector<2x8xf32>
    %111 = vector.multi_reduction <maximumf>, %110, %cst_41 [2] : vector<2x8x8xf32> to vector<2x8xf32>
    %112 = vector.shape_cast %111 : vector<2x8xf32> to vector<2x8x1xf32>
    %113 = vector.broadcast %112 : vector<2x8x1xf32> to vector<2x8x8xf32>
    %114 = arith.subf %110, %113 : vector<2x8x8xf32>
    %115 = math.exp %114 : vector<2x8x8xf32>
    %cst_42 = arith.constant dense<0.000000e+00> : vector<2x8xf32>
    %116 = vector.multi_reduction <add>, %115, %cst_42 [2] : vector<2x8x8xf32> to vector<2x8xf32>
    %117 = vector.shape_cast %116 : vector<2x8xf32> to vector<2x8x1xf32>
    %118 = tpu.reciprocal %117 {approx = true} : vector<2x8x1xf32> -> vector<2x8x1xf32>
    %119 = vector.broadcast %118 : vector<2x8x1xf32> to vector<2x8x8xf32>
    %120 = arith.mulf %115, %119 : vector<2x8x8xf32>
    "tpu.trace_start"() <{level = 10 : i32, message = "bqk,bkd->bqd"}> : () -> ()
    %cst_43 = arith.constant dense<0.000000e+00> : vector<2x8x8xf32>
    %121 = tpu.matmul %120, %105, %cst_43 {dimension_numbers = #tpu.dot_dimension_numbers<[2], [1], [1], [2], [0, 0, 0, 1, 1, 2], [0], [0]>} : vector<2x8x8xf32>, vector<2x8x8xf32>, vector<2x8x8xf32> -> vector<2x8x8xf32>
    "tpu.trace_stop"() : () -> ()
    %122 = vector.shape_cast %121 : vector<2x8x8xf32> to vector<16x8xf32>
    %123 = vector.extract_strided_slice %53 {offsets = [0, 24], sizes = [16, 8], strides = [1, 1]} : vector<16x96xf32> to vector<16x8xf32>
    %124 = vector.shape_cast %123 : vector<16x8xf32> to vector<2x8x8xf32>
    %125 = vector.extract_strided_slice %53 {offsets = [0, 56], sizes = [16, 8], strides = [1, 1]} : vector<16x96xf32> to vector<16x8xf32>
    %126 = vector.shape_cast %125 : vector<16x8xf32> to vector<2x8x8xf32>
    %127 = vector.extract_strided_slice %53 {offsets = [0, 88], sizes = [16, 8], strides = [1, 1]} : vector<16x96xf32> to vector<16x8xf32>
    %128 = vector.shape_cast %127 : vector<16x8xf32> to vector<2x8x8xf32>
    "tpu.trace_start"() <{level = 10 : i32, message = "bqd,bkd->bqk"}> : () -> ()
    %cst_44 = arith.constant dense<0.000000e+00> : vector<2x8x8xf32>
    %129 = tpu.matmul %124, %126, %cst_44 {dimension_numbers = #tpu.dot_dimension_numbers<[2], [2], [1], [1], [0, 0, 0, 1, 1, 1], [0], [0]>} : vector<2x8x8xf32>, vector<2x8x8xf32>, vector<2x8x8xf32> -> vector<2x8x8xf32>
    "tpu.trace_stop"() : () -> ()
    %cst_45 = arith.constant 0.353553385 : f32
    %130 = vector.broadcast %cst_45 : f32 to vector<2x8x8xf32>
    %131 = arith.mulf %129, %130 : vector<2x8x8xf32>
    %132 = vector.broadcast %38 : vector<2x1x8xf32> to vector<2x8x8xf32>
    %133 = arith.addf %131, %132 : vector<2x8x8xf32>
    %cst_46 = arith.constant dense<0xFF800000> : vector<2x8xf32>
    %134 = vector.multi_reduction <maximumf>, %133, %cst_46 [2] : vector<2x8x8xf32> to vector<2x8xf32>
    %135 = vector.shape_cast %134 : vector<2x8xf32> to vector<2x8x1xf32>
    %136 = vector.broadcast %135 : vector<2x8x1xf32> to vector<2x8x8xf32>
    %137 = arith.subf %133, %136 : vector<2x8x8xf32>
    %138 = math.exp %137 : vector<2x8x8xf32>
    %cst_47 = arith.constant dense<0.000000e+00> : vector<2x8xf32>
    %139 = vector.multi_reduction <add>, %138, %cst_47 [2] : vector<2x8x8xf32> to vector<2x8xf32>
    %140 = vector.shape_cast %139 : vector<2x8xf32> to vector<2x8x1xf32>
    %141 = tpu.reciprocal %140 {approx = true} : vector<2x8x1xf32> -> vector<2x8x1xf32>
    %142 = vector.broadcast %141 : vector<2x8x1xf32> to vector<2x8x8xf32>
    %143 = arith.mulf %138, %142 : vector<2x8x8xf32>
    "tpu.trace_start"() <{level = 10 : i32, message = "bqk,bkd->bqd"}> : () -> ()
    %cst_48 = arith.constant dense<0.000000e+00> : vector<2x8x8xf32>
    %144 = tpu.matmul %143, %128, %cst_48 {dimension_numbers = #tpu.dot_dimension_numbers<[2], [1], [1], [2], [0, 0, 0, 1, 1, 2], [0], [0]>} : vector<2x8x8xf32>, vector<2x8x8xf32>, vector<2x8x8xf32> -> vector<2x8x8xf32>
    "tpu.trace_stop"() : () -> ()
    %145 = vector.shape_cast %144 : vector<2x8x8xf32> to vector<16x8xf32>
    %146 = tpu.concatenate %76, %99, %122, %145 in 1 : vector<16x8xf32>, vector<16x8xf32>, vector<16x8xf32>, vector<16x8xf32> -> vector<16x32xf32>
    %cst_49 = arith.constant dense<0.000000e+00> : vector<16x32xf32>
    %147 = tpu.matmul %146, %41, %cst_49 {dimension_numbers = #tpu.dot_dimension_numbers<[1], [0], [0], [1], [0, 0, 1, 1], [], []>} : vector<16x32xf32>, vector<32x32xf32>, vector<16x32xf32> -> vector<16x32xf32>
    %148 = vector.broadcast %42 : vector<1x32xf32> to vector<16x32xf32>
    %149 = arith.addf %147, %148 : vector<16x32xf32>
    %150 = arith.addf %36, %149 : vector<16x32xf32>
    %cst_50 = arith.constant dense<0.000000e+00> : vector<16xf32>
    %151 = vector.multi_reduction <add>, %150, %cst_50 [1] : vector<16x32xf32> to vector<16xf32>
    %152 = vector.shape_cast %151 : vector<16xf32> to vector<16x1xf32>
    %cst_51 = arith.constant 3.200000e+01 : f32
    %153 = vector.broadcast %cst_51 : f32 to vector<16x1xf32>
    %154 = arith.divf %152, %153 : vector<16x1xf32>
    %155 = vector.broadcast %154 : vector<16x1xf32> to vector<16x32xf32>
    %156 = arith.subf %150, %155 : vector<16x32xf32>
    %157 = arith.mulf %156, %156 : vector<16x32xf32>
    %cst_52 = arith.constant dense<0.000000e+00> : vector<16xf32>
    %158 = vector.multi_reduction <add>, %157, %cst_52 [1] : vector<16x32xf32> to vector<16xf32>
    %159 = vector.shape_cast %158 : vector<16xf32> to vector<16x1xf32>
    %cst_53 = arith.constant 3.200000e+01 : f32
    %160 = vector.broadcast %cst_53 : f32 to vector<16x1xf32>
    %161 = arith.divf %159, %160 : vector<16x1xf32>
    %cst_54 = arith.constant 9.99999996E-13 : f32
    %162 = vector.broadcast %cst_54 : f32 to vector<16x1xf32>
    %163 = arith.addf %161, %162 : vector<16x1xf32>
    %164 = math.rsqrt %163 : vector<16x1xf32>
    %165 = vector.broadcast %164 : vector<16x1xf32> to vector<16x32xf32>
    %166 = arith.mulf %156, %165 : vector<16x32xf32>
    %167 = vector.broadcast %43 : vector<1x32xf32> to vector<16x32xf32>
    %168 = arith.mulf %166, %167 : vector<16x32xf32>
    %169 = vector.broadcast %44 : vector<1x32xf32> to vector<16x32xf32>
    %170 = arith.addf %168, %169 : vector<16x32xf32>
    %cst_55 = arith.constant dense<0.000000e+00> : vector<16x64xf32>
    %171 = tpu.matmul %170, %45, %cst_55 {dimension_numbers = #tpu.dot_dimension_numbers<[1], [0], [0], [1], [0, 0, 1, 1], [], []>} : vector<16x32xf32>, vector<32x64xf32>, vector<16x64xf32> -> vector<16x64xf32>
    %172 = vector.broadcast %46 : vector<1x64xf32> to vector<16x64xf32>
    %173 = arith.addf %171, %172 : vector<16x64xf32>
    %174 = arith.mulf %173, %173 : vector<16x64xf32>
    %175 = arith.mulf %173, %174 : vector<16x64xf32>
    %cst_56 = arith.constant 4.471500e-02 : f32
    %176 = vector.broadcast %cst_56 : f32 to vector<16x64xf32>
    %177 = arith.mulf %176, %175 : vector<16x64xf32>
    %178 = arith.addf %173, %177 : vector<16x64xf32>
    %cst_57 = arith.constant 0.797884583 : f32
    %179 = vector.broadcast %cst_57 : f32 to vector<16x64xf32>
    %180 = arith.mulf %179, %178 : vector<16x64xf32>
    %181 = math.tanh %180 : vector<16x64xf32>
    %cst_58 = arith.constant 1.000000e+00 : f32
    %182 = vector.broadcast %cst_58 : f32 to vector<16x64xf32>
    %183 = arith.addf %182, %181 : vector<16x64xf32>
    %cst_59 = arith.constant 5.000000e-01 : f32
    %184 = vector.broadcast %cst_59 : f32 to vector<16x64xf32>
    %185 = arith.mulf %184, %183 : vector<16x64xf32>
    %186 = arith.mulf %173, %185 : vector<16x64xf32>
    %cst_60 = arith.constant dense<0.000000e+00> : vector<16x32xf32>
    %187 = tpu.matmul %186, %47, %cst_60 {dimension_numbers = #tpu.dot_dimension_numbers<[1], [0], [0], [1], [0, 0, 1, 1], [], []>} : vector<16x64xf32>, vector<64x32xf32>, vector<16x32xf32> -> vector<16x32xf32>
    %188 = vector.broadcast %48 : vector<1x32xf32> to vector<16x32xf32>
    %189 = arith.addf %187, %188 : vector<16x32xf32>
    %190 = arith.addf %170, %189 : vector<16x32xf32>
    %cst_61 = arith.constant dense<0.000000e+00> : vector<16xf32>
    %191 = vector.multi_reduction <add>, %190, %cst_61 [1] : vector<16x32xf32> to vector<16xf32>
    %192 = vector.shape_cast %191 : vector<16xf32> to vector<16x1xf32>
    %cst_62 = arith.constant 3.200000e+01 : f32
    %193 = vector.broadcast %cst_62 : f32 to vector<16x1xf32>
    %194 = arith.divf %192, %193 : vector<16x1xf32>
    %195 = vector.broadcast %194 : vector<16x1xf32> to vector<16x32xf32>
    %196 = arith.subf %190, %195 : vector<16x32xf32>
    %197 = arith.mulf %196, %196 : vector<16x32xf32>
    %cst_63 = arith.constant dense<0.000000e+00> : vector<16xf32>
    %198 = vector.multi_reduction <add>, %197, %cst_63 [1] : vector<16x32xf32> to vector<16xf32>
    %199 = vector.shape_cast %198 : vector<16xf32> to vector<16x1xf32>
    %cst_64 = arith.constant 3.200000e+01 : f32
    %200 = vector.broadcast %cst_64 : f32 to vector<16x1xf32>
    %201 = arith.divf %199, %200 : vector<16x1xf32>
    %cst_65 = arith.constant 9.99999996E-13 : f32
    %202 = vector.broadcast %cst_65 : f32 to vector<16x1xf32>
    %203 = arith.addf %201, %202 : vector<16x1xf32>
    %204 = math.rsqrt %203 : vector<16x1xf32>
    %205 = vector.broadcast %204 : vector<16x1xf32> to vector<16x32xf32>
    %206 = arith.mulf %196, %205 : vector<16x32xf32>
    %207 = vector.broadcast %49 : vector<1x32xf32> to vector<16x32xf32>
    %208 = arith.mulf %206, %207 : vector<16x32xf32>
    %209 = vector.broadcast %50 : vector<1x32xf32> to vector<16x32xf32>
    %210 = arith.addf %208, %209 : vector<16x32xf32>
    %cst_66 = arith.constant dense<0.000000e+00> : vector<16x96xf32>
    %211 = tpu.matmul %210, %39, %cst_66 {dimension_numbers = #tpu.dot_dimension_numbers<[1], [0], [0], [1], [0, 0, 1, 1], [], []>} : vector<16x32xf32>, vector<32x96xf32>, vector<16x96xf32> -> vector<16x96xf32>
    %212 = vector.broadcast %40 : vector<1x96xf32> to vector<16x96xf32>
    %213 = arith.addf %211, %212 : vector<16x96xf32>
    %214 = vector.extract_strided_slice %213 {offsets = [0, 0], sizes = [16, 8], strides = [1, 1]} : vector<16x96xf32> to vector<16x8xf32>
    %215 = vector.shape_cast %214 : vector<16x8xf32> to vector<2x8x8xf32>
    %216 = vector.extract_strided_slice %213 {offsets = [0, 32], sizes = [16, 8], strides = [1, 1]} : vector<16x96xf32> to vector<16x8xf32>
    %217 = vector.shape_cast %216 : vector<16x8xf32> to vector<2x8x8xf32>
    %218 = vector.extract_strided_slice %213 {offsets = [0, 64], sizes = [16, 8], strides = [1, 1]} : vector<16x96xf32> to vector<16x8xf32>
    %219 = vector.shape_cast %218 : vector<16x8xf32> to vector<2x8x8xf32>
    "tpu.trace_start"() <{level = 10 : i32, message = "bqd,bkd->bqk"}> : () -> ()
    %cst_67 = arith.constant dense<0.000000e+00> : vector<2x8x8xf32>
    %220 = tpu.matmul %215, %217, %cst_67 {dimension_numbers = #tpu.dot_dimension_numbers<[2], [2], [1], [1], [0, 0, 0, 1, 1, 1], [0], [0]>} : vector<2x8x8xf32>, vector<2x8x8xf32>, vector<2x8x8xf32> -> vector<2x8x8xf32>
    "tpu.trace_stop"() : () -> ()
    %cst_68 = arith.constant 0.353553385 : f32
    %221 = vector.broadcast %cst_68 : f32 to vector<2x8x8xf32>
    %222 = arith.mulf %220, %221 : vector<2x8x8xf32>
    %223 = vector.broadcast %38 : vector<2x1x8xf32> to vector<2x8x8xf32>
    %224 = arith.addf %222, %223 : vector<2x8x8xf32>
    %cst_69 = arith.constant dense<0xFF800000> : vector<2x8xf32>
    %225 = vector.multi_reduction <maximumf>, %224, %cst_69 [2] : vector<2x8x8xf32> to vector<2x8xf32>
    %226 = vector.shape_cast %225 : vector<2x8xf32> to vector<2x8x1xf32>
    %227 = vector.broadcast %226 : vector<2x8x1xf32> to vector<2x8x8xf32>
    %228 = arith.subf %224, %227 : vector<2x8x8xf32>
    %229 = math.exp %228 : vector<2x8x8xf32>
    %cst_70 = arith.constant dense<0.000000e+00> : vector<2x8xf32>
    %230 = vector.multi_reduction <add>, %229, %cst_70 [2] : vector<2x8x8xf32> to vector<2x8xf32>
    %231 = vector.shape_cast %230 : vector<2x8xf32> to vector<2x8x1xf32>
    %232 = tpu.reciprocal %231 {approx = true} : vector<2x8x1xf32> -> vector<2x8x1xf32>
    %233 = vector.broadcast %232 : vector<2x8x1xf32> to vector<2x8x8xf32>
    %234 = arith.mulf %229, %233 : vector<2x8x8xf32>
    "tpu.trace_start"() <{level = 10 : i32, message = "bqk,bkd->bqd"}> : () -> ()
    %cst_71 = arith.constant dense<0.000000e+00> : vector<2x8x8xf32>
    %235 = tpu.matmul %234, %219, %cst_71 {dimension_numbers = #tpu.dot_dimension_numbers<[2], [1], [1], [2], [0, 0, 0, 1, 1, 2], [0], [0]>} : vector<2x8x8xf32>, vector<2x8x8xf32>, vector<2x8x8xf32> -> vector<2x8x8xf32>
    "tpu.trace_stop"() : () -> ()
    %236 = vector.shape_cast %235 : vector<2x8x8xf32> to vector<16x8xf32>
    %237 = vector.extract_strided_slice %213 {offsets = [0, 8], sizes = [16, 8], strides = [1, 1]} : vector<16x96xf32> to vector<16x8xf32>
    %238 = vector.shape_cast %237 : vector<16x8xf32> to vector<2x8x8xf32>
    %239 = vector.extract_strided_slice %213 {offsets = [0, 40], sizes = [16, 8], strides = [1, 1]} : vector<16x96xf32> to vector<16x8xf32>
    %240 = vector.shape_cast %239 : vector<16x8xf32> to vector<2x8x8xf32>
    %241 = vector.extract_strided_slice %213 {offsets = [0, 72], sizes = [16, 8], strides = [1, 1]} : vector<16x96xf32> to vector<16x8xf32>
    %242 = vector.shape_cast %241 : vector<16x8xf32> to vector<2x8x8xf32>
    "tpu.trace_start"() <{level = 10 : i32, message = "bqd,bkd->bqk"}> : () -> ()
    %cst_72 = arith.constant dense<0.000000e+00> : vector<2x8x8xf32>
    %243 = tpu.matmul %238, %240, %cst_72 {dimension_numbers = #tpu.dot_dimension_numbers<[2], [2], [1], [1], [0, 0, 0, 1, 1, 1], [0], [0]>} : vector<2x8x8xf32>, vector<2x8x8xf32>, vector<2x8x8xf32> -> vector<2x8x8xf32>
    "tpu.trace_stop"() : () -> ()
    %cst_73 = arith.constant 0.353553385 : f32
    %244 = vector.broadcast %cst_73 : f32 to vector<2x8x8xf32>
    %245 = arith.mulf %243, %244 : vector<2x8x8xf32>
    %246 = vector.broadcast %38 : vector<2x1x8xf32> to vector<2x8x8xf32>
    %247 = arith.addf %245, %246 : vector<2x8x8xf32>
    %cst_74 = arith.constant dense<0xFF800000> : vector<2x8xf32>
    %248 = vector.multi_reduction <maximumf>, %247, %cst_74 [2] : vector<2x8x8xf32> to vector<2x8xf32>
    %249 = vector.shape_cast %248 : vector<2x8xf32> to vector<2x8x1xf32>
    %250 = vector.broadcast %249 : vector<2x8x1xf32> to vector<2x8x8xf32>
    %251 = arith.subf %247, %250 : vector<2x8x8xf32>
    %252 = math.exp %251 : vector<2x8x8xf32>
    %cst_75 = arith.constant dense<0.000000e+00> : vector<2x8xf32>
    %253 = vector.multi_reduction <add>, %252, %cst_75 [2] : vector<2x8x8xf32> to vector<2x8xf32>
    %254 = vector.shape_cast %253 : vector<2x8xf32> to vector<2x8x1xf32>
    %255 = tpu.reciprocal %254 {approx = true} : vector<2x8x1xf32> -> vector<2x8x1xf32>
    %256 = vector.broadcast %255 : vector<2x8x1xf32> to vector<2x8x8xf32>
    %257 = arith.mulf %252, %256 : vector<2x8x8xf32>
    "tpu.trace_start"() <{level = 10 : i32, message = "bqk,bkd->bqd"}> : () -> ()
    %cst_76 = arith.constant dense<0.000000e+00> : vector<2x8x8xf32>
    %258 = tpu.matmul %257, %242, %cst_76 {dimension_numbers = #tpu.dot_dimension_numbers<[2], [1], [1], [2], [0, 0, 0, 1, 1, 2], [0], [0]>} : vector<2x8x8xf32>, vector<2x8x8xf32>, vector<2x8x8xf32> -> vector<2x8x8xf32>
    "tpu.trace_stop"() : () -> ()
    %259 = vector.shape_cast %258 : vector<2x8x8xf32> to vector<16x8xf32>
    %260 = vector.extract_strided_slice %213 {offsets = [0, 16], sizes = [16, 8], strides = [1, 1]} : vector<16x96xf32> to vector<16x8xf32>
    %261 = vector.shape_cast %260 : vector<16x8xf32> to vector<2x8x8xf32>
    %262 = vector.extract_strided_slice %213 {offsets = [0, 48], sizes = [16, 8], strides = [1, 1]} : vector<16x96xf32> to vector<16x8xf32>
    %263 = vector.shape_cast %262 : vector<16x8xf32> to vector<2x8x8xf32>
    %264 = vector.extract_strided_slice %213 {offsets = [0, 80], sizes = [16, 8], strides = [1, 1]} : vector<16x96xf32> to vector<16x8xf32>
    %265 = vector.shape_cast %264 : vector<16x8xf32> to vector<2x8x8xf32>
    "tpu.trace_start"() <{level = 10 : i32, message = "bqd,bkd->bqk"}> : () -> ()
    %cst_77 = arith.constant dense<0.000000e+00> : vector<2x8x8xf32>
    %266 = tpu.matmul %261, %263, %cst_77 {dimension_numbers = #tpu.dot_dimension_numbers<[2], [2], [1], [1], [0, 0, 0, 1, 1, 1], [0], [0]>} : vector<2x8x8xf32>, vector<2x8x8xf32>, vector<2x8x8xf32> -> vector<2x8x8xf32>
    "tpu.trace_stop"() : () -> ()
    %cst_78 = arith.constant 0.353553385 : f32
    %267 = vector.broadcast %cst_78 : f32 to vector<2x8x8xf32>
    %268 = arith.mulf %266, %267 : vector<2x8x8xf32>
    %269 = vector.broadcast %38 : vector<2x1x8xf32> to vector<2x8x8xf32>
    %270 = arith.addf %268, %269 : vector<2x8x8xf32>
    %cst_79 = arith.constant dense<0xFF800000> : vector<2x8xf32>
    %271 = vector.multi_reduction <maximumf>, %270, %cst_79 [2] : vector<2x8x8xf32> to vector<2x8xf32>
    %272 = vector.shape_cast %271 : vector<2x8xf32> to vector<2x8x1xf32>
    %273 = vector.broadcast %272 : vector<2x8x1xf32> to vector<2x8x8xf32>
    %274 = arith.subf %270, %273 : vector<2x8x8xf32>
    %275 = math.exp %274 : vector<2x8x8xf32>
    %cst_80 = arith.constant dense<0.000000e+00> : vector<2x8xf32>
    %276 = vector.multi_reduction <add>, %275, %cst_80 [2] : vector<2x8x8xf32> to vector<2x8xf32>
    %277 = vector.shape_cast %276 : vector<2x8xf32> to vector<2x8x1xf32>
    %278 = tpu.reciprocal %277 {approx = true} : vector<2x8x1xf32> -> vector<2x8x1xf32>
    %279 = vector.broadcast %278 : vector<2x8x1xf32> to vector<2x8x8xf32>
    %280 = arith.mulf %275, %279 : vector<2x8x8xf32>
    "tpu.trace_start"() <{level = 10 : i32, message = "bqk,bkd->bqd"}> : () -> ()
    %cst_81 = arith.constant dense<0.000000e+00> : vector<2x8x8xf32>
    %281 = tpu.matmul %280, %265, %cst_81 {dimension_numbers = #tpu.dot_dimension_numbers<[2], [1], [1], [2], [0, 0, 0, 1, 1, 2], [0], [0]>} : vector<2x8x8xf32>, vector<2x8x8xf32>, vector<2x8x8xf32> -> vector<2x8x8xf32>
    "tpu.trace_stop"() : () -> ()
    %282 = vector.shape_cast %281 : vector<2x8x8xf32> to vector<16x8xf32>
    %283 = vector.extract_strided_slice %213 {offsets = [0, 24], sizes = [16, 8], strides = [1, 1]} : vector<16x96xf32> to vector<16x8xf32>
    %284 = vector.shape_cast %283 : vector<16x8xf32> to vector<2x8x8xf32>
    %285 = vector.extract_strided_slice %213 {offsets = [0, 56], sizes = [16, 8], strides = [1, 1]} : vector<16x96xf32> to vector<16x8xf32>
    %286 = vector.shape_cast %285 : vector<16x8xf32> to vector<2x8x8xf32>
    %287 = vector.extract_strided_slice %213 {offsets = [0, 88], sizes = [16, 8], strides = [1, 1]} : vector<16x96xf32> to vector<16x8xf32>
    %288 = vector.shape_cast %287 : vector<16x8xf32> to vector<2x8x8xf32>
    "tpu.trace_start"() <{level = 10 : i32, message = "bqd,bkd->bqk"}> : () -> ()
    %cst_82 = arith.constant dense<0.000000e+00> : vector<2x8x8xf32>
    %289 = tpu.matmul %284, %286, %cst_82 {dimension_numbers = #tpu.dot_dimension_numbers<[2], [2], [1], [1], [0, 0, 0, 1, 1, 1], [0], [0]>} : vector<2x8x8xf32>, vector<2x8x8xf32>, vector<2x8x8xf32> -> vector<2x8x8xf32>
    "tpu.trace_stop"() : () -> ()
    %cst_83 = arith.constant 0.353553385 : f32
    %290 = vector.broadcast %cst_83 : f32 to vector<2x8x8xf32>
    %291 = arith.mulf %289, %290 : vector<2x8x8xf32>
    %292 = vector.broadcast %38 : vector<2x1x8xf32> to vector<2x8x8xf32>
    %293 = arith.addf %291, %292 : vector<2x8x8xf32>
    %cst_84 = arith.constant dense<0xFF800000> : vector<2x8xf32>
    %294 = vector.multi_reduction <maximumf>, %293, %cst_84 [2] : vector<2x8x8xf32> to vector<2x8xf32>
    %295 = vector.shape_cast %294 : vector<2x8xf32> to vector<2x8x1xf32>
    %296 = vector.broadcast %295 : vector<2x8x1xf32> to vector<2x8x8xf32>
    %297 = arith.subf %293, %296 : vector<2x8x8xf32>
    %298 = math.exp %297 : vector<2x8x8xf32>
    %cst_85 = arith.constant dense<0.000000e+00> : vector<2x8xf32>
    %299 = vector.multi_reduction <add>, %298, %cst_85 [2] : vector<2x8x8xf32> to vector<2x8xf32>
    %300 = vector.shape_cast %299 : vector<2x8xf32> to vector<2x8x1xf32>
    %301 = tpu.reciprocal %300 {approx = true} : vector<2x8x1xf32> -> vector<2x8x1xf32>
    %302 = vector.broadcast %301 : vector<2x8x1xf32> to vector<2x8x8xf32>
    %303 = arith.mulf %298, %302 : vector<2x8x8xf32>
    "tpu.trace_start"() <{level = 10 : i32, message = "bqk,bkd->bqd"}> : () -> ()
    %cst_86 = arith.constant dense<0.000000e+00> : vector<2x8x8xf32>
    %304 = tpu.matmul %303, %288, %cst_86 {dimension_numbers = #tpu.dot_dimension_numbers<[2], [1], [1], [2], [0, 0, 0, 1, 1, 2], [0], [0]>} : vector<2x8x8xf32>, vector<2x8x8xf32>, vector<2x8x8xf32> -> vector<2x8x8xf32>
    "tpu.trace_stop"() : () -> ()
    %305 = vector.shape_cast %304 : vector<2x8x8xf32> to vector<16x8xf32>
    %306 = tpu.concatenate %236, %259, %282, %305 in 1 : vector<16x8xf32>, vector<16x8xf32>, vector<16x8xf32>, vector<16x8xf32> -> vector<16x32xf32>
    %cst_87 = arith.constant dense<0.000000e+00> : vector<16x32xf32>
    %307 = tpu.matmul %306, %41, %cst_87 {dimension_numbers = #tpu.dot_dimension_numbers<[1], [0], [0], [1], [0, 0, 1, 1], [], []>} : vector<16x32xf32>, vector<32x32xf32>, vector<16x32xf32> -> vector<16x32xf32>
    %308 = vector.broadcast %42 : vector<1x32xf32> to vector<16x32xf32>
    %309 = arith.addf %307, %308 : vector<16x32xf32>
    %310 = arith.addf %210, %309 : vector<16x32xf32>
    %cst_88 = arith.constant dense<0.000000e+00> : vector<16xf32>
    %311 = vector.multi_reduction <add>, %310, %cst_88 [1] : vector<16x32xf32> to vector<16xf32>
    %312 = vector.shape_cast %311 : vector<16xf32> to vector<16x1xf32>
    %cst_89 = arith.constant 3.200000e+01 : f32
    %313 = vector.broadcast %cst_89 : f32 to vector<16x1xf32>
    %314 = arith.divf %312, %313 : vector<16x1xf32>
    %315 = vector.broadcast %314 : vector<16x1xf32> to vector<16x32xf32>
    %316 = arith.subf %310, %315 : vector<16x32xf32>
    %317 = arith.mulf %316, %316 : vector<16x32xf32>
    %cst_90 = arith.constant dense<0.000000e+00> : vector<16xf32>
    %318 = vector.multi_reduction <add>, %317, %cst_90 [1] : vector<16x32xf32> to vector<16xf32>
    %319 = vector.shape_cast %318 : vector<16xf32> to vector<16x1xf32>
    %cst_91 = arith.constant 3.200000e+01 : f32
    %320 = vector.broadcast %cst_91 : f32 to vector<16x1xf32>
    %321 = arith.divf %319, %320 : vector<16x1xf32>
    %cst_92 = arith.constant 9.99999996E-13 : f32
    %322 = vector.broadcast %cst_92 : f32 to vector<16x1xf32>
    %323 = arith.addf %321, %322 : vector<16x1xf32>
    %324 = math.rsqrt %323 : vector<16x1xf32>
    %325 = vector.broadcast %324 : vector<16x1xf32> to vector<16x32xf32>
    %326 = arith.mulf %316, %325 : vector<16x32xf32>
    %327 = vector.broadcast %43 : vector<1x32xf32> to vector<16x32xf32>
    %328 = arith.mulf %326, %327 : vector<16x32xf32>
    %329 = vector.broadcast %44 : vector<1x32xf32> to vector<16x32xf32>
    %330 = arith.addf %328, %329 : vector<16x32xf32>
    %cst_93 = arith.constant dense<0.000000e+00> : vector<16x64xf32>
    %331 = tpu.matmul %330, %45, %cst_93 {dimension_numbers = #tpu.dot_dimension_numbers<[1], [0], [0], [1], [0, 0, 1, 1], [], []>} : vector<16x32xf32>, vector<32x64xf32>, vector<16x64xf32> -> vector<16x64xf32>
    %332 = vector.broadcast %46 : vector<1x64xf32> to vector<16x64xf32>
    %333 = arith.addf %331, %332 : vector<16x64xf32>
    %334 = arith.mulf %333, %333 : vector<16x64xf32>
    %335 = arith.mulf %333, %334 : vector<16x64xf32>
    %cst_94 = arith.constant 4.471500e-02 : f32
    %336 = vector.broadcast %cst_94 : f32 to vector<16x64xf32>
    %337 = arith.mulf %336, %335 : vector<16x64xf32>
    %338 = arith.addf %333, %337 : vector<16x64xf32>
    %cst_95 = arith.constant 0.797884583 : f32
    %339 = vector.broadcast %cst_95 : f32 to vector<16x64xf32>
    %340 = arith.mulf %339, %338 : vector<16x64xf32>
    %341 = math.tanh %340 : vector<16x64xf32>
    %cst_96 = arith.constant 1.000000e+00 : f32
    %342 = vector.broadcast %cst_96 : f32 to vector<16x64xf32>
    %343 = arith.addf %342, %341 : vector<16x64xf32>
    %cst_97 = arith.constant 5.000000e-01 : f32
    %344 = vector.broadcast %cst_97 : f32 to vector<16x64xf32>
    %345 = arith.mulf %344, %343 : vector<16x64xf32>
    %346 = arith.mulf %333, %345 : vector<16x64xf32>
    %cst_98 = arith.constant dense<0.000000e+00> : vector<16x32xf32>
    %347 = tpu.matmul %346, %47, %cst_98 {dimension_numbers = #tpu.dot_dimension_numbers<[1], [0], [0], [1], [0, 0, 1, 1], [], []>} : vector<16x64xf32>, vector<64x32xf32>, vector<16x32xf32> -> vector<16x32xf32>
    %348 = vector.broadcast %48 : vector<1x32xf32> to vector<16x32xf32>
    %349 = arith.addf %347, %348 : vector<16x32xf32>
    %350 = arith.addf %330, %349 : vector<16x32xf32>
    %cst_99 = arith.constant dense<0.000000e+00> : vector<16xf32>
    %351 = vector.multi_reduction <add>, %350, %cst_99 [1] : vector<16x32xf32> to vector<16xf32>
    %352 = vector.shape_cast %351 : vector<16xf32> to vector<16x1xf32>
    %cst_100 = arith.constant 3.200000e+01 : f32
    %353 = vector.broadcast %cst_100 : f32 to vector<16x1xf32>
    %354 = arith.divf %352, %353 : vector<16x1xf32>
    %355 = vector.broadcast %354 : vector<16x1xf32> to vector<16x32xf32>
    %356 = arith.subf %350, %355 : vector<16x32xf32>
    %357 = arith.mulf %356, %356 : vector<16x32xf32>
    %cst_101 = arith.constant dense<0.000000e+00> : vector<16xf32>
    %358 = vector.multi_reduction <add>, %357, %cst_101 [1] : vector<16x32xf32> to vector<16xf32>
    %359 = vector.shape_cast %358 : vector<16xf32> to vector<16x1xf32>
    %cst_102 = arith.constant 3.200000e+01 : f32
    %360 = vector.broadcast %cst_102 : f32 to vector<16x1xf32>
    %361 = arith.divf %359, %360 : vector<16x1xf32>
    %cst_103 = arith.constant 9.99999996E-13 : f32
    %362 = vector.broadcast %cst_103 : f32 to vector<16x1xf32>
    %363 = arith.addf %361, %362 : vector<16x1xf32>
    %364 = math.rsqrt %363 : vector<16x1xf32>
    %365 = vector.broadcast %364 : vector<16x1xf32> to vector<16x32xf32>
    %366 = arith.mulf %356, %365 : vector<16x32xf32>
    %367 = vector.broadcast %49 : vector<1x32xf32> to vector<16x32xf32>
    %368 = arith.mulf %366, %367 : vector<16x32xf32>
    %369 = vector.broadcast %50 : vector<1x32xf32> to vector<16x32xf32>
    %370 = arith.addf %368, %369 : vector<16x32xf32>
    %371 = vector.shape_cast %370 : vector<16x32xf32> to vector<2x8x32xf32>
    %372 = vector.extract_strided_slice %371 {offsets = [0, 0, 0], sizes = [2, 1, 32], strides = [1, 1, 1]} : vector<2x8x32xf32> to vector<2x1x32xf32>
    %373 = vector.shape_cast %372 : vector<2x1x32xf32> to vector<2x32xf32>
    %374 = vector.extract_strided_slice %371 {offsets = [0, 1, 0], sizes = [2, 1, 32], strides = [1, 1, 1]} : vector<2x8x32xf32> to vector<2x1x32xf32>
    %375 = vector.shape_cast %374 : vector<2x1x32xf32> to vector<2x32xf32>
    %376 = vector.extract_strided_slice %371 {offsets = [0, 2, 0], sizes = [2, 1, 32], strides = [1, 1, 1]} : vector<2x8x32xf32> to vector<2x1x32xf32>
    %377 = vector.shape_cast %376 : vector<2x1x32xf32> to vector<2x32xf32>
    %378 = vector.extract_strided_slice %371 {offsets = [0, 3, 0], sizes = [2, 1, 32], strides = [1, 1, 1]} : vector<2x8x32xf32> to vector<2x1x32xf32>
    %379 = vector.shape_cast %378 : vector<2x1x32xf32> to vector<2x32xf32>
    %380 = vector.extract_strided_slice %371 {offsets = [0, 4, 0], sizes = [2, 1, 32], strides = [1, 1, 1]} : vector<2x8x32xf32> to vector<2x1x32xf32>
    %381 = vector.shape_cast %380 : vector<2x1x32xf32> to vector<2x32xf32>
    %382 = vector.extract_strided_slice %371 {offsets = [0, 5, 0], sizes = [2, 1, 32], strides = [1, 1, 1]} : vector<2x8x32xf32> to vector<2x1x32xf32>
    %383 = vector.shape_cast %382 : vector<2x1x32xf32> to vector<2x32xf32>
    %384 = vector.extract_strided_slice %371 {offsets = [0, 6, 0], sizes = [2, 1, 32], strides = [1, 1, 1]} : vector<2x8x32xf32> to vector<2x1x32xf32>
    %385 = vector.shape_cast %384 : vector<2x1x32xf32> to vector<2x32xf32>
    %386 = vector.extract_strided_slice %371 {offsets = [0, 7, 0], sizes = [2, 1, 32], strides = [1, 1, 1]} : vector<2x8x32xf32> to vector<2x1x32xf32>
    %387 = vector.shape_cast %386 : vector<2x1x32xf32> to vector<2x32xf32>
    %388 = tpu.concatenate %373, %375, %377, %379, %381, %383, %385, %387 in 0 : vector<2x32xf32>, vector<2x32xf32>, vector<2x32xf32>, vector<2x32xf32>, vector<2x32xf32>, vector<2x32xf32>, vector<2x32xf32>, vector<2x32xf32> -> vector<16x32xf32>
    %c0_104 = arith.constant 0 : index
    %c0_105 = arith.constant 0 : index
    %389 = vector.load %arg4[%c0_104, %c0_105] : memref<168x512xf32, #tpu.memory_space<vmem>>, vector<32x512xf32>
    %cst_106 = arith.constant dense<0.000000e+00> : vector<16x512xf32>
    %390 = tpu.matmul %388, %389, %cst_106 {dimension_numbers = #tpu.dot_dimension_numbers<[1], [0], [0], [1], [0, 0, 1, 1], [], []>} : vector<16x32xf32>, vector<32x512xf32>, vector<16x512xf32> -> vector<16x512xf32>
    %c160 = arith.constant 160 : index
    %c0_107 = arith.constant 0 : index
    %391 = vector.load %arg4[%c160, %c0_107] : memref<168x512xf32, #tpu.memory_space<vmem>>, vector<1x512xf32>
    %392 = vector.broadcast %391 : vector<1x512xf32> to vector<16x512xf32>
    %393 = arith.addf %390, %392 : vector<16x512xf32>
    %c32 = arith.constant 32 : index
    %c0_108 = arith.constant 0 : index
    %394 = vector.load %arg4[%c32, %c0_108] : memref<168x512xf32, #tpu.memory_space<vmem>>, vector<128x512xf32>
    %cst_109 = arith.constant 0.000000e+00 : f32
    %395 = vector.broadcast %cst_109 : f32 to vector<2x128xf32>
    %cst_110 = arith.constant 0.000000e+00 : f32
    %396 = vector.broadcast %cst_110 : f32 to vector<2x128xf32>
    %397 = vector.extract_strided_slice %393 {offsets = [0, 0], sizes = [2, 512], strides = [1, 1]} : vector<16x512xf32> to vector<2x512xf32>
    %cst_111 = arith.constant dense<0.000000e+00> : vector<2x512xf32>
    %398 = tpu.matmul %395, %394, %cst_111 {dimension_numbers = #tpu.dot_dimension_numbers<[1], [0], [0], [1], [0, 0, 1, 1], [], []>} : vector<2x128xf32>, vector<128x512xf32>, vector<2x512xf32> -> vector<2x512xf32>
    %399 = arith.addf %397, %398 : vector<2x512xf32>
    %400 = vector.extract_strided_slice %399 {offsets = [0, 0], sizes = [2, 384], strides = [1, 1]} : vector<2x512xf32> to vector<2x384xf32>
    %401 = arith.negf %400 : vector<2x384xf32>
    %402 = math.exp %401 : vector<2x384xf32>
    %cst_112 = arith.constant 1.000000e+00 : f32
    %403 = vector.broadcast %cst_112 : f32 to vector<2x384xf32>
    %404 = arith.addf %403, %402 : vector<2x384xf32>
    %405 = arith.divf %403, %404 : vector<2x384xf32>
    %406 = vector.extract_strided_slice %405 {offsets = [0, 0], sizes = [2, 128], strides = [1, 1]} : vector<2x384xf32> to vector<2x128xf32>
    %407 = vector.extract_strided_slice %405 {offsets = [0, 128], sizes = [2, 128], strides = [1, 1]} : vector<2x384xf32> to vector<2x128xf32>
    %408 = vector.extract_strided_slice %405 {offsets = [0, 256], sizes = [2, 128], strides = [1, 1]} : vector<2x384xf32> to vector<2x128xf32>
    %409 = vector.extract_strided_slice %399 {offsets = [0, 384], sizes = [2, 128], strides = [1, 1]} : vector<2x512xf32> to vector<2x128xf32>
    %410 = math.tanh %409 : vector<2x128xf32>
    %411 = arith.mulf %407, %396 : vector<2x128xf32>
    %412 = arith.mulf %406, %410 : vector<2x128xf32>
    %413 = arith.addf %411, %412 : vector<2x128xf32>
    %414 = math.tanh %413 : vector<2x128xf32>
    %415 = arith.mulf %408, %414 : vector<2x128xf32>
    %416 = vector.extract_strided_slice %393 {offsets = [2, 0], sizes = [2, 512], strides = [1, 1]} : vector<16x512xf32> to vector<2x512xf32>
    %cst_113 = arith.constant dense<0.000000e+00> : vector<2x512xf32>
    %417 = tpu.matmul %415, %394, %cst_113 {dimension_numbers = #tpu.dot_dimension_numbers<[1], [0], [0], [1], [0, 0, 1, 1], [], []>} : vector<2x128xf32>, vector<128x512xf32>, vector<2x512xf32> -> vector<2x512xf32>
    %418 = arith.addf %416, %417 : vector<2x512xf32>
    %419 = vector.extract_strided_slice %418 {offsets = [0, 0], sizes = [2, 384], strides = [1, 1]} : vector<2x512xf32> to vector<2x384xf32>
    %420 = arith.negf %419 : vector<2x384xf32>
    %421 = math.exp %420 : vector<2x384xf32>
    %cst_114 = arith.constant 1.000000e+00 : f32
    %422 = vector.broadcast %cst_114 : f32 to vector<2x384xf32>
    %423 = arith.addf %422, %421 : vector<2x384xf32>
    %424 = arith.divf %422, %423 : vector<2x384xf32>
    %425 = vector.extract_strided_slice %424 {offsets = [0, 0], sizes = [2, 128], strides = [1, 1]} : vector<2x384xf32> to vector<2x128xf32>
    %426 = vector.extract_strided_slice %424 {offsets = [0, 128], sizes = [2, 128], strides = [1, 1]} : vector<2x384xf32> to vector<2x128xf32>
    %427 = vector.extract_strided_slice %424 {offsets = [0, 256], sizes = [2, 128], strides = [1, 1]} : vector<2x384xf32> to vector<2x128xf32>
    %428 = vector.extract_strided_slice %418 {offsets = [0, 384], sizes = [2, 128], strides = [1, 1]} : vector<2x512xf32> to vector<2x128xf32>
    %429 = math.tanh %428 : vector<2x128xf32>
    %430 = arith.mulf %426, %413 : vector<2x128xf32>
    %431 = arith.mulf %425, %429 : vector<2x128xf32>
    %432 = arith.addf %430, %431 : vector<2x128xf32>
    %433 = math.tanh %432 : vector<2x128xf32>
    %434 = arith.mulf %427, %433 : vector<2x128xf32>
    %435 = vector.extract_strided_slice %393 {offsets = [4, 0], sizes = [2, 512], strides = [1, 1]} : vector<16x512xf32> to vector<2x512xf32>
    %cst_115 = arith.constant dense<0.000000e+00> : vector<2x512xf32>
    %436 = tpu.matmul %434, %394, %cst_115 {dimension_numbers = #tpu.dot_dimension_numbers<[1], [0], [0], [1], [0, 0, 1, 1], [], []>} : vector<2x128xf32>, vector<128x512xf32>, vector<2x512xf32> -> vector<2x512xf32>
    %437 = arith.addf %435, %436 : vector<2x512xf32>
    %438 = vector.extract_strided_slice %437 {offsets = [0, 0], sizes = [2, 384], strides = [1, 1]} : vector<2x512xf32> to vector<2x384xf32>
    %439 = arith.negf %438 : vector<2x384xf32>
    %440 = math.exp %439 : vector<2x384xf32>
    %cst_116 = arith.constant 1.000000e+00 : f32
    %441 = vector.broadcast %cst_116 : f32 to vector<2x384xf32>
    %442 = arith.addf %441, %440 : vector<2x384xf32>
    %443 = arith.divf %441, %442 : vector<2x384xf32>
    %444 = vector.extract_strided_slice %443 {offsets = [0, 0], sizes = [2, 128], strides = [1, 1]} : vector<2x384xf32> to vector<2x128xf32>
    %445 = vector.extract_strided_slice %443 {offsets = [0, 128], sizes = [2, 128], strides = [1, 1]} : vector<2x384xf32> to vector<2x128xf32>
    %446 = vector.extract_strided_slice %443 {offsets = [0, 256], sizes = [2, 128], strides = [1, 1]} : vector<2x384xf32> to vector<2x128xf32>
    %447 = vector.extract_strided_slice %437 {offsets = [0, 384], sizes = [2, 128], strides = [1, 1]} : vector<2x512xf32> to vector<2x128xf32>
    %448 = math.tanh %447 : vector<2x128xf32>
    %449 = arith.mulf %445, %432 : vector<2x128xf32>
    %450 = arith.mulf %444, %448 : vector<2x128xf32>
    %451 = arith.addf %449, %450 : vector<2x128xf32>
    %452 = math.tanh %451 : vector<2x128xf32>
    %453 = arith.mulf %446, %452 : vector<2x128xf32>
    %454 = vector.extract_strided_slice %393 {offsets = [6, 0], sizes = [2, 512], strides = [1, 1]} : vector<16x512xf32> to vector<2x512xf32>
    %cst_117 = arith.constant dense<0.000000e+00> : vector<2x512xf32>
    %455 = tpu.matmul %453, %394, %cst_117 {dimension_numbers = #tpu.dot_dimension_numbers<[1], [0], [0], [1], [0, 0, 1, 1], [], []>} : vector<2x128xf32>, vector<128x512xf32>, vector<2x512xf32> -> vector<2x512xf32>
    %456 = arith.addf %454, %455 : vector<2x512xf32>
    %457 = vector.extract_strided_slice %456 {offsets = [0, 0], sizes = [2, 384], strides = [1, 1]} : vector<2x512xf32> to vector<2x384xf32>
    %458 = arith.negf %457 : vector<2x384xf32>
    %459 = math.exp %458 : vector<2x384xf32>
    %cst_118 = arith.constant 1.000000e+00 : f32
    %460 = vector.broadcast %cst_118 : f32 to vector<2x384xf32>
    %461 = arith.addf %460, %459 : vector<2x384xf32>
    %462 = arith.divf %460, %461 : vector<2x384xf32>
    %463 = vector.extract_strided_slice %462 {offsets = [0, 0], sizes = [2, 128], strides = [1, 1]} : vector<2x384xf32> to vector<2x128xf32>
    %464 = vector.extract_strided_slice %462 {offsets = [0, 128], sizes = [2, 128], strides = [1, 1]} : vector<2x384xf32> to vector<2x128xf32>
    %465 = vector.extract_strided_slice %462 {offsets = [0, 256], sizes = [2, 128], strides = [1, 1]} : vector<2x384xf32> to vector<2x128xf32>
    %466 = vector.extract_strided_slice %456 {offsets = [0, 384], sizes = [2, 128], strides = [1, 1]} : vector<2x512xf32> to vector<2x128xf32>
    %467 = math.tanh %466 : vector<2x128xf32>
    %468 = arith.mulf %464, %451 : vector<2x128xf32>
    %469 = arith.mulf %463, %467 : vector<2x128xf32>
    %470 = arith.addf %468, %469 : vector<2x128xf32>
    %471 = math.tanh %470 : vector<2x128xf32>
    %472 = arith.mulf %465, %471 : vector<2x128xf32>
    %473 = vector.extract_strided_slice %393 {offsets = [8, 0], sizes = [2, 512], strides = [1, 1]} : vector<16x512xf32> to vector<2x512xf32>
    %cst_119 = arith.constant dense<0.000000e+00> : vector<2x512xf32>
    %474 = tpu.matmul %472, %394, %cst_119 {dimension_numbers = #tpu.dot_dimension_numbers<[1], [0], [0], [1], [0, 0, 1, 1], [], []>} : vector<2x128xf32>, vector<128x512xf32>, vector<2x512xf32> -> vector<2x512xf32>
    %475 = arith.addf %473, %474 : vector<2x512xf32>
    %476 = vector.extract_strided_slice %475 {offsets = [0, 0], sizes = [2, 384], strides = [1, 1]} : vector<2x512xf32> to vector<2x384xf32>
    %477 = arith.negf %476 : vector<2x384xf32>
    %478 = math.exp %477 : vector<2x384xf32>
    %cst_120 = arith.constant 1.000000e+00 : f32
    %479 = vector.broadcast %cst_120 : f32 to vector<2x384xf32>
    %480 = arith.addf %479, %478 : vector<2x384xf32>
    %481 = arith.divf %479, %480 : vector<2x384xf32>
    %482 = vector.extract_strided_slice %481 {offsets = [0, 0], sizes = [2, 128], strides = [1, 1]} : vector<2x384xf32> to vector<2x128xf32>
    %483 = vector.extract_strided_slice %481 {offsets = [0, 128], sizes = [2, 128], strides = [1, 1]} : vector<2x384xf32> to vector<2x128xf32>
    %484 = vector.extract_strided_slice %481 {offsets = [0, 256], sizes = [2, 128], strides = [1, 1]} : vector<2x384xf32> to vector<2x128xf32>
    %485 = vector.extract_strided_slice %475 {offsets = [0, 384], sizes = [2, 128], strides = [1, 1]} : vector<2x512xf32> to vector<2x128xf32>
    %486 = math.tanh %485 : vector<2x128xf32>
    %487 = arith.mulf %483, %470 : vector<2x128xf32>
    %488 = arith.mulf %482, %486 : vector<2x128xf32>
    %489 = arith.addf %487, %488 : vector<2x128xf32>
    %490 = math.tanh %489 : vector<2x128xf32>
    %491 = arith.mulf %484, %490 : vector<2x128xf32>
    %492 = vector.extract_strided_slice %393 {offsets = [10, 0], sizes = [2, 512], strides = [1, 1]} : vector<16x512xf32> to vector<2x512xf32>
    %cst_121 = arith.constant dense<0.000000e+00> : vector<2x512xf32>
    %493 = tpu.matmul %491, %394, %cst_121 {dimension_numbers = #tpu.dot_dimension_numbers<[1], [0], [0], [1], [0, 0, 1, 1], [], []>} : vector<2x128xf32>, vector<128x512xf32>, vector<2x512xf32> -> vector<2x512xf32>
    %494 = arith.addf %492, %493 : vector<2x512xf32>
    %495 = vector.extract_strided_slice %494 {offsets = [0, 0], sizes = [2, 384], strides = [1, 1]} : vector<2x512xf32> to vector<2x384xf32>
    %496 = arith.negf %495 : vector<2x384xf32>
    %497 = math.exp %496 : vector<2x384xf32>
    %cst_122 = arith.constant 1.000000e+00 : f32
    %498 = vector.broadcast %cst_122 : f32 to vector<2x384xf32>
    %499 = arith.addf %498, %497 : vector<2x384xf32>
    %500 = arith.divf %498, %499 : vector<2x384xf32>
    %501 = vector.extract_strided_slice %500 {offsets = [0, 0], sizes = [2, 128], strides = [1, 1]} : vector<2x384xf32> to vector<2x128xf32>
    %502 = vector.extract_strided_slice %500 {offsets = [0, 128], sizes = [2, 128], strides = [1, 1]} : vector<2x384xf32> to vector<2x128xf32>
    %503 = vector.extract_strided_slice %500 {offsets = [0, 256], sizes = [2, 128], strides = [1, 1]} : vector<2x384xf32> to vector<2x128xf32>
    %504 = vector.extract_strided_slice %494 {offsets = [0, 384], sizes = [2, 128], strides = [1, 1]} : vector<2x512xf32> to vector<2x128xf32>
    %505 = math.tanh %504 : vector<2x128xf32>
    %506 = arith.mulf %502, %489 : vector<2x128xf32>
    %507 = arith.mulf %501, %505 : vector<2x128xf32>
    %508 = arith.addf %506, %507 : vector<2x128xf32>
    %509 = math.tanh %508 : vector<2x128xf32>
    %510 = arith.mulf %503, %509 : vector<2x128xf32>
    %511 = vector.extract_strided_slice %393 {offsets = [12, 0], sizes = [2, 512], strides = [1, 1]} : vector<16x512xf32> to vector<2x512xf32>
    %cst_123 = arith.constant dense<0.000000e+00> : vector<2x512xf32>
    %512 = tpu.matmul %510, %394, %cst_123 {dimension_numbers = #tpu.dot_dimension_numbers<[1], [0], [0], [1], [0, 0, 1, 1], [], []>} : vector<2x128xf32>, vector<128x512xf32>, vector<2x512xf32> -> vector<2x512xf32>
    %513 = arith.addf %511, %512 : vector<2x512xf32>
    %514 = vector.extract_strided_slice %513 {offsets = [0, 0], sizes = [2, 384], strides = [1, 1]} : vector<2x512xf32> to vector<2x384xf32>
    %515 = arith.negf %514 : vector<2x384xf32>
    %516 = math.exp %515 : vector<2x384xf32>
    %cst_124 = arith.constant 1.000000e+00 : f32
    %517 = vector.broadcast %cst_124 : f32 to vector<2x384xf32>
    %518 = arith.addf %517, %516 : vector<2x384xf32>
    %519 = arith.divf %517, %518 : vector<2x384xf32>
    %520 = vector.extract_strided_slice %519 {offsets = [0, 0], sizes = [2, 128], strides = [1, 1]} : vector<2x384xf32> to vector<2x128xf32>
    %521 = vector.extract_strided_slice %519 {offsets = [0, 128], sizes = [2, 128], strides = [1, 1]} : vector<2x384xf32> to vector<2x128xf32>
    %522 = vector.extract_strided_slice %519 {offsets = [0, 256], sizes = [2, 128], strides = [1, 1]} : vector<2x384xf32> to vector<2x128xf32>
    %523 = vector.extract_strided_slice %513 {offsets = [0, 384], sizes = [2, 128], strides = [1, 1]} : vector<2x512xf32> to vector<2x128xf32>
    %524 = math.tanh %523 : vector<2x128xf32>
    %525 = arith.mulf %521, %508 : vector<2x128xf32>
    %526 = arith.mulf %520, %524 : vector<2x128xf32>
    %527 = arith.addf %525, %526 : vector<2x128xf32>
    %528 = math.tanh %527 : vector<2x128xf32>
    %529 = arith.mulf %522, %528 : vector<2x128xf32>
    %530 = vector.extract_strided_slice %393 {offsets = [14, 0], sizes = [2, 512], strides = [1, 1]} : vector<16x512xf32> to vector<2x512xf32>
    %cst_125 = arith.constant dense<0.000000e+00> : vector<2x512xf32>
    %531 = tpu.matmul %529, %394, %cst_125 {dimension_numbers = #tpu.dot_dimension_numbers<[1], [0], [0], [1], [0, 0, 1, 1], [], []>} : vector<2x128xf32>, vector<128x512xf32>, vector<2x512xf32> -> vector<2x512xf32>
    %532 = arith.addf %530, %531 : vector<2x512xf32>
    %533 = vector.extract_strided_slice %532 {offsets = [0, 0], sizes = [2, 384], strides = [1, 1]} : vector<2x512xf32> to vector<2x384xf32>
    %534 = arith.negf %533 : vector<2x384xf32>
    %535 = math.exp %534 : vector<2x384xf32>
    %cst_126 = arith.constant 1.000000e+00 : f32
    %536 = vector.broadcast %cst_126 : f32 to vector<2x384xf32>
    %537 = arith.addf %536, %535 : vector<2x384xf32>
    %538 = arith.divf %536, %537 : vector<2x384xf32>
    %539 = vector.extract_strided_slice %538 {offsets = [0, 0], sizes = [2, 128], strides = [1, 1]} : vector<2x384xf32> to vector<2x128xf32>
    %540 = vector.extract_strided_slice %538 {offsets = [0, 128], sizes = [2, 128], strides = [1, 1]} : vector<2x384xf32> to vector<2x128xf32>
    %541 = vector.extract_strided_slice %538 {offsets = [0, 256], sizes = [2, 128], strides = [1, 1]} : vector<2x384xf32> to vector<2x128xf32>
    %542 = vector.extract_strided_slice %532 {offsets = [0, 384], sizes = [2, 128], strides = [1, 1]} : vector<2x512xf32> to vector<2x128xf32>
    %543 = math.tanh %542 : vector<2x128xf32>
    %544 = arith.mulf %540, %527 : vector<2x128xf32>
    %545 = arith.mulf %539, %543 : vector<2x128xf32>
    %546 = arith.addf %544, %545 : vector<2x128xf32>
    %547 = math.tanh %546 : vector<2x128xf32>
    %548 = arith.mulf %541, %547 : vector<2x128xf32>
    %549 = tpu.concatenate %415, %434, %453, %472, %491, %510, %529, %548 in 0 : vector<2x128xf32>, vector<2x128xf32>, vector<2x128xf32>, vector<2x128xf32>, vector<2x128xf32>, vector<2x128xf32>, vector<2x128xf32>, vector<2x128xf32> -> vector<16x128xf32>
    %cst_127 = arith.constant dense<0.000000e+00> : vector<16xf32>
    %550 = vector.multi_reduction <add>, %549, %cst_127 [1] : vector<16x128xf32> to vector<16xf32>
    %551 = vector.shape_cast %550 : vector<16xf32> to vector<16x1xf32>
    %cst_128 = arith.constant 1.280000e+02 : f32
    %552 = vector.broadcast %cst_128 : f32 to vector<16x1xf32>
    %553 = arith.divf %551, %552 : vector<16x1xf32>
    %554 = vector.broadcast %553 : vector<16x1xf32> to vector<16x128xf32>
    %555 = arith.subf %549, %554 : vector<16x128xf32>
    %556 = arith.mulf %555, %555 : vector<16x128xf32>
    %cst_129 = arith.constant dense<0.000000e+00> : vector<16xf32>
    %557 = vector.multi_reduction <add>, %556, %cst_129 [1] : vector<16x128xf32> to vector<16xf32>
    %558 = vector.shape_cast %557 : vector<16xf32> to vector<16x1xf32>
    %cst_130 = arith.constant 0.00787401571 : f32
    %559 = vector.broadcast %cst_130 : f32 to vector<16x1xf32>
    %560 = arith.mulf %558, %559 : vector<16x1xf32>
    %561 = math.sqrt %560 : vector<16x1xf32>
    %cst_131 = arith.constant 9.99999997E-7 : f32
    %562 = vector.broadcast %cst_131 : f32 to vector<16x1xf32>
    %563 = arith.maximumf %561, %562 : vector<16x1xf32>
    %564 = tpu.reciprocal %563 {approx = true} : vector<16x1xf32> -> vector<16x1xf32>
    %565 = vector.broadcast %564 : vector<16x1xf32> to vector<16x128xf32>
    %566 = arith.mulf %555, %565 : vector<16x128xf32>
    %c320 = arith.constant 320 : index
    %c0_132 = arith.constant 0 : index
    %567 = vector.load %arg3[%c320, %c0_132] : memref<464x128xf32, #tpu.memory_space<vmem>>, vector<1x128xf32>
    %568 = vector.broadcast %567 : vector<1x128xf32> to vector<16x128xf32>
    %569 = arith.mulf %566, %568 : vector<16x128xf32>
    %c321 = arith.constant 321 : index
    %c0_133 = arith.constant 0 : index
    %570 = vector.load %arg3[%c321, %c0_133] : memref<464x128xf32, #tpu.memory_space<vmem>>, vector<1x128xf32>
    %571 = vector.broadcast %570 : vector<1x128xf32> to vector<16x128xf32>
    %572 = arith.addf %569, %571 : vector<16x128xf32>
    %c328 = arith.constant 328 : index
    %c0_134 = arith.constant 0 : index
    %573 = vector.load %arg3[%c328, %c0_134] : memref<464x128xf32, #tpu.memory_space<vmem>>, vector<128x128xf32>
    %cst_135 = arith.constant dense<0.000000e+00> : vector<16x128xf32>
    %574 = tpu.matmul %572, %573, %cst_135 {dimension_numbers = #tpu.dot_dimension_numbers<[1], [0], [0], [1], [0, 0, 1, 1], [], []>} : vector<16x128xf32>, vector<128x128xf32>, vector<16x128xf32> -> vector<16x128xf32>
    %c456 = arith.constant 456 : index
    %c0_136 = arith.constant 0 : index
    %575 = vector.load %arg3[%c456, %c0_136] : memref<464x128xf32, #tpu.memory_space<vmem>>, vector<1x128xf32>
    %576 = vector.broadcast %575 : vector<1x128xf32> to vector<16x128xf32>
    %577 = arith.addf %574, %576 : vector<16x128xf32>
    %c0_137 = arith.constant 0 : index
    %c0_138 = arith.constant 0 : index
    %578 = vector.load %arg5[%c0_137, %c0_138] : memref<16x128xf32, #tpu.memory_space<vmem>>, vector<16x128xf32>
    tpu.vector_store %arg5[%c0_137, %c0_138], %577 {strides = array<i32>} : memref<16x128xf32, #tpu.memory_space<vmem>>, vector<16x128xf32>,
    return
  }
  func.func @transform_0(%arg0: i32) -> (i32, i32) {
    %c0_i32 = arith.constant 0 : i32
    %c0_i32_0 = arith.constant 0 : i32
    %c0_i32_1 = arith.constant 0 : i32
    return %c0_i32, %c0_i32_0 : i32, i32
  }
  func.func @transform_1(%arg0: i32) -> (i32, i32) {
    %c0_i32 = arith.constant 0 : i32
    %c0_i32_0 = arith.constant 0 : i32
    %c0_i32_1 = arith.constant 0 : i32
    return %c0_i32, %c0_i32_0 : i32, i32
  }
  func.func @transform_2(%arg0: i32) -> (i32, i32) {
    %c0_i32 = arith.constant 0 : i32
    %c0_i32_0 = arith.constant 0 : i32
    %c0_i32_1 = arith.constant 0 : i32
    return %c0_i32, %c0_i32_0 : i32, i32
  }
  func.func @transform_3(%arg0: i32) -> (i32, i32) {
    %c0_i32 = arith.constant 0 : i32
    %c0_i32_0 = arith.constant 0 : i32
    %c0_i32_1 = arith.constant 0 : i32
    return %c0_i32, %c0_i32_0 : i32, i32
  }
  func.func @transform_4(%arg0: i32) -> (i32, i32) {
    %c0_i32 = arith.constant 0 : i32
    %c0_i32_0 = arith.constant 0 : i32
    %c0_i32_1 = arith.constant 0 : i32
    return %c0_i32, %c0_i32_0 : i32, i32
  }
}

</mosaic_0001>

<bundles_post_ra>
// kernel: albert_lstm_token_class_forward.1
= control target key start
LH: loop header
LB: loop body
LE: loop exit
PB: predicated region body
PF: predicated region fallthrough
CT: control target
= control target key end

     0   :  { %9 = vsyncpa [#allocation3], 0  ;;  %s8492_s0 = inlined_call_operand.vmem [shape: s32[16,1], index: 0, kind: input, shape index: {}]   ;;  %s8493_s1 = inlined_call_operand.vmem [shape: f32[2,8], index: 1, kind: input, shape index: {}]   ;;  %s8494_s2 = inlined_call_operand.hbm [shape: f32[464,128], index: 2, kind: input, shape index: {}]   ;;  %s8495_s3 = inlined_call_operand.hbm [shape: f32[168,512], index: 3, kind: input, shape index: {}]   ;;  %s8496_s4 = inlined_call_operand.vmem [shape: f32[16,128], index: 4, kind: output, shape index: {}]  }
   0x1   :  { %10 = vsyncpa [#allocation5], 0  ;;  %s7410_s15 = smov [#allocation2]   ;;  %s7362_s19 = scalar_lea.hbm %s8494_s2, 7424 }
   0x2   :  { %s20_s16 = sshll.u32 %s7410_s15, 4  ;;  %p7363_p0 = scmp.ne.s32.totalorder %s8494_s2, %s7362_s19  ;;  %s21_s16 = int_to_ptr.vmem [resolvable:$true] %s20_s16 }
   0x3   :  { %p7366_p1 = scmp.lt.u32.totalorder %s7362_s19, %s8494_s2 }
   0x5   :  { %p7368_p2 = pnand %p7366_p1, %p7363_p0 }
   0x7   :  { %7371 = shalt.err (!%p7368_p2)
}
   0x8   :  { %s7372_s24 = scalar_lea.vmem %s21_s16, 7424  ;;  %p7377_p4 = scmp.lt.s32.totalorder %s21_s16, %s21_s16 }
   0x9   :  { %p7373_p3 = scmp.ne.s32.totalorder %s21_s16, %s7372_s24  ;;  %p7378_p5 = scmp.lt.s32.totalorder %s7372_s24, %s7372_s24 }
   0xb   :  { %p7379_p6 = por %p7378_p5, %p7377_p4 }
   0xd   :  { %p7380_p7 = pnand %p7379_p6, %p7373_p3 }
   0xf   :  { %7383 = shalt.err (!%p7380_p7)
}
  0x10   :  { %s7411_s25 = smov 128   ;;  %s7412_s26 = smov 8  }
  0x11   :  { %26 = dma.hbm_to_vmem [thread:$0]  %s8494_s2, 7424, %s21_s16, [#allocation3], %s7411_s25, %s7411_s25, %s7412_s26  }
  0x12   :  { %s7413_s29 = smov [#allocation4]   ;;  %s7384_s7 = scalar_lea.hbm %s8495_s3, 10752 }
  0x13   :  { %s32_s30 = sshll.u32 %s7413_s29, 4  ;;  %p7385_p8 = scmp.ne.s32.totalorder %s8495_s3, %s7384_s7  ;;  %s33_s30 = int_to_ptr.vmem [resolvable:$true] %s32_s30 }
  0x14   :  { %p7388_p9 = scmp.lt.u32.totalorder %s7384_s7, %s8495_s3 }
  0x16   :  { %p7390_p10 = pnand %p7388_p9, %p7385_p8 }
  0x18   :  { %7393 = shalt.err (!%p7390_p10)
}
  0x19   :  { %s7394_s12 = scalar_lea.vmem %s33_s30, 10752  ;;  %p7399_p12 = scmp.lt.s32.totalorder %s33_s30, %s33_s30 }
  0x1a   :  { %p7395_p11 = scmp.ne.s32.totalorder %s33_s30, %s7394_s12  ;;  %p7400_p13 = scmp.lt.s32.totalorder %s7394_s12, %s7394_s12 }
  0x1c   :  { %p7401_p0 = por %p7400_p13, %p7399_p12 }
  0x1e   :  { %p7402_p1 = pnand %p7401_p0, %p7395_p11 }
  0x20   :  { %7405 = shalt.err (!%p7402_p1)
}
  0x21   :  { %s7414_s2 = smov 512   ;;  %s7415_s13 = smov 32  }
  0x22   :  { %38 = dma.hbm_to_vmem [thread:$0]  %s8495_s3, 10752, %s33_s30, [#allocation5], %s7414_s2, %s7414_s2, %s7415_s13  }
  0x23   :  { %7406 = dma.done.wait [#allocation3], 7424  }
  0x24   :  { %7407 = vsyncadd [#allocation3], 4294959872 }
  0x25   :  { %7408 = dma.done.wait [#allocation5], 10752  }
  0x26   :  { %7409 = vsyncadd [#allocation5], 4294956544  ;;  %v7416_v0 = vmov 0   ;;  %v45_v1 = vld [vmem:[%s8492_s0] sm:$0xff]  ;;  %v62_v3 = vld [vmem:[#allocation2 + $0x8] sm:$0xff]  ;;  %v7417_v15 = vmov 0.0   ;;  %v47_v16 = vlaneseq }
  0x27   :  { %7131 = vset.pattern.permute.xlu0 %v7416_v0  ;;  %v61_v2 = vld [vmem:[#allocation2] sm:$0xff]  ;;  %v63_v4 = vld [vmem:[#allocation2 + $0x10] sm:$0xff]  ;;  %v64_v5 = vld [vmem:[#allocation2 + $0x18] sm:$0xff]  ;;  %vm71_vm0 = vcmask 523264   ;;  %vm155_vm3 = vcmask 130048   ;;  %vm339_vm4 = vcmask 261120  }
  0x28   :  { %50 = vperm.xlu0 %7131, %v45_v1   ;;  %v46_v6 = vld [vmem:[%s8492_s0 + $0x8] sm:$0xff]  ;;  %v6448_v7 = vpack.c.bf16 %v62_v3, %v61_v2  ;;  %v6452_v8 = vpack.c.bf16 %v64_v5, %v63_v4  ;;  %v65_v9 = vld [vmem:[#allocation2 + $0x20] sm:$0xff]  ;;  %v67_v12 = vld [vmem:[#allocation2 + $0x30] sm:$0xff]  ;;  %v48_v17 = vand.u32 127, %v47_v16  ;;  %vm7418_vm5 = vmmov 0   ;;  %s7419_s0 = smov 96  }
  0x29   :  { %v66_v10 = vld [vmem:[#allocation2 + $0x28] sm:$0xff]  ;;  %v68_v13 = vld [vmem:[#allocation2 + $0x38] sm:$0xff]  ;;  %v69_v22 = vld [vmem:[#allocation2 + $0x40] sm:$0xff]  ;;  %vm424_vm6 = vcmask 64512   ;;  %s7422_s21 = smov 88   ;;  %s7423_s22 = smov 120  }
  0x2a   :  { %6449 = vmatprep.subr.bf16.mxu0 %v6448_v7  ;;  %v6456_v11 = vpack.c.bf16 %v66_v10, %v65_v9  ;;  %v6460_v14 = vpack.c.bf16 %v68_v13, %v67_v12  ;;  %v70_v24 = vld [vmem:[#allocation2 + $0x48] sm:$0xff]  ;;  %v195_v40 = vld [vmem:[#allocation2 + $0x58] sm:$0xff]  ;;  %v196_v41 = vld [vmem:[#allocation2 + $0x60] sm:$0xff]  ;;  %v7420_v13 = vmov 1966171168   ;;  %s7424_s23 = smov 56  }
  0x2b   :  { %6451 = vmatpush3.bf16.msra.mxu0 %v6448_v7  ;;  %v6464_v42 = vpack.c.bf16 %v196_v41, %v195_v40  ;;  %v307_v43 = vld [vmem:[#allocation2 + $0x70] sm:$0xff]  ;;  %v308_v44 = vld [vmem:[#allocation2 + $0x78] sm:$0xff]  ;;  %v309_v62 = vld [vmem:[#allocation2 + $0x80] sm:$0xff]  ;;  %s7425_s24 = smov 80   ;;  %s7426_s25 = smov 112   ;;  %vm1794_vm7 = vcmask 195584  }
  0x2c   :  { %53 = vperm.xlu0 %7131, %v46_v6   ;;  %6453 = vmatprep.subr.bf16.mxu0 %v6452_v8  ;;  %v7499_v45 = vpack.c.bf16 %v308_v44, %v307_v43  ;;  %v5862_v53 = vld [vmem:[#allocation2 + $0x50] ss:$0 sm:$0xff]  ;;  %v5863_v55 = vld [vmem:[#allocation2 + $0x51] ss:$0 sm:$0xff]  ;;  %v310_v63 = vld [vmem:[#allocation2 + $0x88] sm:$0xff]  ;;  %s7427_s27 = smov 48  }
  0x2d   :  { %6465 = vmatprep.subr.bf16.mxu1 %v6464_v42  ;;  %v7505_v0 = vpack.c.bf16 %v310_v63, %v309_v62  ;;  %v5864_v1 = vld [vmem:[#allocation2 + $0x68] ss:$0 sm:$0xff]  ;;  %v7522_v6 = vld [vmem:[#allocation2 + $0x90] ss:$0 sm:$0xff]  ;;  %s7428_s28 = smov 72   ;;  %s7429_s29 = smov 104  }
  0x2e   :  { %6467 = vmatpush3.bf16.msra.mxu1 %v6464_v42  ;;  %s7430_s30 = smov 40   ;;  %s7431_s5 = smov 16   ;;  %vm3924_vm8 = vcmask 1041409   ;;  %vm3929_vm9 = vcmask 1043459   ;;  %vm3934_vm10 = vcmask 1045509   ;;  %vm3939_vm11 = vcmask 1047559  }
  0x2f   :  { %6455 = vmatpush3.bf16.msra.mxu0 %v6452_v8  ;;  %6469 = vmatprep.subr.bf16.mxu1 %v7499_v45  ;;  %s7432_s6 = smov 24   ;;  %vm3957_vm12 = vcmask 1041408   ;;  %vm3959_vm13 = vcmask 1043456   ;;  %vm3961_vm14 = vcmask 1045504  }
  0x30   :  { %6457 = vmatprep.subr.bf16.mxu0 %v6456_v11 }
  0x33   :  { %6459 = vmatpush3.bf16.msra.mxu0 %v6456_v11 }
  0x34   :  { %6461 = vmatprep.subr.bf16.mxu0 %v6460_v14 }
  0x37   :  { %6463 = vmatpush3.bf16.msra.mxu0 %v6460_v14  ;;  %v294_v14 = vunpack.c.l.s4 %v7420_v13 }
  0x38   :  { %6165 = vmatprep.subr.mxu0 %v7417_v15 }
  0xa7   :  { %v51_v18 = vpop.permute.xlu0 %50 }
  0xa8   :  { %vm55_vm1 = vcmp.eq.s32.totalorder %v48_v17, %v51_v18  ;;  %v7547_v18 = vshrl.u32 %v47_v16, 7 }
  0xa9   :  { %v5858_v19 = vsel %vm55_vm1, 1.0, %v7417_v15 }
  0xaa   :  { %6139 = vmatprep.mubr.msk.f32.mxu0 %vm71_vm0, %v5858_v19 }
  0xab   :  { %v54_v20 = vpop.permute.xlu0 %53 }
  0xac   :  { %vm56_vm2 = vcmp.eq.s32.totalorder %v48_v17, %v54_v20  ;;  %v295_v17 = vunpack.c.0.s8 %v294_v14  ;;  %v5867_v20 = vld.sshfl [vmem:[%s8493_s1] sm:$0x11 pattern:$0x75316420]  ;;  %s7421_s1 = smov 64  }
  0xad   :  { %v5859_v21 = vsel %vm56_vm2, 1.0, %v7417_v15 }
  0xae   :  { %6140 = vmatmul.mubr.msk.f32.vlgmr.msra.gmra.mrb[0].mxu0 %vm71_vm0, %v5859_v21  ;;  %v298_v19 = vsub.s32 %v295_v17, %v7547_v18  ;;  %v292_v21 = vcombine.high %v5867_v20, %v5867_v20 }
  0xaf   :  { %6167 = vmatprep.mubr.msk.f32.mxu0 %vm7418_vm5, %v7417_v15 }
 0x181   :  { %v6141_v23 = vpop.f32.mrb[0].mxu0 }
 0x182   :  { %v144_v25 = vpop.f32.mrb[1].mxu0  ;;  %v150_v27 = vadd.f32 %v6141_v23, %v70_v24  ;;  %v7554_v23 = vsub.s32 0, %v7547_v18  ;;  %v306_v24 = vrot.slane %v292_v21, %v298_v19 }
 0x183   :  { %v145_v26 = vadd.f32 %v144_v25, %v69_v22  ;;  %v299_v22 = vrot.slane %v5867_v20, %v298_v19 }
 0x184   :  { %v159_v29 = vsel %vm155_vm3, %v150_v27, 0.0  ;;  %v7560_v16 = vrot.slane %v306_v24, %v7554_v23 }
 0x185   :  { %v156_v28 = vsel %vm155_vm3, %v145_v26, 0.0  ;;  %v7557_v25 = vrot.slane %v299_v22, %v7554_v23 }
 0x186   :  { %157 = vadd.xlane.f32.xlu1 %v156_v28 }
 0x18a   :  { %160 = vadd.xlane.f32.xlu1 %v159_v29 }
 0x213   :  { %v158_v30 = vpop.xlane.xlu1 %157 }
 0x214   :  { %v163_v31 = vmul.f32 0.0625, %v158_v30 }
 0x216   :  { %v165_v32 = vsub.f32 %v145_v26, %v163_v31 }
 0x217   :  { %v161_v33 = vpop.xlane.xlu1 %160 }
 0x218   :  { %v164_v34 = vmul.f32 0.0625, %v161_v33  ;;  %v167_v35 = vmul.f32 %v165_v32, %v165_v32 }
 0x21a   :  { %v166_v36 = vsub.f32 %v150_v27, %v164_v34  ;;  %v169_v37 = vsel %vm155_vm3, %v167_v35, 0.0 }
 0x21b   :  { %170 = vadd.xlane.f32.xlu0 %v169_v37 }
 0x21c   :  { %v168_v38 = vmul.f32 %v166_v36, %v166_v36 }
 0x21e   :  { %v172_v39 = vsel %vm155_vm3, %v168_v38, 0.0 }
 0x21f   :  { %173 = vadd.xlane.f32.xlu1 %v172_v39 }
 0x2a8   :  { %v171_v46 = vpop.xlane.xlu0 %170 }
 0x2a9   :  { %v175_v47 = vmul.f32 0.0625, %v171_v46 }
 0x2ab   :  { %v177_v48 = vadd.f32 1e-12, %v175_v47 }
 0x2ac   :  { %v174_v49 = vpop.xlane.xlu1 %173 }
 0x2ad   :  { %7132 = vrsqrt.f32 %v177_v48  ;;  %v176_v50 = vmul.f32 0.0625, %v174_v49 }
 0x2af   :  { %v178_v51 = vadd.f32 1e-12, %v176_v50 }
 0x2b1   :  { %7134 = vrsqrt.f32 %v178_v51 }
 0x2b7   :  { %v7133_v52 = vpop.eup %7132 }
 0x2b8   :  { %v181_v54 = vmul.f32 %v7133_v52, %v165_v32 }
 0x2ba   :  { %v187_v56 = vmul.f32 %v5862_v53, %v181_v54 }
 0x2bb   :  { %v7135_v57 = vpop.eup %7134 }
 0x2bc   :  { %v182_v58 = vmul.f32 %v7135_v57, %v166_v36  ;;  %v193_v59 = vadd.f32 %v5863_v55, %v187_v56 }
 0x2be   :  { %v188_v60 = vmul.f32 %v5862_v53, %v182_v58  ;;  %6146 = vmatprep.mubr.msk.f32.mxu1 %vm155_vm3, %v193_v59 }
 0x2c0   :  { %v194_v61 = vadd.f32 %v5863_v55, %v188_v60 }
 0x2c2   :  { %6147 = vmatmul.mubr.msk.f32.vlgmr.msra.gmra.mrb[0].mxu1 %vm155_vm3, %v194_v61 }
 0x2c3   :  { %6471 = vmatpush3.bf16.msra.mxu1 %v7499_v45 }
 0x2c4   :  { %6473 = vmatprep.subr.bf16.mxu1 %v7505_v0 }
 0x2c7   :  { %6475 = vmatpush3.bf16.msra.mxu1 %v7505_v0 }
 0x2c8   :  { %6160 = vmatprep.subr.mxu1 %v7417_v15 }
 0x395   :  { %v6148_v2 = vpop.f32.mrb[0].mxu1 }
 0x396   :  { %v274_v3 = vpop.f32.mrb[1].mxu1  ;;  %v7512_v5 = vadd.f32 %v6148_v2, %v5864_v1 }
 0x397   :  { %v7510_v4 = vadd.f32 %v5864_v1, %v274_v3 }
 0x399   :  { %6157 = vmatprep.mubr.msk.f32.mxu1 %vm339_vm4, %v7510_v4 }
 0x39a   :  { %6158 = vmatmul.mubr.msk.f32.vlgmr.msra.gmra.mrb[2].mxu1 %vm339_vm4, %v7512_v5 }
 0x39b   :  { %6162 = vmatprep.mubr.msk.f32.mxu1 %vm7418_vm5, %v7417_v15 }
 0x46d   :  { %v6159_v7 = vpop.f32.mrb[2].mxu1 }
 0x46e   :  { %v412_v8 = vpop.f32.mrb[3].mxu1  ;;  %v7530_v10 = vadd.f32 %v6159_v7, %v7522_v6 }
 0x46f   :  { %v7525_v9 = vadd.f32 %v7522_v6, %v412_v8 }
 0x471   :  { %422 = vrot.lane.b32.xlu1 %v7525_v9, %s7419_s0 }
 0x475   :  { %500 = vrot.lane.b32.xlu1 %v7530_v10, %s7419_s0 }
 0x4e3   :  { %v423_v11 = vpop.permute.xlu1 %422 }
 0x4e4   :  { %6161 = vmatpush3.xpose.msk.msra.mxu1 %vm424_vm6, %v423_v11 }
 0x4e5   :  { %6170 = vmatprep.subr.mxu1 %v7417_v15 }
 0x4e7   :  { %6163 = vmatmul.mubr.msk.f32.vlgmr.msra.gmra.mrb[4].mxu1 %vm424_vm6, %v7525_v9  ;;  %v501_v12 = vpop.permute.xlu1 %500 }
 0x4e8   :  { %6166 = vmatpush3.xpose.msk.msra.mxu0 %vm424_vm6, %v501_v12  ;;  %6172 = vmatprep.mubr.msk.f32.mxu1 %vm7418_vm5, %v7417_v15 }
 0x4e9   :  { %6175 = vmatprep.subr.mxu0 %v7417_v15 }
 0x4eb   :  { %6168 = vmatmul.mubr.msk.f32.vlgmr.msra.gmra.mrb[2].mxu0 %vm424_vm6, %v7530_v10 }
 0x4ec   :  { %6177 = vmatprep.mubr.msk.f32.mxu0 %vm7418_vm5, %v7417_v15 }
 0x5ba   :  { %v495_v26 = vpop.f32.mrb[4].mxu1 }
 0x5bb   :  { %v576_v27 = vmul.f32 0.35355338, %v495_v26  ;;  %v6164_v28 = vpop.f32.mrb[5].mxu1 }
 0x5bd   :  { %v588_v29 = vadd.f32 %v7557_v25, %v576_v27 }
 0x5be   :  { %v572_v30 = vpop.f32.mrb[2].mxu0 }
 0x5bf   :  { %v577_v31 = vmul.f32 0.35355338, %v572_v30  ;;  %v6169_v32 = vpop.f32.mrb[3].mxu0  ;;  %v590_v33 = vsel %vm424_vm6, %v588_v29, -inf }
 0x5c0   :  { %591 = vmax.xlane.f32.xlu1 %v590_v33 }
 0x5c1   :  { %v589_v34 = vadd.f32 %v7560_v16, %v577_v31 }
 0x5c3   :  { %v593_v35 = vsel %vm424_vm6, %v589_v34, -inf }
 0x5c4   :  { %594 = vmax.xlane.f32.xlu0 %v593_v35 }
 0x5d1   :  { %688 = vrot.lane.b32.xlu1 %v7530_v10, %s7421_s1 }
 0x5da   :  { %612 = vrot.lane.b32.xlu0 %v7525_v9, %s7421_s1 }
 0x5de   :  { %766 = vrot.lane.b32.xlu0 %v7525_v9, %s7422_s21 }
 0x5e2   :  { %844 = vrot.lane.b32.xlu0 %v7530_v10, %s7422_s21 }
 0x64d   :  { %v592_v36 = vpop.xlane.xlu1 %591 }
 0x64e   :  { %v596_v37 = vsub.f32 %v588_v29, %v592_v36 }
 0x650   :  { %v598_v41 = vmul.f32 1.442695, %v596_v37 }
 0x651   :  { %v595_v38 = vpop.xlane.xlu0 %594  ;;  %v689_v39 = vpop.permute.xlu1 %688 }
 0x652   :  { %v597_v40 = vsub.f32 %v589_v34, %v595_v38  ;;  %6176 = vmatpush3.msra.mxu0 %v689_v39 }
 0x653   :  { %6185 = vmatprep.subr.mxu0 %v7417_v15 }
 0x654   :  { %v600_v42 = vmul.f32 1.442695, %v597_v40 }
 0x655   :  { %v613_v43 = vpop.permute.xlu0 %612 }
 0x656   :  { %7136 = vpow2.f32 %v600_v42  ;;  %6171 = vmatpush3.msra.mxu1 %v613_v43 }
 0x657   :  { %6180 = vmatprep.subr.mxu1 %v7417_v15  ;;  %7138 = vpow2.f32 %v598_v41 }
 0x659   :  { %v767_v49 = vpop.permute.xlu0 %766 }
 0x65d   :  { %v845_v50 = vpop.permute.xlu0 %844 }
 0x660   :  { %v7137_v44 = vpop.eup %7136 }
 0x661   :  { %v605_v46 = vsel %vm424_vm6, %v7137_v44, 0.0  ;;  %v7139_v47 = vpop.eup %7138 }
 0x662   :  { %606 = vadd.xlane.f32.xlu0 %v605_v46  ;;  %v602_v48 = vsel %vm424_vm6, %v7139_v47, 0.0 }
 0x666   :  { %603 = vadd.xlane.f32.xlu0 %v602_v48 }
 0x67c   :  { %764 = vrot.lane.b32.xlu0 %v7525_v9, %s7423_s22 }
 0x680   :  { %842 = vrot.lane.b32.xlu0 %v7530_v10, %s7423_s22 }
 0x6ef   :  { %v607_v51 = vpop.xlane.xlu0 %606 }
 0x6f0   :  { %7140 = vrcp.f32 %v607_v51 }
 0x6f3   :  { %v604_v52 = vpop.xlane.xlu0 %603 }
 0x6f4   :  { %7142 = vrcp.f32 %v604_v52 }
 0x6f7   :  { %v765_v54 = vpop.permute.xlu0 %764 }
 0x6fa   :  { %v7141_v53 = vpop.eup %7140 }
 0x6fb   :  { %v611_v55 = vmul.f32 %v7141_v53, %v7137_v44  ;;  %v843_v58 = vpop.permute.xlu0 %842 }
 0x6fd   :  { %6178 = vmatmul.mubr.msk.f32.vlgmr.msra.gmra.mrb[4].mxu0 %vm424_vm6, %v611_v55 }
 0x6fe   :  { %v7143_v56 = vpop.eup %7142  ;;  %6186 = vmatpush3.xpose.msk.msra.mxu0 %vm424_vm6, %v845_v50  ;;  %6187 = vmatprep.mubr.msk.f32.mxu0 %vm7418_vm5, %v7417_v15 }
 0x6ff   :  { %v610_v57 = vmul.f32 %v7143_v56, %v7139_v47  ;;  %6195 = vmatprep.subr.mxu0 %v7417_v15 }
 0x701   :  { %6173 = vmatmul.mubr.msk.f32.vlgmr.msra.gmra.mrb[6].mxu1 %vm424_vm6, %v610_v57  ;;  %6188 = vmatmul.mubr.msk.f32.vlgmr.msra.gmra.mrb[6].mxu0 %vm424_vm6, %v843_v58 }
 0x702   :  { %6181 = vmatpush3.xpose.msk.msra.mxu1 %vm424_vm6, %v767_v49  ;;  %6182 = vmatprep.mubr.msk.f32.mxu1 %vm7418_vm5, %v7417_v15 }
 0x703   :  { %6190 = vmatprep.subr.mxu1 %v7417_v15  ;;  %6197 = vmatprep.mubr.msk.f32.mxu0 %vm7418_vm5, %v7417_v15 }
 0x705   :  { %6183 = vmatmul.mubr.msk.f32.vlgmr.msra.gmra.mrb[8].mxu1 %vm424_vm6, %v765_v54 }
 0x706   :  { %6192 = vmatprep.mubr.msk.f32.mxu1 %vm7418_vm5, %v7417_v15 }
 0x7d0   :  { %v7598_v59 = vpop.f32.mrb[4].mxu0 }
 0x7d1   :  { %v6179_v60 = vpop.f32.mrb[5].mxu0 }
 0x7d4   :  { %v7600_v61 = vpop.f32.mrb[6].mxu1  ;;  %v916_v62 = vpop.f32.mrb[6].mxu0 }
 0x7d5   :  { %v921_v63 = vmul.f32 0.35355338, %v916_v62  ;;  %v6174_v1 = vpop.f32.mrb[7].mxu1  ;;  %v6189_v2 = vpop.f32.mrb[7].mxu0 }
 0x7d7   :  { %v923_v3 = vadd.f32 %v921_v63, %v7560_v16 }
 0x7d8   :  { %v838_v7 = vpop.f32.mrb[8].mxu1 }
 0x7d9   :  { %v920_v8 = vmul.f32 0.35355338, %v838_v7  ;;  %v6184_v11 = vpop.f32.mrb[9].mxu1  ;;  %v927_v12 = vsel %vm424_vm6, %v923_v3, -inf }
 0x7da   :  { %928 = vmax.xlane.f32.xlu0 %v927_v12 }
 0x7db   :  { %v922_v13 = vadd.f32 %v920_v8, %v7557_v25 }
 0x7dd   :  { %v924_v14 = vsel %vm424_vm6, %v922_v13, -inf }
 0x7de   :  { %925 = vmax.xlane.f32.xlu1 %v924_v14 }
 0x7ef   :  { %1022 = vrot.lane.b32.xlu1 %v7530_v10, %s7424_s23 }
 0x7f0   :  { %946 = vrot.lane.b32.xlu0 %v7525_v9, %s7424_s23 }
 0x7f3   :  { %1100 = vrot.lane.b32.xlu1 %v7525_v9, %s7425_s24 }
 0x867   :  { %v929_v17 = vpop.xlane.xlu0 %928 }
 0x868   :  { %v931_v19 = vsub.f32 %v923_v3, %v929_v17 }
 0x86a   :  { %v934_v20 = vmul.f32 1.442695, %v931_v19 }
 0x86b   :  { %v947_v21 = vpop.permute.xlu0 %946  ;;  %v926_v22 = vpop.xlane.xlu1 %925 }
 0x86c   :  { %7144 = vpow2.f32 %v934_v20  ;;  %v930_v24 = vsub.f32 %v922_v13, %v926_v22  ;;  %6191 = vmatpush3.msra.mxu1 %v947_v21 }
 0x86d   :  { %6200 = vmatprep.subr.mxu1 %v7417_v15 }
 0x86e   :  { %v932_v26 = vmul.f32 1.442695, %v930_v24 }
 0x86f   :  { %v1023_v27 = vpop.permute.xlu1 %1022 }
 0x870   :  { %7146 = vpow2.f32 %v932_v26  ;;  %6196 = vmatpush3.msra.mxu0 %v1023_v27 }
 0x871   :  { %6205 = vmatprep.subr.mxu0 %v7417_v15 }
 0x873   :  { %v1101_v32 = vpop.permute.xlu1 %1100 }
 0x876   :  { %v7145_v28 = vpop.eup %7144 }
 0x877   :  { %v939_v29 = vsel %vm424_vm6, %v7145_v28, 0.0 }
 0x878   :  { %940 = vadd.xlane.f32.xlu1 %v939_v29 }
 0x87a   :  { %v7147_v30 = vpop.eup %7146 }
 0x87b   :  { %v936_v31 = vsel %vm424_vm6, %v7147_v30, 0.0 }
 0x87c   :  { %937 = vadd.xlane.f32.xlu0 %v936_v31 }
 0x889   :  { %1098 = vrot.lane.b32.xlu1 %v7525_v9, %s7426_s25 }
 0x892   :  { %1178 = vrot.lane.b32.xlu0 %v7530_v10, %s7425_s24 }
 0x896   :  { %1176 = vrot.lane.b32.xlu0 %v7530_v10, %s7426_s25 }
 0x905   :  { %v941_v33 = vpop.xlane.xlu1 %940 }
 0x906   :  { %7148 = vrcp.f32 %v941_v33 }
 0x909   :  { %v938_v34 = vpop.xlane.xlu0 %937  ;;  %v1099_v41 = vpop.permute.xlu1 %1098 }
 0x90a   :  { %7150 = vrcp.f32 %v938_v34 }
 0x90d   :  { %v1179_v36 = vpop.permute.xlu0 %1178 }
 0x910   :  { %v7149_v35 = vpop.eup %7148 }
 0x911   :  { %v945_v37 = vmul.f32 %v7149_v35, %v7145_v28  ;;  %v1177_v40 = vpop.permute.xlu0 %1176 }
 0x913   :  { %6198 = vmatmul.mubr.msk.f32.vlgmr.msra.gmra.mrb[8].mxu0 %vm424_vm6, %v945_v37 }
 0x914   :  { %v7151_v38 = vpop.eup %7150  ;;  %6206 = vmatpush3.xpose.msk.msra.mxu0 %vm424_vm6, %v1179_v36  ;;  %6207 = vmatprep.mubr.msk.f32.mxu0 %vm7418_vm5, %v7417_v15 }
 0x915   :  { %v944_v39 = vmul.f32 %v7151_v38, %v7147_v30  ;;  %6215 = vmatprep.subr.mxu0 %v7417_v15 }
 0x917   :  { %6193 = vmatmul.mubr.msk.f32.vlgmr.msra.gmra.mrb[10].mxu1 %vm424_vm6, %v944_v39  ;;  %6208 = vmatmul.mubr.msk.f32.vlgmr.msra.gmra.mrb[10].mxu0 %vm424_vm6, %v1177_v40 }
 0x918   :  { %6201 = vmatpush3.xpose.msk.msra.mxu1 %vm424_vm6, %v1101_v32  ;;  %6202 = vmatprep.mubr.msk.f32.mxu1 %vm7418_vm5, %v7417_v15 }
 0x919   :  { %6210 = vmatprep.subr.mxu1 %v7417_v15  ;;  %6217 = vmatprep.mubr.msk.f32.mxu0 %vm7418_vm5, %v7417_v15 }
 0x91b   :  { %6203 = vmatmul.mubr.msk.f32.vlgmr.msra.gmra.mrb[12].mxu1 %vm424_vm6, %v1099_v41 }
 0x91c   :  { %6212 = vmatprep.mubr.msk.f32.mxu1 %vm7418_vm5, %v7417_v15 }
 0x9e6   :  { %v7638_v42 = vpop.f32.mrb[8].mxu0 }
 0x9e7   :  { %v6199_v43 = vpop.f32.mrb[9].mxu0 }
 0x9ea   :  { %v7640_v44 = vpop.f32.mrb[10].mxu1  ;;  %v1250_v46 = vpop.f32.mrb[10].mxu0 }
 0x9eb   :  { %v1255_v47 = vmul.f32 0.35355338, %v1250_v46  ;;  %v6194_v48 = vpop.f32.mrb[11].mxu1  ;;  %v6209_v49 = vpop.f32.mrb[11].mxu0 }
 0x9ed   :  { %v1257_v50 = vadd.f32 %v1255_v47, %v7560_v16 }
 0x9ee   :  { %v1172_v51 = vpop.f32.mrb[12].mxu1 }
 0x9ef   :  { %v1254_v52 = vmul.f32 0.35355338, %v1172_v51  ;;  %v6204_v53 = vpop.f32.mrb[13].mxu1  ;;  %v1261_v54 = vsel %vm424_vm6, %v1257_v50, -inf }
 0x9f0   :  { %1262 = vmax.xlane.f32.xlu0 %v1261_v54 }
 0x9f1   :  { %v1256_v55 = vadd.f32 %v1254_v52, %v7557_v25 }
 0x9f3   :  { %v1258_v56 = vsel %vm424_vm6, %v1256_v55, -inf }
 0x9f4   :  { %1259 = vmax.xlane.f32.xlu1 %v1258_v56 }
 0xa05   :  { %1356 = vrot.lane.b32.xlu1 %v7530_v10, %s7427_s27 }
 0xa06   :  { %1280 = vrot.lane.b32.xlu0 %v7525_v9, %s7427_s27 }
 0xa09   :  { %1434 = vrot.lane.b32.xlu1 %v7525_v9, %s7428_s28 }
 0xa7d   :  { %v1263_v57 = vpop.xlane.xlu0 %1262 }
 0xa7e   :  { %v1265_v58 = vsub.f32 %v1257_v50, %v1263_v57 }
 0xa80   :  { %v1268_v60 = vmul.f32 1.442695, %v1265_v58 }
 0xa81   :  { %v1281_v62 = vpop.permute.xlu0 %1280  ;;  %v1260_v63 = vpop.xlane.xlu1 %1259 }
 0xa82   :  { %7152 = vpow2.f32 %v1268_v60  ;;  %v1264_v1 = vsub.f32 %v1256_v55, %v1260_v63  ;;  %6211 = vmatpush3.msra.mxu1 %v1281_v62 }
 0xa83   :  { %6220 = vmatprep.subr.mxu1 %v7417_v15 }
 0xa84   :  { %v1266_v2 = vmul.f32 1.442695, %v1264_v1  ;;  %v314_v1 = vld [vmem:[#allocation2 + $0xa8] sm:$0xff] }
 0xa85   :  { %v1357_v3 = vpop.permute.xlu1 %1356 }
 0xa86   :  { %7154 = vpow2.f32 %v1266_v2  ;;  %6216 = vmatpush3.msra.mxu0 %v1357_v3  ;;  %v315_v2 = vld [vmem:[#allocation2 + $0xb0] sm:$0xff] }
 0xa87   :  { %6225 = vmatprep.subr.mxu0 %v7417_v15  ;;  %v7700_v3 = vpack.c.bf16 %v315_v2, %v314_v1  ;;  %v7739_v1 = vld [vmem:[#allocation2 + $0xc1] ss:$0 sm:$0xff] }
 0xa89   :  { %v1435_v13 = vpop.permute.xlu1 %1434 }
 0xa8c   :  { %v7153_v7 = vpop.eup %7152 }
 0xa8d   :  { %v1273_v8 = vsel %vm424_vm6, %v7153_v7, 0.0 }
 0xa8e   :  { %1274 = vadd.xlane.f32.xlu1 %v1273_v8 }
 0xa90   :  { %v7155_v11 = vpop.eup %7154 }
 0xa91   :  { %v1270_v12 = vsel %vm424_vm6, %v7155_v11, 0.0 }
 0xa92   :  { %1271 = vadd.xlane.f32.xlu0 %v1270_v12 }
 0xa9f   :  { %1432 = vrot.lane.b32.xlu1 %v7525_v9, %s7429_s29 }
 0xaa8   :  { %1512 = vrot.lane.b32.xlu0 %v7530_v10, %s7428_s28 }
 0xaac   :  { %1510 = vrot.lane.b32.xlu0 %v7530_v10, %s7429_s29 }
 0xb1b   :  { %v1275_v14 = vpop.xlane.xlu1 %1274 }
 0xb1c   :  { %7156 = vrcp.f32 %v1275_v14 }
 0xb1f   :  { %v1272_v17 = vpop.xlane.xlu0 %1271  ;;  %v1433_v27 = vpop.permute.xlu1 %1432 }
 0xb20   :  { %7158 = vrcp.f32 %v1272_v17 }
 0xb23   :  { %v1513_v20 = vpop.permute.xlu0 %1512 }
 0xb26   :  { %v7157_v19 = vpop.eup %7156 }
 0xb27   :  { %v1279_v21 = vmul.f32 %v7157_v19, %v7153_v7  ;;  %v1511_v26 = vpop.permute.xlu0 %1510 }
 0xb29   :  { %6218 = vmatmul.mubr.msk.f32.vlgmr.msra.gmra.mrb[12].mxu0 %vm424_vm6, %v1279_v21 }
 0xb2a   :  { %v7159_v22 = vpop.eup %7158  ;;  %6226 = vmatpush3.xpose.msk.msra.mxu0 %vm424_vm6, %v1513_v20  ;;  %6227 = vmatprep.mubr.msk.f32.mxu0 %vm7418_vm5, %v7417_v15 }
 0xb2b   :  { %v1278_v24 = vmul.f32 %v7159_v22, %v7155_v11  ;;  %6235 = vmatprep.subr.mxu0 %v7417_v15 }
 0xb2d   :  { %6213 = vmatmul.mubr.msk.f32.vlgmr.msra.gmra.mrb[14].mxu1 %vm424_vm6, %v1278_v24  ;;  %6228 = vmatmul.mubr.msk.f32.vlgmr.msra.gmra.mrb[14].mxu0 %vm424_vm6, %v1511_v26 }
 0xb2e   :  { %6221 = vmatpush3.xpose.msk.msra.mxu1 %vm424_vm6, %v1435_v13  ;;  %6222 = vmatprep.mubr.msk.f32.mxu1 %vm7418_vm5, %v7417_v15 }
 0xb2f   :  { %6230 = vmatprep.subr.mxu1 %v7417_v15  ;;  %6237 = vmatprep.mubr.msk.f32.mxu0 %vm7418_vm5, %v7417_v15 }
 0xb31   :  { %6223 = vmatmul.mubr.msk.f32.vlgmr.msra.gmra.mrb[16].mxu1 %vm424_vm6, %v1433_v27 }
 0xb32   :  { %6232 = vmatprep.mubr.msk.f32.mxu1 %vm7418_vm5, %v7417_v15 }
 0xbfc   :  { %v1428_v28 = vpop.f32.mrb[12].mxu0 }
 0xbfd   :  { %v6219_v29 = vpop.f32.mrb[13].mxu0 }
 0xc00   :  { %v1352_v30 = vpop.f32.mrb[14].mxu1  ;;  %v1584_v31 = vpop.f32.mrb[14].mxu0 }
 0xc01   :  { %v1589_v32 = vmul.f32 0.35355338, %v1584_v31  ;;  %v6214_v33 = vpop.f32.mrb[15].mxu1  ;;  %v6229_v34 = vpop.f32.mrb[15].mxu0 }
 0xc03   :  { %v1591_v35 = vadd.f32 %v1589_v32, %v7560_v16 }
 0xc04   :  { %v1506_v36 = vpop.f32.mrb[16].mxu1 }
 0xc05   :  { %v1588_v37 = vmul.f32 0.35355338, %v1506_v36  ;;  %v6224_v38 = vpop.f32.mrb[17].mxu1  ;;  %v1595_v39 = vsel %vm424_vm6, %v1591_v35, -inf }
 0xc06   :  { %1596 = vmax.xlane.f32.xlu0 %v1595_v39 }
 0xc07   :  { %v1590_v40 = vadd.f32 %v1588_v37, %v7557_v25 }
 0xc09   :  { %v1592_v41 = vsel %vm424_vm6, %v1590_v40, -inf }
 0xc0a   :  { %1593 = vmax.xlane.f32.xlu1 %v1592_v41 }
 0xc93   :  { %v1597_v43 = vpop.xlane.xlu0 %1596 }
 0xc94   :  { %v1599_v46 = vsub.f32 %v1591_v35, %v1597_v43 }
 0xc96   :  { %v1602_v47 = vmul.f32 1.442695, %v1599_v46 }
 0xc97   :  { %v1594_v48 = vpop.xlane.xlu1 %1593 }
 0xc98   :  { %7160 = vpow2.f32 %v1602_v47  ;;  %v1598_v49 = vsub.f32 %v1590_v40, %v1594_v48 }
 0xc9a   :  { %v1600_v50 = vmul.f32 1.442695, %v1598_v49  ;;  %v320_v49 = vld [vmem:[#allocation2 + $0xd0] sm:$0xff] }
 0xc9c   :  { %7162 = vpow2.f32 %v1600_v50 }
 0xca2   :  { %v7161_v51 = vpop.eup %7160 }
 0xca3   :  { %v1607_v52 = vsel %vm424_vm6, %v7161_v51, 0.0 }
 0xca4   :  { %1608 = vadd.xlane.f32.xlu1 %v1607_v52  ;;  %v322_v52 = vld [vmem:[#allocation2 + $0xe0] sm:$0xff] }
 0xca6   :  { %v7163_v53 = vpop.eup %7162 }
 0xca7   :  { %v1604_v54 = vsel %vm424_vm6, %v7163_v53, 0.0 }
 0xca8   :  { %1605 = vadd.xlane.f32.xlu0 %v1604_v54 }
 0xcb5   :  { %1690 = vrot.lane.b32.xlu1 %v7530_v10, %s7430_s30 }
 0xcb9   :  { %1768 = vrot.lane.b32.xlu1 %v7640_v44, %s7412_s26 }
 0xcbd   :  { %1776 = vrot.lane.b32.xlu1 %v1352_v30, %s7431_s5 }
 0xcbe   :  { %1614 = vrot.lane.b32.xlu0 %v7525_v9, %s7430_s30  ;;  %v312_v9 = vld [vmem:[#allocation2 + $0x98] sm:$0xff] }
 0xcc2   :  { %1770 = vrot.lane.b32.xlu0 %v7638_v42, %s7412_s26  ;;  %v313_v42 = vld [vmem:[#allocation2 + $0xa0] sm:$0xff] }
 0xcc3   :  { %v7696_v63 = vpack.c.bf16 %v313_v42, %v312_v9 }
 0xcc6   :  { %1778 = vrot.lane.b32.xlu0 %v1428_v28, %s7431_s5 }
 0xd31   :  { %v1609_v55 = vpop.xlane.xlu1 %1608 }
 0xd32   :  { %7164 = vrcp.f32 %v1609_v55 }
 0xd35   :  { %v1606_v56 = vpop.xlane.xlu0 %1605  ;;  %v1691_v57 = vpop.permute.xlu1 %1690 }
 0xd36   :  { %7166 = vrcp.f32 %v1606_v56  ;;  %6236 = vmatpush3.msra.mxu0 %v1691_v57 }
 0xd39   :  { %v1615_v10 = vpop.permute.xlu0 %1614  ;;  %v1769_v14 = vpop.permute.xlu1 %1768 }
 0xd3a   :  { %6231 = vmatpush3.msra.mxu1 %v1615_v10  ;;  %v1790_v20 = vsel %vm424_vm6, %v7600_v61, %v1769_v14  ;;  %v7719_v61 = vld [vmem:[#allocation2 + $0xb8] ss:$0 sm:$0xff] }
 0xd3b   :  { %6477 = vmatprep.subr.bf16.mxu1 %v7696_v63 }
 0xd3c   :  { %v7165_v44 = vpop.eup %7164 }
 0xd3d   :  { %v1613_v58 = vmul.f32 %v7165_v44, %v7161_v51  ;;  %v1771_v13 = vpop.permute.xlu0 %1770  ;;  %v1777_v19 = vpop.permute.xlu1 %1776  ;;  %v321_v51 = vld [vmem:[#allocation2 + $0xd8] sm:$0xff] }
 0xd3e   :  { %v1791_v22 = vsel %vm424_vm6, %v7598_v59, %v1771_v13  ;;  %v1792_v24 = vsel %vm155_vm3, %v1790_v20, %v1777_v19  ;;  %v325_v13 = vld [vmem:[#allocation2 + $0xf8] sm:$0xff]  ;;  %v327_v19 = vld [vmem:[#allocation2 + $0x108] sm:$0xff] }
 0xd3f   :  { %6238 = vmatmul.mubr.msk.f32.vlgmr.msra.gmra.mrb[16].mxu0 %vm424_vm6, %v1613_v58 }
 0xd40   :  { %v7167_v60 = vpop.eup %7166 }
 0xd41   :  { %v1612_v62 = vmul.f32 %v7167_v60, %v7163_v53  ;;  %v1779_v17 = vpop.permute.xlu0 %1778  ;;  %v7732_v53 = vpack.c.bf16 %v322_v52, %v321_v51  ;;  %v7737_v60 = vld [vmem:[#allocation2 + $0xc0] ss:$0 sm:$0xff] }
 0xd42   :  { %v1793_v27 = vsel %vm155_vm3, %v1791_v22, %v1779_v17  ;;  %v326_v17 = vld [vmem:[#allocation2 + $0x100] sm:$0xff]  ;;  %v329_v22 = vld [vmem:[#allocation2 + $0x118] sm:$0xff] }
 0xd43   :  { %6233 = vmatmul.mubr.msk.f32.vlgmr.msra.gmra.mrb[18].mxu1 %vm424_vm6, %v1612_v62  ;;  %v7751_v20 = vpack.c.bf16 %v327_v19, %v326_v17 }
 0xd44   :  { %6479 = vmatpush3.bf16.msra.mxu1 %v7696_v63 }
 0xd45   :  { %6481 = vmatprep.subr.bf16.mxu1 %v7700_v3 }
 0xd48   :  { %6483 = vmatpush3.bf16.msra.mxu1 %v7700_v3 }
 0xd49   :  { %6302 = vmatprep.subr.mxu1 %v7417_v15 }
 0xe12   :  { %v1762_v7 = vpop.f32.mrb[16].mxu0 }
 0xe13   :  { %1786 = vrot.lane.b32.xlu0 %v1762_v7, %s7432_s6  ;;  %v6239_v8 = vpop.f32.mrb[17].mxu0 }
 0xe16   :  { %v1686_v11 = vpop.f32.mrb[18].mxu1 }
 0xe17   :  { %1784 = vrot.lane.b32.xlu1 %v1686_v11, %s7432_s6  ;;  %v6234_v12 = vpop.f32.mrb[19].mxu1 }
 0xe18   :  { %v324_v12 = vld [vmem:[#allocation2 + $0xf0] sm:$0xff] }
 0xe19   :  { %v7747_v14 = vpack.c.bf16 %v325_v13, %v324_v12 }
 0xe85   :  { %v1787_v21 = vpop.permute.xlu0 %1786 }
 0xe86   :  { %v1796_v29 = vsel %vm1794_vm7, %v1793_v27, %v1787_v21  ;;  %v328_v21 = vld [vmem:[#allocation2 + $0x110] sm:$0xff]  ;;  %v331_v27 = vld [vmem:[#allocation2 + $0x128] sm:$0xff] }
 0xe89   :  { %v1785_v26 = vpop.permute.xlu1 %1784 }
 0xe8a   :  { %v1795_v28 = vsel %vm1794_vm7, %v1792_v24, %v1785_v26  ;;  %v7755_v24 = vpack.c.bf16 %v329_v22, %v328_v21  ;;  %v330_v26 = vld [vmem:[#allocation2 + $0x120] sm:$0xff] }
 0xe8b   :  { %6248 = vmatprep.mubr.msk.f32.mxu1 %vm339_vm4, %v1795_v28  ;;  %v7759_v28 = vpack.c.bf16 %v331_v27, %v330_v26 }
 0xe8c   :  { %6249 = vmatmul.mubr.msk.f32.vlgmr.msra.gmra.mrb[20].mxu1 %vm339_vm4, %v1796_v29  ;;  %v7764_v29 = vld [vmem:[#allocation2 + $0xe8] ss:$0 sm:$0xff] }
 0xe8d   :  { %6304 = vmatprep.mubr.msk.f32.mxu1 %vm7418_vm5, %v7417_v15 }
 0xf5f   :  { %v6250_v30 = vpop.f32.mrb[20].mxu1 }
 0xf60   :  { %v1879_v59 = vadd.f32 %v6250_v30, %v7719_v61  ;;  %v1873_v31 = vpop.f32.mrb[21].mxu1 }
 0xf61   :  { %v1874_v32 = vadd.f32 %v7719_v61, %v1873_v31 }
 0xf62   :  { %v1883_v33 = vadd.f32 %v1879_v59, %v7512_v5 }
 0xf63   :  { %v1882_v34 = vadd.f32 %v1874_v32, %v7510_v4  ;;  %v319_v4 = vld [vmem:[#allocation2 + $0xc8] sm:$0xff] }
 0xf64   :  { %v1887_v35 = vsel %vm339_vm4, %v1883_v33, 0.0  ;;  %v7729_v50 = vpack.c.bf16 %v320_v49, %v319_v4 }
 0xf65   :  { %1888 = vadd.xlane.f32.xlu0 %v1887_v35  ;;  %v1884_v36 = vsel %vm339_vm4, %v1882_v34, 0.0 }
 0xf66   :  { %1885 = vadd.xlane.f32.xlu1 %v1884_v36  ;;  %6485 = vmatprep.subr.bf16.mxu0 %v7729_v50 }
 0xf67   :  { %6487 = vmatpush3.bf16.msra.mxu0 %v7729_v50 }
 0xf68   :  { %6489 = vmatprep.subr.bf16.mxu0 %v7732_v53 }
 0xf6b   :  { %6491 = vmatpush3.bf16.msra.mxu0 %v7732_v53 }
 0xf6c   :  { %6493 = vmatprep.subr.bf16.mxu0 %v7747_v14 }
 0xff2   :  { %v1889_v37 = vpop.xlane.xlu0 %1888 }
 0xff3   :  { %v1892_v38 = vmul.f32 0.03125, %v1889_v37  ;;  %v1886_v39 = vpop.xlane.xlu1 %1885 }
 0xff4   :  { %v1891_v40 = vmul.f32 0.03125, %v1886_v39 }
 0xff5   :  { %v1894_v41 = vsub.f32 %v1883_v33, %v1892_v38 }
 0xff6   :  { %v1893_v43 = vsub.f32 %v1882_v34, %v1891_v40 }
 0xff7   :  { %v1896_v46 = vmul.f32 %v1894_v41, %v1894_v41 }
 0xff8   :  { %v1895_v47 = vmul.f32 %v1893_v43, %v1893_v43 }
 0xff9   :  { %v1900_v48 = vsel %vm339_vm4, %v1896_v46, 0.0 }
 0xffa   :  { %1901 = vadd.xlane.f32.xlu1 %v1900_v48  ;;  %v1897_v5 = vsel %vm339_vm4, %v1895_v47, 0.0 }
 0xffb   :  { %1898 = vadd.xlane.f32.xlu0 %v1897_v5 }
0x1087   :  { %v1902_v54 = vpop.xlane.xlu1 %1901 }
0x1088   :  { %v1904_v55 = vmul.f32 0.03125, %v1902_v54  ;;  %v1899_v56 = vpop.xlane.xlu0 %1898  ;;  %v7774_v54 = vld [vmem:[#allocation2 + $0x130] ss:$0 sm:$0xff] }
0x1089   :  { %v1903_v57 = vmul.f32 0.03125, %v1899_v56 }
0x108a   :  { %v1906_v10 = vadd.f32 1e-12, %v1904_v55 }
0x108b   :  { %v1905_v44 = vadd.f32 1e-12, %v1903_v57 }
0x108c   :  { %7168 = vrsqrt.f32 %v1906_v10 }
0x108d   :  { %7170 = vrsqrt.f32 %v1905_v44 }
0x1096   :  { %v7169_v58 = vpop.eup %7168 }
0x1097   :  { %v7171_v62 = vpop.eup %7170  ;;  %v1910_v9 = vmul.f32 %v7169_v58, %v1894_v41 }
0x1098   :  { %v1909_v42 = vmul.f32 %v7171_v62, %v1893_v43 }
0x1099   :  { %v1916_v2 = vmul.f32 %v7737_v60, %v1910_v9 }
0x109a   :  { %v1915_v7 = vmul.f32 %v7737_v60, %v1909_v42 }
0x109b   :  { %v1922_v11 = vadd.f32 %v7739_v1, %v1916_v2 }
0x109c   :  { %v1921_v8 = vadd.f32 %v7739_v1, %v1915_v7 }
0x109e   :  { %6259 = vmatprep.mubr.msk.f32.mxu0 %vm339_vm4, %v1921_v8 }
0x109f   :  { %6260 = vmatmul.mubr.msk.f32.vlgmr.msra.gmra.mrb[18].mxu0 %vm339_vm4, %v1922_v11 }
0x10a0   :  { %6495 = vmatpush3.bf16.msra.mxu0 %v7747_v14 }
0x10a1   :  { %6497 = vmatprep.subr.bf16.mxu0 %v7751_v20 }
0x10a4   :  { %6499 = vmatpush3.bf16.msra.mxu0 %v7751_v20 }
0x10a5   :  { %6501 = vmatprep.subr.bf16.mxu0 %v7755_v24 }
0x10a8   :  { %6503 = vmatpush3.bf16.msra.mxu0 %v7755_v24 }
0x10a9   :  { %6505 = vmatprep.subr.bf16.mxu0 %v7759_v28 }
0x10ac   :  { %6507 = vmatpush3.bf16.msra.mxu0 %v7759_v28 }
0x10ad   :  { %6509 = vmatprep.subr.bf16.mxu0 %v7499_v45 }
0x1172   :  { %v6261_v30 = vpop.f32.mrb[18].mxu0 }
0x1173   :  { %v2005_v59 = vadd.f32 %v6261_v30, %v7764_v29  ;;  %v1999_v31 = vpop.f32.mrb[19].mxu0 }
0x1174   :  { %v2000_v32 = vadd.f32 %v7764_v29, %v1999_v31  ;;  %v5906_v31 = vld [vmem:[#allocation2 + $0x138] ss:$0 sm:$0xff] }
0x1175   :  { %v2009_v33 = vmul.f32 %v2005_v59, %v2005_v59 }
0x1176   :  { %v2008_v34 = vmul.f32 %v2000_v32, %v2000_v32 }
0x1177   :  { %v2011_v35 = vmul.f32 %v2009_v33, %v2005_v59 }
0x1178   :  { %v2010_v36 = vmul.f32 %v2008_v34, %v2000_v32 }
0x1179   :  { %v2013_v37 = vmul.f32 0.044715, %v2011_v35  ;;  %v5907_v35 = vld [vmem:[#allocation2 + $0x139] ss:$0 sm:$0xff] }
0x117a   :  { %v2012_v38 = vmul.f32 0.044715, %v2010_v36 }
0x117b   :  { %v2015_v39 = vadd.f32 %v2013_v37, %v2005_v59 }
0x117c   :  { %v2014_v40 = vadd.f32 %v2012_v38, %v2000_v32 }
0x117d   :  { %v2017_v41 = vmul.f32 0.7978846, %v2015_v39 }
0x117e   :  { %v2016_v43 = vmul.f32 0.7978846, %v2014_v40 }
0x117f   :  { %7172 = vtanh.f32 %v2017_v41 }
0x1180   :  { %7174 = vtanh.f32 %v2016_v43 }
0x1189   :  { %v7173_v46 = vpop.eup %7172 }
0x118a   :  { %v7175_v47 = vpop.eup %7174  ;;  %v2021_v48 = vadd.f32 1.0, %v7173_v46 }
0x118b   :  { %v2020_v5 = vadd.f32 1.0, %v7175_v47 }
0x118c   :  { %v2023_v4 = vmul.f32 0.5, %v2021_v48 }
0x118d   :  { %v2022_v49 = vmul.f32 0.5, %v2020_v5 }
0x118e   :  { %v2025_v52 = vmul.f32 %v2023_v4, %v2005_v59 }
0x118f   :  { %v2024_v51 = vmul.f32 %v2022_v49, %v2000_v32 }
0x1191   :  { %6278 = vmatprep.mubr.msk.f32.mxu0 %vm71_vm0, %v2024_v51 }
0x1192   :  { %6279 = vmatmul.mubr.msk.f32.vlgmr.msra.gmra.mrb[20].mxu0 %vm71_vm0, %v2025_v52 }
0x1193   :  { %6511 = vmatpush3.bf16.msra.mxu0 %v7499_v45 }
0x1194   :  { %6513 = vmatprep.subr.bf16.mxu0 %v7505_v0 }
0x1197   :  { %6515 = vmatpush3.bf16.msra.mxu0 %v7505_v0 }
0x1198   :  { %6292 = vmatprep.subr.mxu0 %v7417_v15 }
0x1265   :  { %v6280_v55 = vpop.f32.mrb[20].mxu0 }
0x1266   :  { %v2108_v56 = vadd.f32 %v6280_v55, %v7774_v54  ;;  %v2102_v57 = vpop.f32.mrb[21].mxu0 }
0x1267   :  { %v2103_v10 = vadd.f32 %v7774_v54, %v2102_v57 }
0x1268   :  { %v2112_v44 = vadd.f32 %v2108_v56, %v1922_v11 }
0x1269   :  { %v2111_v58 = vadd.f32 %v2103_v10, %v1921_v8 }
0x126a   :  { %v2116_v62 = vsel %vm339_vm4, %v2112_v44, 0.0 }
0x126b   :  { %2117 = vadd.xlane.f32.xlu1 %v2116_v62  ;;  %v2113_v45 = vsel %vm339_vm4, %v2111_v58, 0.0 }
0x126c   :  { %2114 = vadd.xlane.f32.xlu0 %v2113_v45 }
0x12f8   :  { %v2118_v9 = vpop.xlane.xlu1 %2117 }
0x12f9   :  { %v2120_v0 = vmul.f32 0.03125, %v2118_v9  ;;  %v2115_v42 = vpop.xlane.xlu0 %2114 }
0x12fa   :  { %v2119_v2 = vmul.f32 0.03125, %v2115_v42 }
0x12fb   :  { %v2122_v7 = vsub.f32 %v2112_v44, %v2120_v0 }
0x12fc   :  { %v2121_v12 = vsub.f32 %v2111_v58, %v2119_v2 }
0x12fd   :  { %v2124_v13 = vmul.f32 %v2122_v7, %v2122_v7 }
0x12fe   :  { %v2123_v17 = vmul.f32 %v2121_v12, %v2121_v12 }
0x12ff   :  { %v2128_v19 = vsel %vm339_vm4, %v2124_v13, 0.0 }
0x1300   :  { %2129 = vadd.xlane.f32.xlu1 %v2128_v19  ;;  %v2125_v11 = vsel %vm339_vm4, %v2123_v17, 0.0 }
0x1301   :  { %2126 = vadd.xlane.f32.xlu0 %v2125_v11 }
0x138d   :  { %v2130_v8 = vpop.xlane.xlu1 %2129 }
0x138e   :  { %v2132_v21 = vmul.f32 0.03125, %v2130_v8  ;;  %v2127_v22 = vpop.xlane.xlu0 %2126 }
0x138f   :  { %v2131_v26 = vmul.f32 0.03125, %v2127_v22 }
0x1390   :  { %v2134_v27 = vadd.f32 1e-12, %v2132_v21 }
0x1391   :  { %v2133_v30 = vadd.f32 1e-12, %v2131_v26 }
0x1392   :  { %7176 = vrsqrt.f32 %v2134_v27 }
0x1393   :  { %7178 = vrsqrt.f32 %v2133_v30 }
0x139c   :  { %v7177_v59 = vpop.eup %7176 }
0x139d   :  { %v7179_v32 = vpop.eup %7178  ;;  %v2138_v33 = vmul.f32 %v7177_v59, %v2122_v7 }
0x139e   :  { %v2137_v34 = vmul.f32 %v7179_v32, %v2121_v12 }
0x139f   :  { %v2144_v36 = vmul.f32 %v5906_v31, %v2138_v33 }
0x13a0   :  { %v2143_v37 = vmul.f32 %v5906_v31, %v2137_v34 }
0x13a1   :  { %v7784_v39 = vadd.f32 %v5907_v35, %v2144_v36 }
0x13a2   :  { %v7782_v38 = vadd.f32 %v5907_v35, %v2143_v37 }
0x13a4   :  { %6289 = vmatprep.mubr.msk.f32.mxu0 %vm339_vm4, %v7782_v38 }
0x13a5   :  { %6290 = vmatmul.mubr.msk.f32.vlgmr.msra.gmra.mrb[22].mxu0 %vm339_vm4, %v7784_v39 }
0x13a6   :  { %6294 = vmatprep.mubr.msk.f32.mxu0 %vm7418_vm5, %v7417_v15 }
0x1478   :  { %v6291_v40 = vpop.f32.mrb[22].mxu0 }
0x1479   :  { %v7793_v41 = vadd.f32 %v6291_v40, %v7522_v6  ;;  %v2223_v43 = vpop.f32.mrb[23].mxu0 }
0x147a   :  { %v7796_v46 = vadd.f32 %v7522_v6, %v2223_v43 }
0x147b   :  { %2310 = vrot.lane.b32.xlu1 %v7793_v41, %s7419_s0 }
0x147c   :  { %2233 = vrot.lane.b32.xlu0 %v7796_v46, %s7419_s0 }
0x14ed   :  { %v2311_v48 = vpop.permute.xlu1 %2310 }
0x14ee   :  { %v2234_v47 = vpop.permute.xlu0 %2233 }
0x14ef   :  { %6293 = vmatpush3.xpose.msk.msra.mxu0 %vm424_vm6, %v2234_v47 }
0x14f0   :  { %6297 = vmatprep.subr.mxu0 %v7417_v15 }
0x14f2   :  { %6295 = vmatmul.mubr.msk.f32.vlgmr.msra.gmra.mrb[24].mxu0 %vm424_vm6, %v7796_v46 }
0x14f3   :  { %6298 = vmatpush3.xpose.msk.msra.mxu0 %vm424_vm6, %v2311_v48  ;;  %6299 = vmatprep.mubr.msk.f32.mxu0 %vm7418_vm5, %v7417_v15 }
0x14f4   :  { %6307 = vmatprep.subr.mxu0 %v7417_v15 }
0x14f6   :  { %6300 = vmatmul.mubr.msk.f32.vlgmr.msra.gmra.mrb[26].mxu0 %vm424_vm6, %v7793_v41 }
0x14f7   :  { %6309 = vmatprep.mubr.msk.f32.mxu0 %vm7418_vm5, %v7417_v15 }
0x15c5   :  { %v2305_v6 = vpop.f32.mrb[24].mxu0 }
0x15c6   :  { %v2386_v5 = vmul.f32 0.35355338, %v2305_v6  ;;  %v6296_v4 = vpop.f32.mrb[25].mxu0 }
0x15c8   :  { %v2388_v49 = vadd.f32 %v2386_v5, %v7557_v25 }
0x15c9   :  { %v2382_v51 = vpop.f32.mrb[26].mxu0 }
0x15ca   :  { %v2387_v52 = vmul.f32 0.35355338, %v2382_v51  ;;  %v6301_v55 = vpop.f32.mrb[27].mxu0  ;;  %v2390_v56 = vsel %vm424_vm6, %v2388_v49, -inf }
0x15cb   :  { %2391 = vmax.xlane.f32.xlu1 %v2390_v56 }
0x15cc   :  { %v2389_v57 = vadd.f32 %v2387_v52, %v7560_v16 }
0x15ce   :  { %v2393_v10 = vsel %vm424_vm6, %v2389_v57, -inf }
0x15cf   :  { %2394 = vmax.xlane.f32.xlu0 %v2393_v10 }
0x15dc   :  { %2488 = vrot.lane.b32.xlu1 %v7793_v41, %s7421_s1 }
0x15e0   :  { %2566 = vrot.lane.b32.xlu1 %v7796_v46, %s7422_s21 }
0x15e5   :  { %2412 = vrot.lane.b32.xlu0 %v7796_v46, %s7421_s1 }
0x1658   :  { %v2392_v44 = vpop.xlane.xlu1 %2391 }
0x1659   :  { %v2396_v58 = vsub.f32 %v2388_v49, %v2392_v44 }
0x165b   :  { %v2398_v62 = vmul.f32 1.442695, %v2396_v58 }
0x165c   :  { %v2489_v45 = vpop.permute.xlu1 %2488  ;;  %v2395_v9 = vpop.xlane.xlu0 %2394 }
0x165d   :  { %7180 = vpow2.f32 %v2398_v62  ;;  %v2397_v0 = vsub.f32 %v2389_v57, %v2395_v9  ;;  %6308 = vmatpush3.msra.mxu0 %v2489_v45 }
0x165e   :  { %6317 = vmatprep.subr.mxu0 %v7417_v15 }
0x165f   :  { %v2400_v42 = vmul.f32 1.442695, %v2397_v0 }
0x1660   :  { %v2413_v2 = vpop.permute.xlu0 %2412  ;;  %v2567_v19 = vpop.permute.xlu1 %2566 }
0x1661   :  { %7182 = vpow2.f32 %v2400_v42  ;;  %6303 = vmatpush3.msra.mxu1 %v2413_v2 }
0x1662   :  { %6312 = vmatprep.subr.mxu1 %v7417_v15 }
0x1667   :  { %v7181_v7 = vpop.eup %7180 }
0x1668   :  { %v2402_v12 = vsel %vm424_vm6, %v7181_v7, 0.0 }
0x1669   :  { %2403 = vadd.xlane.f32.xlu0 %v2402_v12 }
0x166b   :  { %v7183_v13 = vpop.eup %7182 }
0x166c   :  { %v2405_v17 = vsel %vm424_vm6, %v7183_v13, 0.0 }
0x166d   :  { %2406 = vadd.xlane.f32.xlu1 %v2405_v17 }
0x167e   :  { %2564 = vrot.lane.b32.xlu1 %v7796_v46, %s7423_s22 }
0x167f   :  { %2644 = vrot.lane.b32.xlu0 %v7793_v41, %s7422_s21 }
0x1683   :  { %2642 = vrot.lane.b32.xlu0 %v7793_v41, %s7423_s22 }
0x16f6   :  { %v2404_v11 = vpop.xlane.xlu0 %2403 }
0x16f7   :  { %7184 = vrcp.f32 %v2404_v11 }
0x16fa   :  { %v2407_v8 = vpop.xlane.xlu1 %2406  ;;  %v2645_v27 = vpop.permute.xlu0 %2644 }
0x16fb   :  { %7186 = vrcp.f32 %v2407_v8 }
0x16fe   :  { %v2565_v59 = vpop.permute.xlu1 %2564  ;;  %v2643_v31 = vpop.permute.xlu0 %2642 }
0x1701   :  { %v7185_v21 = vpop.eup %7184 }
0x1702   :  { %v2410_v22 = vmul.f32 %v7185_v21, %v7181_v7 }
0x1704   :  { %6305 = vmatmul.mubr.msk.f32.vlgmr.msra.gmra.mrb[22].mxu1 %vm424_vm6, %v2410_v22 }
0x1705   :  { %v7187_v26 = vpop.eup %7186  ;;  %6313 = vmatpush3.xpose.msk.msra.mxu1 %vm424_vm6, %v2567_v19  ;;  %6314 = vmatprep.mubr.msk.f32.mxu1 %vm7418_vm5, %v7417_v15 }
0x1706   :  { %v2411_v30 = vmul.f32 %v7187_v26, %v7183_v13  ;;  %6322 = vmatprep.subr.mxu1 %v7417_v15 }
0x1708   :  { %6310 = vmatmul.mubr.msk.f32.vlgmr.msra.gmra.mrb[28].mxu0 %vm424_vm6, %v2411_v30  ;;  %6315 = vmatmul.mubr.msk.f32.vlgmr.msra.gmra.mrb[24].mxu1 %vm424_vm6, %v2565_v59 }
0x1709   :  { %6318 = vmatpush3.xpose.msk.msra.mxu0 %vm424_vm6, %v2645_v27  ;;  %6319 = vmatprep.mubr.msk.f32.mxu0 %vm7418_vm5, %v7417_v15 }
0x170a   :  { %6327 = vmatprep.subr.mxu0 %v7417_v15  ;;  %6324 = vmatprep.mubr.msk.f32.mxu1 %vm7418_vm5, %v7417_v15 }
0x170c   :  { %6320 = vmatmul.mubr.msk.f32.vlgmr.msra.gmra.mrb[30].mxu0 %vm424_vm6, %v2643_v31 }
0x170d   :  { %6329 = vmatprep.mubr.msk.f32.mxu0 %vm7418_vm5, %v7417_v15 }
0x17d7   :  { %v7850_v32 = vpop.f32.mrb[22].mxu1 }
0x17d8   :  { %v6306_v33 = vpop.f32.mrb[23].mxu1 }
0x17db   :  { %v7852_v34 = vpop.f32.mrb[28].mxu0  ;;  %v2638_v35 = vpop.f32.mrb[24].mxu1 }
0x17dc   :  { %v2720_v36 = vmul.f32 0.35355338, %v2638_v35  ;;  %v6311_v37 = vpop.f32.mrb[29].mxu0  ;;  %v6316_v40 = vpop.f32.mrb[25].mxu1 }
0x17de   :  { %v2722_v43 = vadd.f32 %v2720_v36, %v7557_v25 }
0x17df   :  { %v2716_v47 = vpop.f32.mrb[30].mxu0 }
0x17e0   :  { %v2721_v48 = vmul.f32 0.35355338, %v2716_v47  ;;  %v6321_v6 = vpop.f32.mrb[31].mxu0  ;;  %v2724_v5 = vsel %vm424_vm6, %v2722_v43, -inf }
0x17e1   :  { %2725 = vmax.xlane.f32.xlu1 %v2724_v5 }
0x17e2   :  { %v2723_v4 = vadd.f32 %v2721_v48, %v7560_v16 }
0x17e4   :  { %v2727_v49 = vsel %vm424_vm6, %v2723_v4, -inf }
0x17e5   :  { %2728 = vmax.xlane.f32.xlu0 %v2727_v49 }
0x17f2   :  { %2822 = vrot.lane.b32.xlu1 %v7793_v41, %s7424_s23 }
0x17f6   :  { %2900 = vrot.lane.b32.xlu1 %v7796_v46, %s7425_s24 }
0x17fb   :  { %2746 = vrot.lane.b32.xlu0 %v7796_v46, %s7424_s23 }
0x186e   :  { %v2726_v51 = vpop.xlane.xlu1 %2725 }
0x186f   :  { %v2730_v52 = vsub.f32 %v2722_v43, %v2726_v51 }
0x1871   :  { %v2732_v55 = vmul.f32 1.442695, %v2730_v52 }
0x1872   :  { %v2823_v56 = vpop.permute.xlu1 %2822  ;;  %v2729_v57 = vpop.xlane.xlu0 %2728 }
0x1873   :  { %7188 = vpow2.f32 %v2732_v55  ;;  %v2731_v10 = vsub.f32 %v2723_v4, %v2729_v57  ;;  %6328 = vmatpush3.msra.mxu0 %v2823_v56 }
0x1874   :  { %6337 = vmatprep.subr.mxu0 %v7417_v15 }
0x1875   :  { %v2734_v44 = vmul.f32 1.442695, %v2731_v10 }
0x1876   :  { %v2747_v58 = vpop.permute.xlu0 %2746  ;;  %v2901_v42 = vpop.permute.xlu1 %2900 }
0x1877   :  { %7190 = vpow2.f32 %v2734_v44  ;;  %6323 = vmatpush3.msra.mxu1 %v2747_v58 }
0x1878   :  { %6332 = vmatprep.subr.mxu1 %v7417_v15 }
0x187d   :  { %v7189_v62 = vpop.eup %7188 }
0x187e   :  { %v2736_v45 = vsel %vm424_vm6, %v7189_v62, 0.0 }
0x187f   :  { %2737 = vadd.xlane.f32.xlu0 %v2736_v45 }
0x1881   :  { %v7191_v9 = vpop.eup %7190 }
0x1882   :  { %v2739_v0 = vsel %vm424_vm6, %v7191_v9, 0.0 }
0x1883   :  { %2740 = vadd.xlane.f32.xlu1 %v2739_v0 }
0x1894   :  { %2898 = vrot.lane.b32.xlu1 %v7796_v46, %s7426_s25 }
0x1895   :  { %2978 = vrot.lane.b32.xlu0 %v7793_v41, %s7425_s24 }
0x1899   :  { %2976 = vrot.lane.b32.xlu0 %v7793_v41, %s7426_s25 }
0x190c   :  { %v2738_v2 = vpop.xlane.xlu0 %2737 }
0x190d   :  { %7192 = vrcp.f32 %v2738_v2 }
0x1910   :  { %v2741_v7 = vpop.xlane.xlu1 %2740  ;;  %v2979_v19 = vpop.permute.xlu0 %2978 }
0x1911   :  { %7194 = vrcp.f32 %v2741_v7 }
0x1914   :  { %v2899_v8 = vpop.permute.xlu1 %2898  ;;  %v2977_v21 = vpop.permute.xlu0 %2976 }
0x1917   :  { %v7193_v12 = vpop.eup %7192 }
0x1918   :  { %v2744_v13 = vmul.f32 %v7193_v12, %v7189_v62 }
0x191a   :  { %6325 = vmatmul.mubr.msk.f32.vlgmr.msra.gmra.mrb[26].mxu1 %vm424_vm6, %v2744_v13 }
0x191b   :  { %v7195_v17 = vpop.eup %7194  ;;  %6333 = vmatpush3.xpose.msk.msra.mxu1 %vm424_vm6, %v2901_v42  ;;  %6334 = vmatprep.mubr.msk.f32.mxu1 %vm7418_vm5, %v7417_v15 }
0x191c   :  { %v2745_v11 = vmul.f32 %v7195_v17, %v7191_v9  ;;  %6342 = vmatprep.subr.mxu1 %v7417_v15 }
0x191e   :  { %6330 = vmatmul.mubr.msk.f32.vlgmr.msra.gmra.mrb[32].mxu0 %vm424_vm6, %v2745_v11  ;;  %6335 = vmatmul.mubr.msk.f32.vlgmr.msra.gmra.mrb[28].mxu1 %vm424_vm6, %v2899_v8 }
0x191f   :  { %6338 = vmatpush3.xpose.msk.msra.mxu0 %vm424_vm6, %v2979_v19  ;;  %6339 = vmatprep.mubr.msk.f32.mxu0 %vm7418_vm5, %v7417_v15 }
0x1920   :  { %6347 = vmatprep.subr.mxu0 %v7417_v15  ;;  %6344 = vmatprep.mubr.msk.f32.mxu1 %vm7418_vm5, %v7417_v15 }
0x1922   :  { %6340 = vmatmul.mubr.msk.f32.vlgmr.msra.gmra.mrb[34].mxu0 %vm424_vm6, %v2977_v21 }
0x1923   :  { %6349 = vmatprep.mubr.msk.f32.mxu0 %vm7418_vm5, %v7417_v15 }
0x19ed   :  { %v7890_v22 = vpop.f32.mrb[26].mxu1 }
0x19ee   :  { %v6326_v26 = vpop.f32.mrb[27].mxu1 }
0x19f1   :  { %v7892_v27 = vpop.f32.mrb[32].mxu0  ;;  %v2972_v30 = vpop.f32.mrb[28].mxu1 }
0x19f2   :  { %v3054_v59 = vmul.f32 0.35355338, %v2972_v30  ;;  %v6331_v31 = vpop.f32.mrb[33].mxu0  ;;  %v6336_v33 = vpop.f32.mrb[29].mxu1 }
0x19f4   :  { %v3056_v35 = vadd.f32 %v3054_v59, %v7557_v25 }
0x19f5   :  { %v3050_v36 = vpop.f32.mrb[34].mxu0 }
0x19f6   :  { %v3055_v37 = vmul.f32 0.35355338, %v3050_v36  ;;  %v6341_v40 = vpop.f32.mrb[35].mxu0  ;;  %v3058_v43 = vsel %vm424_vm6, %v3056_v35, -inf }
0x19f7   :  { %3059 = vmax.xlane.f32.xlu1 %v3058_v43 }
0x19f8   :  { %v3057_v47 = vadd.f32 %v3055_v37, %v7560_v16 }
0x19fa   :  { %v3061_v48 = vsel %vm424_vm6, %v3057_v47, -inf }
0x19fb   :  { %3062 = vmax.xlane.f32.xlu0 %v3061_v48 }
0x1a08   :  { %3156 = vrot.lane.b32.xlu1 %v7793_v41, %s7427_s27 }
0x1a0c   :  { %3234 = vrot.lane.b32.xlu1 %v7796_v46, %s7428_s28 }
0x1a11   :  { %3080 = vrot.lane.b32.xlu0 %v7796_v46, %s7427_s27 }
0x1a84   :  { %v3060_v6 = vpop.xlane.xlu1 %3059 }
0x1a85   :  { %v3064_v5 = vsub.f32 %v3056_v35, %v3060_v6 }
0x1a87   :  { %v3066_v4 = vmul.f32 1.442695, %v3064_v5 }
0x1a88   :  { %v3157_v49 = vpop.permute.xlu1 %3156  ;;  %v3063_v51 = vpop.xlane.xlu0 %3062 }
0x1a89   :  { %7196 = vpow2.f32 %v3066_v4  ;;  %v3065_v52 = vsub.f32 %v3057_v47, %v3063_v51  ;;  %6348 = vmatpush3.msra.mxu0 %v3157_v49 }
0x1a8a   :  { %6357 = vmatprep.subr.mxu0 %v7417_v15 }
0x1a8b   :  { %v3068_v55 = vmul.f32 1.442695, %v3065_v52 }
0x1a8c   :  { %v3081_v56 = vpop.permute.xlu0 %3080  ;;  %v3235_v62 = vpop.permute.xlu1 %3234 }
0x1a8d   :  { %7198 = vpow2.f32 %v3068_v55  ;;  %6343 = vmatpush3.msra.mxu1 %v3081_v56 }
0x1a8e   :  { %6352 = vmatprep.subr.mxu1 %v7417_v15 }
0x1a93   :  { %v7197_v57 = vpop.eup %7196 }
0x1a94   :  { %v3070_v10 = vsel %vm424_vm6, %v7197_v57, 0.0 }
0x1a95   :  { %3071 = vadd.xlane.f32.xlu0 %v3070_v10 }
0x1a97   :  { %v7199_v44 = vpop.eup %7198 }
0x1a98   :  { %v3073_v58 = vsel %vm424_vm6, %v7199_v44, 0.0 }
0x1a99   :  { %3074 = vadd.xlane.f32.xlu1 %v3073_v58 }
0x1aaa   :  { %3232 = vrot.lane.b32.xlu1 %v7796_v46, %s7429_s29 }
0x1aab   :  { %3312 = vrot.lane.b32.xlu0 %v7793_v41, %s7428_s28 }
0x1aaf   :  { %3310 = vrot.lane.b32.xlu0 %v7793_v41, %s7429_s29 }
0x1b22   :  { %v3072_v45 = vpop.xlane.xlu0 %3071 }
0x1b23   :  { %7200 = vrcp.f32 %v3072_v45 }
0x1b26   :  { %v3075_v9 = vpop.xlane.xlu1 %3074  ;;  %v3313_v7 = vpop.permute.xlu0 %3312 }
0x1b27   :  { %7202 = vrcp.f32 %v3075_v9 }
0x1b2a   :  { %v3233_v13 = vpop.permute.xlu1 %3232  ;;  %v3311_v17 = vpop.permute.xlu0 %3310 }
0x1b2d   :  { %v7201_v0 = vpop.eup %7200 }
0x1b2e   :  { %v3078_v42 = vmul.f32 %v7201_v0, %v7197_v57 }
0x1b30   :  { %6345 = vmatmul.mubr.msk.f32.vlgmr.msra.gmra.mrb[30].mxu1 %vm424_vm6, %v3078_v42 }
0x1b31   :  { %v7203_v2 = vpop.eup %7202  ;;  %6353 = vmatpush3.xpose.msk.msra.mxu1 %vm424_vm6, %v3235_v62  ;;  %6354 = vmatprep.mubr.msk.f32.mxu1 %vm7418_vm5, %v7417_v15 }
0x1b32   :  { %v3079_v12 = vmul.f32 %v7203_v2, %v7199_v44  ;;  %6362 = vmatprep.subr.mxu1 %v7417_v15 }
0x1b34   :  { %6350 = vmatmul.mubr.msk.f32.vlgmr.msra.gmra.mrb[36].mxu0 %vm424_vm6, %v3079_v12  ;;  %6355 = vmatmul.mubr.msk.f32.vlgmr.msra.gmra.mrb[32].mxu1 %vm424_vm6, %v3233_v13 }
0x1b35   :  { %6358 = vmatpush3.xpose.msk.msra.mxu0 %vm424_vm6, %v3313_v7  ;;  %6359 = vmatprep.mubr.msk.f32.mxu0 %vm7418_vm5, %v7417_v15 }
0x1b36   :  { %6367 = vmatprep.subr.mxu0 %v7417_v15  ;;  %6364 = vmatprep.mubr.msk.f32.mxu1 %vm7418_vm5, %v7417_v15 }
0x1b38   :  { %6360 = vmatmul.mubr.msk.f32.vlgmr.msra.gmra.mrb[38].mxu0 %vm424_vm6, %v3311_v17 }
0x1b39   :  { %6369 = vmatprep.mubr.msk.f32.mxu0 %vm7418_vm5, %v7417_v15 }
0x1c03   :  { %v3152_v19 = vpop.f32.mrb[30].mxu1 }
0x1c04   :  { %v6346_v11 = vpop.f32.mrb[31].mxu1 }
0x1c07   :  { %v3228_v8 = vpop.f32.mrb[36].mxu0  ;;  %v3306_v21 = vpop.f32.mrb[32].mxu1 }
0x1c08   :  { %v3388_v26 = vmul.f32 0.35355338, %v3306_v21  ;;  %v6351_v30 = vpop.f32.mrb[37].mxu0  ;;  %v6356_v59 = vpop.f32.mrb[33].mxu1 }
0x1c0a   :  { %v3390_v31 = vadd.f32 %v3388_v26, %v7557_v25 }
0x1c0b   :  { %v3384_v33 = vpop.f32.mrb[38].mxu0 }
0x1c0c   :  { %v3389_v35 = vmul.f32 0.35355338, %v3384_v33  ;;  %v6361_v36 = vpop.f32.mrb[39].mxu0  ;;  %v3392_v37 = vsel %vm424_vm6, %v3390_v31, -inf }
0x1c0d   :  { %3393 = vmax.xlane.f32.xlu1 %v3392_v37 }
0x1c0e   :  { %v3391_v40 = vadd.f32 %v3389_v35, %v7560_v16 }
0x1c10   :  { %v3395_v43 = vsel %vm424_vm6, %v3391_v40, -inf }
0x1c11   :  { %3396 = vmax.xlane.f32.xlu0 %v3395_v43 }
0x1c9a   :  { %v3394_v47 = vpop.xlane.xlu1 %3393 }
0x1c9b   :  { %v3398_v48 = vsub.f32 %v3390_v31, %v3394_v47 }
0x1c9d   :  { %v3400_v6 = vmul.f32 1.442695, %v3398_v48 }
0x1c9e   :  { %v3397_v5 = vpop.xlane.xlu0 %3396 }
0x1c9f   :  { %7204 = vpow2.f32 %v3400_v6  ;;  %v3399_v4 = vsub.f32 %v3391_v40, %v3397_v5 }
0x1ca1   :  { %v3402_v49 = vmul.f32 1.442695, %v3399_v4 }
0x1ca3   :  { %7206 = vpow2.f32 %v3402_v49 }
0x1ca9   :  { %v7205_v25 = vpop.eup %7204 }
0x1caa   :  { %v3404_v51 = vsel %vm424_vm6, %v7205_v25, 0.0 }
0x1cab   :  { %3405 = vadd.xlane.f32.xlu0 %v3404_v51 }
0x1cad   :  { %v7207_v52 = vpop.eup %7206 }
0x1cae   :  { %v3407_v55 = vsel %vm424_vm6, %v7207_v52, 0.0 }
0x1caf   :  { %3408 = vadd.xlane.f32.xlu1 %v3407_v55 }
0x1cc0   :  { %3490 = vrot.lane.b32.xlu1 %v7793_v41, %s7430_s30 }
0x1cc1   :  { %3414 = vrot.lane.b32.xlu0 %v7796_v46, %s7430_s30 }
0x1cc4   :  { %3568 = vrot.lane.b32.xlu1 %v7890_v22, %s7412_s26 }
0x1cc5   :  { %3570 = vrot.lane.b32.xlu0 %v7892_v27, %s7412_s26 }
0x1cc8   :  { %3576 = vrot.lane.b32.xlu1 %v3152_v19, %s7431_s5 }
0x1cc9   :  { %3578 = vrot.lane.b32.xlu0 %v3228_v8, %s7431_s5 }
0x1d38   :  { %v3406_v16 = vpop.xlane.xlu0 %3405 }
0x1d39   :  { %7208 = vrcp.f32 %v3406_v16 }
0x1d3c   :  { %v3409_v56 = vpop.xlane.xlu1 %3408  ;;  %v3415_v57 = vpop.permute.xlu0 %3414 }
0x1d3d   :  { %7210 = vrcp.f32 %v3409_v56  ;;  %6363 = vmatpush3.msra.mxu1 %v3415_v57 }
0x1d3e   :  { %6517 = vmatprep.subr.bf16.mxu1 %v7696_v63 }
0x1d40   :  { %v3491_v41 = vpop.permute.xlu1 %3490  ;;  %v3571_v9 = vpop.permute.xlu0 %3570 }
0x1d41   :  { %6368 = vmatpush3.msra.mxu0 %v3491_v41  ;;  %v3591_v7 = vsel %vm424_vm6, %v7852_v34, %v3571_v9 }
0x1d42   :  { %6525 = vmatprep.subr.bf16.mxu0 %v7729_v50 }
0x1d43   :  { %v7209_v46 = vpop.eup %7208 }
0x1d44   :  { %v3412_v22 = vmul.f32 %v7209_v46, %v7205_v25  ;;  %v3569_v45 = vpop.permute.xlu1 %3568 }
0x1d46   :  { %6365 = vmatmul.mubr.msk.f32.vlgmr.msra.gmra.mrb[34].mxu1 %vm424_vm6, %v3412_v22 }
0x1d47   :  { %v7211_v27 = vpop.eup %7210  ;;  %6519 = vmatpush3.bf16.msra.mxu1 %v7696_v63 }
0x1d48   :  { %v3413_v10 = vmul.f32 %v7211_v27, %v7207_v52  ;;  %6521 = vmatprep.subr.bf16.mxu1 %v7700_v3  ;;  %v3577_v0 = vpop.permute.xlu1 %3576 }
0x1d4a   :  { %6370 = vmatmul.mubr.msk.f32.vlgmr.msra.gmra.mrb[40].mxu0 %vm424_vm6, %v3413_v10 }
0x1d4b   :  { %6523 = vmatpush3.bf16.msra.mxu1 %v7700_v3  ;;  %6527 = vmatpush3.bf16.msra.mxu0 %v7729_v50  ;;  %v3590_v3 = vsel %vm424_vm6, %v7850_v32, %v3569_v45  ;;  %v3579_v50 = vpop.permute.xlu0 %3578 }
0x1d4c   :  { %6529 = vmatprep.subr.bf16.mxu0 %v7732_v53  ;;  %6533 = vmatprep.subr.bf16.mxu1 %v7747_v14  ;;  %v3592_v42 = vsel %vm155_vm3, %v3590_v3, %v3577_v0  ;;  %v3593_v12 = vsel %vm155_vm3, %v3591_v7, %v3579_v50 }
0x1d4f   :  { %6531 = vmatpush3.bf16.msra.mxu0 %v7732_v53 }
0x1e19   :  { %v3486_v44 = vpop.f32.mrb[34].mxu1 }
0x1e1a   :  { %3584 = vrot.lane.b32.xlu1 %v3486_v44, %s7432_s6  ;;  %v6366_v58 = vpop.f32.mrb[35].mxu1 }
0x1e1d   :  { %v3562_v63 = vpop.f32.mrb[40].mxu0 }
0x1e1e   :  { %3586 = vrot.lane.b32.xlu0 %v3562_v63, %s7432_s6  ;;  %v6371_v62 = vpop.f32.mrb[41].mxu0 }
0x1e8c   :  { %v3585_v2 = vpop.permute.xlu1 %3584 }
0x1e8d   :  { %v3594_v53 = vsel %vm1794_vm7, %v3592_v42, %v3585_v2 }
0x1e8e   :  { %6380 = vmatprep.mubr.msk.f32.mxu1 %vm339_vm4, %v3594_v53 }
0x1e90   :  { %v3587_v13 = vpop.permute.xlu0 %3586 }
0x1e91   :  { %v3595_v17 = vsel %vm1794_vm7, %v3593_v12, %v3587_v13 }
0x1e92   :  { %6381 = vmatmul.mubr.msk.f32.vlgmr.msra.gmra.mrb[36].mxu1 %vm339_vm4, %v3595_v17 }
0x1e93   :  { %6535 = vmatpush3.bf16.msra.mxu1 %v7747_v14 }
0x1e94   :  { %6537 = vmatprep.subr.bf16.mxu1 %v7751_v20 }
0x1e97   :  { %6539 = vmatpush3.bf16.msra.mxu1 %v7751_v20 }
0x1e98   :  { %6541 = vmatprep.subr.bf16.mxu1 %v7755_v24 }
0x1e9b   :  { %6543 = vmatpush3.bf16.msra.mxu1 %v7755_v24 }
0x1e9c   :  { %6545 = vmatprep.subr.bf16.mxu1 %v7759_v28 }
0x1e9f   :  { %6547 = vmatpush3.bf16.msra.mxu1 %v7759_v28 }
0x1f65   :  { %v6382_v32 = vpop.f32.mrb[36].mxu1 }
0x1f66   :  { %v3674_v34 = vadd.f32 %v6382_v32, %v7719_v61  ;;  %v3668_v19 = vpop.f32.mrb[37].mxu1 }
0x1f67   :  { %v3669_v11 = vadd.f32 %v7719_v61, %v3668_v19  ;;  %v4166_v19 = vld [vmem:[#allocation4 + $0x88] sm:$0xff] }
0x1f68   :  { %v3678_v14 = vadd.f32 %v3674_v34, %v7784_v39 }
0x1f69   :  { %v3677_v8 = vadd.f32 %v3669_v11, %v7782_v38  ;;  %v4170_v11 = vld [vmem:[#allocation4 + $0xa8] sm:$0xff] }
0x1f6a   :  { %v3682_v20 = vsel %vm339_vm4, %v3678_v14, 0.0 }
0x1f6b   :  { %3683 = vadd.xlane.f32.xlu0 %v3682_v20  ;;  %v3679_v21 = vsel %vm339_vm4, %v3677_v8, 0.0  ;;  %v4169_v20 = vld [vmem:[#allocation4 + $0xa0] sm:$0xff] }
0x1f6c   :  { %3680 = vadd.xlane.f32.xlu1 %v3679_v21 }
0x1ff8   :  { %v3684_v24 = vpop.xlane.xlu0 %3683 }
0x1ff9   :  { %v3686_v26 = vmul.f32 0.03125, %v3684_v24  ;;  %v3681_v30 = vpop.xlane.xlu1 %3680 }
0x1ffa   :  { %v3685_v28 = vmul.f32 0.03125, %v3681_v30 }
0x1ffb   :  { %v3688_v59 = vsub.f32 %v3678_v14, %v3686_v26  ;;  %v4165_v14 = vld [vmem:[#allocation4 + $0x80] sm:$0xff] }
0x1ffc   :  { %v3687_v31 = vsub.f32 %v3677_v8, %v3685_v28  ;;  %v8000_v8 = vpack.c.bf16 %v4170_v11, %v4166_v19  ;;  %v8002_v21 = vpack.c.bf16 %v4169_v20, %v4165_v14  ;;  %v3974_v19 = vld [vmem:[#allocation4 + $0x40] sm:$0xff]  ;;  %v4222_v14 = vld [vmem:[#allocation4 + $0x248] sm:$0xff] }
0x1ffd   :  { %v3690_v33 = vmul.f32 %v3688_v59, %v3688_v59  ;;  %v3978_v11 = vld [vmem:[#allocation4 + $0x60] sm:$0xff] }
0x1ffe   :  { %v3689_v35 = vmul.f32 %v3687_v31, %v3687_v31  ;;  %6565 = vmatprep.subr.bf16.mxu1 %v8000_v8  ;;  %v6554_v20 = vpack.c.bf16 %v3978_v11, %v3974_v19 }
0x1fff   :  { %v3694_v61 = vsel %vm339_vm4, %v3690_v33, 0.0 }
0x2000   :  { %3695 = vadd.xlane.f32.xlu1 %v3694_v61  ;;  %v3691_v39 = vsel %vm339_vm4, %v3689_v35, 0.0 }
0x2001   :  { %3692 = vadd.xlane.f32.xlu0 %v3691_v39  ;;  %v4174_v39 = vld [vmem:[#allocation4 + $0xc8] sm:$0xff] }
0x208d   :  { %v3696_v38 = vpop.xlane.xlu1 %3695 }
0x208e   :  { %v3698_v36 = vmul.f32 0.03125, %v3696_v38  ;;  %v3693_v37 = vpop.xlane.xlu0 %3692  ;;  %v4178_v38 = vld [vmem:[#allocation4 + $0xe8] sm:$0xff] }
0x208f   :  { %v3697_v40 = vmul.f32 0.03125, %v3693_v37  ;;  %v4173_v37 = vld [vmem:[#allocation4 + $0xc0] sm:$0xff] }
0x2090   :  { %v3700_v43 = vadd.f32 1e-12, %v3698_v36  ;;  %v8016_v36 = vpack.c.bf16 %v4178_v38, %v4174_v39 }
0x2091   :  { %v3699_v47 = vadd.f32 1e-12, %v3697_v40  ;;  %v4177_v40 = vld [vmem:[#allocation4 + $0xe0] sm:$0xff] }
0x2092   :  { %7212 = vrsqrt.f32 %v3700_v43  ;;  %v8018_v43 = vpack.c.bf16 %v4177_v40, %v4173_v37 }
0x2093   :  { %7214 = vrsqrt.f32 %v3699_v47  ;;  %v4182_v47 = vld [vmem:[#allocation4 + $0x108] sm:$0xff] }
0x209c   :  { %v7213_v48 = vpop.eup %7212 }
0x209d   :  { %v7215_v6 = vpop.eup %7214  ;;  %v3704_v5 = vmul.f32 %v7213_v48, %v3688_v59  ;;  %v4186_v48 = vld [vmem:[#allocation4 + $0x128] sm:$0xff] }
0x209e   :  { %v3703_v4 = vmul.f32 %v7215_v6, %v3687_v31  ;;  %v8022_v6 = vpack.c.bf16 %v4186_v48, %v4182_v47 }
0x209f   :  { %v3706_v49 = vmul.f32 %v7737_v60, %v3704_v5  ;;  %v4181_v5 = vld [vmem:[#allocation4 + $0x100] sm:$0xff] }
0x20a0   :  { %v3705_v25 = vmul.f32 %v7737_v60, %v3703_v4  ;;  %v4185_v4 = vld [vmem:[#allocation4 + $0x120] sm:$0xff] }
0x20a1   :  { %v3708_v52 = vadd.f32 %v7739_v1, %v3706_v49  ;;  %v8024_v49 = vpack.c.bf16 %v4185_v4, %v4181_v5 }
0x20a2   :  { %v3707_v51 = vadd.f32 %v7739_v1, %v3705_v25  ;;  %v4190_v25 = vld [vmem:[#allocation4 + $0x148] sm:$0xff] }
0x20a4   :  { %6391 = vmatprep.mubr.msk.f32.mxu0 %vm339_vm4, %v3707_v51 }
0x20a5   :  { %6392 = vmatmul.mubr.msk.f32.vlgmr.msra.gmra.mrb[42].mxu0 %vm339_vm4, %v3708_v52 }
0x20a6   :  { %4075 = vmatprep.mubr.f32.mxu0 %v7417_v15 }
0x2178   :  { %v6393_v55 = vpop.f32.mrb[42].mxu0 }
0x2179   :  { %v3787_v16 = vadd.f32 %v6393_v55, %v7764_v29  ;;  %v3781_v56 = vpop.f32.mrb[43].mxu0  ;;  %v4189_v55 = vld [vmem:[#allocation4 + $0x140] sm:$0xff] }
0x217a   :  { %v3782_v57 = vadd.f32 %v7764_v29, %v3781_v56 }
0x217b   :  { %v3791_v41 = vmul.f32 %v3787_v16, %v3787_v16 }
0x217c   :  { %v3790_v46 = vmul.f32 %v3782_v57, %v3782_v57 }
0x217d   :  { %v3793_v22 = vmul.f32 %v3791_v41, %v3787_v16  ;;  %v4202_v41 = vld [vmem:[#allocation4 + $0x1a8] sm:$0xff] }
0x217e   :  { %v3792_v60 = vmul.f32 %v3790_v46, %v3782_v57 }
0x217f   :  { %v3795_v27 = vmul.f32 0.044715, %v3793_v22  ;;  %v4197_v22 = vld [vmem:[#allocation4 + $0x180] sm:$0xff] }
0x2180   :  { %v3794_v10 = vmul.f32 0.044715, %v3792_v60  ;;  %v4201_v60 = vld [vmem:[#allocation4 + $0x1a0] sm:$0xff] }
0x2181   :  { %v3797_v44 = vadd.f32 %v3795_v27, %v3787_v16  ;;  %v8036_v27 = vpack.c.bf16 %v4201_v60, %v4197_v22  ;;  %v7361_v60 = vld [vmem:[#allocation2 + $0x139] ss:$0 sm:$0xff] }
0x2182   :  { %v3796_v1 = vadd.f32 %v3794_v10, %v3782_v57  ;;  %v4206_v10 = vld [vmem:[#allocation4 + $0x1c8] sm:$0xff] }
0x2183   :  { %v3799_v58 = vmul.f32 0.7978846, %v3797_v44  ;;  %v4210_v44 = vld [vmem:[#allocation4 + $0x1e8] sm:$0xff] }
0x2184   :  { %v3798_v63 = vmul.f32 0.7978846, %v3796_v1  ;;  %v8040_v1 = vpack.c.bf16 %v4210_v44, %v4206_v10 }
0x2185   :  { %7216 = vtanh.f32 %v3799_v58  ;;  %v3967_v58 = vld [vmem:[#allocation4 + $0x8] sm:$0xff] }
0x2186   :  { %7218 = vtanh.f32 %v3798_v63  ;;  %v3971_v63 = vld [vmem:[#allocation4 + $0x28] sm:$0xff] }
0x218f   :  { %v7217_v62 = vpop.eup %7216 }
0x2190   :  { %v7219_v45 = vpop.eup %7218  ;;  %v3803_v9 = vadd.f32 1.0, %v7217_v62  ;;  %v4205_v62 = vld [vmem:[#allocation4 + $0x1c0] sm:$0xff] }
0x2191   :  { %v3802_v0 = vadd.f32 1.0, %v7219_v45  ;;  %v6548_v45 = vpack.c.bf16 %v3971_v63, %v3967_v58 }
0x2192   :  { %v3805_v3 = vmul.f32 0.5, %v3803_v9  ;;  %v4209_v9 = vld [vmem:[#allocation4 + $0x1e0] sm:$0xff] }
0x2193   :  { %v3804_v50 = vmul.f32 0.5, %v3802_v0  ;;  %v3966_v0 = vld [vmem:[#allocation4] sm:$0xff]  ;;  %6549 = vmatprep.subr.bf16.mxu0 %v6548_v45  ;;  %v3977_v45 = vld [vmem:[#allocation4 + $0x58] sm:$0xff] }
0x2194   :  { %v3807_v29 = vmul.f32 %v3805_v3, %v3787_v16  ;;  %v4193_v16 = vld [vmem:[#allocation4 + $0x160] sm:$0xff] }
0x2195   :  { %v3806_v42 = vmul.f32 %v3804_v50, %v3782_v57  ;;  %v8030_v56 = vpack.c.bf16 %v4193_v16, %v4189_v55  ;;  %v4198_v57 = vld [vmem:[#allocation4 + $0x188] sm:$0xff]  ;;  %v3970_v3 = vld [vmem:[#allocation4 + $0x20] sm:$0xff]  ;;  %v8043_v50 = vpack.c.bf16 %v4209_v9, %v4205_v62  ;;  %v3981_v9 = vld [vmem:[#allocation4 + $0x78] sm:$0xff] }
0x2196   :  { %v8034_v46 = vpack.c.bf16 %v4202_v41, %v4198_v57  ;;  %v7360_v55 = vld [vmem:[#allocation2 + $0x138] ss:$0 sm:$0xff]  ;;  %v3968_v57 = vld [vmem:[#allocation4 + $0x10] sm:$0xff]  ;;  %v6560_v19 = vpack.c.bf16 %v3981_v9, %v3977_v45 }
0x2197   :  { %6410 = vmatprep.mubr.msk.f32.mxu1 %vm71_vm0, %v3806_v42  ;;  %v6550_v42 = vpack.c.bf16 %v3970_v3, %v3966_v0  ;;  %v3972_v41 = vld [vmem:[#allocation4 + $0x30] sm:$0xff] }
0x2198   :  { %6411 = vmatmul.mubr.msk.f32.vlgmr.msra.gmra.mrb[38].mxu1 %vm71_vm0, %v3807_v29  ;;  %v4214_v29 = vld [vmem:[#allocation4 + $0x208] sm:$0xff]  ;;  %v6558_v58 = vpack.c.bf16 %v3972_v41, %v3968_v57  ;;  %v4176_v41 = vld [vmem:[#allocation4 + $0xd8] sm:$0xff]  ;;  %v4183_v45 = vld [vmem:[#allocation4 + $0x110] sm:$0xff] }
0x2199   :  { %4293 = vmatprep.mubr.f32.mxu1 %v7417_v15  ;;  %6567 = vmatpush1.bf16.msra.mxu1 %v8002_v21  ;;  %v4187_v9 = vld [vmem:[#allocation4 + $0x130] sm:$0xff] }
0x219a   :  { %6569 = vmatprep.subr.bf16.mxu1 %v8016_v36  ;;  %6551 = vmatpush1.bf16.msra.mxu0 %v6550_v42 }
0x219d   :  { %6571 = vmatpush1.bf16.msra.mxu1 %v8018_v43 }
0x219e   :  { %6573 = vmatprep.subr.bf16.mxu1 %v8022_v6 }
0x21a1   :  { %6575 = vmatpush1.bf16.msra.mxu1 %v8024_v49 }
0x226b   :  { %v6412_v2 = vpop.f32.mrb[38].mxu1 }
0x226c   :  { %v3886_v53 = vadd.f32 %v6412_v2, %v7774_v54  ;;  %v3880_v7 = vpop.f32.mrb[39].mxu1  ;;  %v4218_v2 = vld [vmem:[#allocation4 + $0x228] sm:$0xff] }
0x226d   :  { %v3881_v12 = vadd.f32 %v7774_v54, %v3880_v7  ;;  %v8046_v7 = vpack.c.bf16 %v4218_v2, %v4214_v29 }
0x226e   :  { %v3890_v13 = vadd.f32 %v3886_v53, %v3708_v52  ;;  %v3975_v53 = vld [vmem:[#allocation4 + $0x48] sm:$0xff] }
0x226f   :  { %v3889_v17 = vadd.f32 %v3881_v12, %v3707_v51  ;;  %v4194_v51 = vld [vmem:[#allocation4 + $0x168] sm:$0xff] }
0x2270   :  { %v3894_v32 = vsel %vm339_vm4, %v3890_v13, 0.0  ;;  %v8028_v52 = vpack.c.bf16 %v4194_v51, %v4190_v25  ;;  %v3979_v12 = vld [vmem:[#allocation4 + $0x68] sm:$0xff] }
0x2271   :  { %3895 = vadd.xlane.f32.xlu1 %v3894_v32  ;;  %v3891_v34 = vsel %vm339_vm4, %v3889_v17, 0.0  ;;  %v6552_v32 = vpack.c.bf16 %v3979_v12, %v3975_v53 }
0x2272   :  { %3892 = vadd.xlane.f32.xlu0 %v3891_v34  ;;  %6577 = vmatprep.subr.bf16.mxu1 %v8028_v52 }
0x2273   :  { %6579 = vmatpush1.bf16.msra.mxu1 %v8030_v56  ;;  %6553 = vmatprep.subr.bf16.mxu0 %v6552_v32 }
0x2274   :  { %6581 = vmatprep.subr.bf16.mxu1 %v8034_v46  ;;  %6555 = vmatpush1.bf16.msra.mxu0 %v6554_v20 }
0x2277   :  { %6583 = vmatpush1.bf16.msra.mxu1 %v8036_v27 }
0x2278   :  { %6585 = vmatprep.subr.bf16.mxu1 %v8040_v1 }
0x227b   :  { %6587 = vmatpush1.bf16.msra.mxu1 %v8043_v50 }
0x227c   :  { %6589 = vmatprep.subr.bf16.mxu1 %v8046_v7 }
0x22fe   :  { %v3896_v54 = vpop.xlane.xlu1 %3895 }
0x22ff   :  { %v3898_v24 = vmul.f32 0.03125, %v3896_v54  ;;  %v3893_v26 = vpop.xlane.xlu0 %3892  ;;  %v4226_v54 = vld [vmem:[#allocation4 + $0x268] sm:$0xff] }
0x2300   :  { %v3897_v30 = vmul.f32 0.03125, %v3893_v26  ;;  %v3973_v26 = vld [vmem:[#allocation4 + $0x38] sm:$0xff] }
0x2301   :  { %v8006_v28 = vsub.f32 %v3890_v13, %v3898_v24  ;;  %v4213_v13 = vld [vmem:[#allocation4 + $0x200] sm:$0xff]  ;;  %v3969_v24 = vld [vmem:[#allocation4 + $0x18] sm:$0xff] }
0x2302   :  { %v8008_v59 = vsub.f32 %v3889_v17, %v3897_v30  ;;  %v4217_v17 = vld [vmem:[#allocation4 + $0x220] sm:$0xff]  ;;  %v8051_v30 = vpack.c.bf16 %v4226_v54, %v4222_v14 }
0x2303   :  { %v3902_v31 = vmul.f32 %v8006_v28, %v8006_v28  ;;  %v8048_v34 = vpack.c.bf16 %v4217_v17, %v4213_v13 }
0x2304   :  { %v3901_v33 = vmul.f32 %v8008_v59, %v8008_v59 }
0x2305   :  { %v3906_v35 = vsel %vm339_vm4, %v3902_v31, 0.0  ;;  %v6556_v31 = vpack.c.bf16 %v3973_v26, %v3969_v24  ;;  %6591 = vmatpush1.bf16.msra.mxu1 %v8048_v34 }
0x2306   :  { %3907 = vadd.xlane.f32.xlu1 %v3906_v35  ;;  %v3903_v61 = vsel %vm339_vm4, %v3901_v33, 0.0  ;;  %v4221_v33 = vld [vmem:[#allocation4 + $0x240] sm:$0xff]  ;;  %6593 = vmatprep.subr.bf16.mxu1 %v8051_v30 }
0x2307   :  { %3904 = vadd.xlane.f32.xlu0 %v3903_v61  ;;  %v4225_v35 = vld [vmem:[#allocation4 + $0x260] sm:$0xff]  ;;  %6557 = vmatprep.subr.bf16.mxu0 %v6556_v31 }
0x2308   :  { %v8054_v61 = vpack.c.bf16 %v4225_v35, %v4221_v33 }
0x230a   :  { %6595 = vmatpush1.bf16.msra.mxu1 %v8054_v61 }
0x230b   :  { %6629 = vmatprep.subr.bf16.mxu1 %v8000_v8 }
0x230d   :  { %4294 = vmatmul.mubr.f32.vlgmr.msra.gmra.mrb[40].mxu1 %v7417_v15 }
0x230e   :  { %6631 = vmatpush1.bf16.msra.mxu1 %v8002_v21  ;;  %4463 = vmatprep.mubr.f32.mxu1 %v7417_v15 }
0x230f   :  { %6633 = vmatprep.subr.bf16.mxu1 %v8016_v36 }
0x2312   :  { %6635 = vmatpush1.bf16.msra.mxu1 %v8018_v43 }
0x2313   :  { %6637 = vmatprep.subr.bf16.mxu1 %v8022_v6 }
0x2316   :  { %6639 = vmatpush1.bf16.msra.mxu1 %v8024_v49 }
0x2317   :  { %6641 = vmatprep.subr.bf16.mxu1 %v8028_v52 }
0x231a   :  { %6643 = vmatpush1.bf16.msra.mxu1 %v8030_v56 }
0x231b   :  { %6645 = vmatprep.subr.bf16.mxu1 %v8034_v46 }
0x231e   :  { %6647 = vmatpush1.bf16.msra.mxu1 %v8036_v27 }
0x231f   :  { %6649 = vmatprep.subr.bf16.mxu1 %v8040_v1 }
0x2322   :  { %6651 = vmatpush1.bf16.msra.mxu1 %v8043_v50 }
0x2323   :  { %6653 = vmatprep.subr.bf16.mxu1 %v8046_v7 }
0x2326   :  { %6655 = vmatpush1.bf16.msra.mxu1 %v8048_v34 }
0x2327   :  { %6657 = vmatprep.subr.bf16.mxu1 %v8051_v30 }
0x232a   :  { %6659 = vmatpush1.bf16.msra.mxu1 %v8054_v61 }
0x232b   :  { %6693 = vmatprep.subr.bf16.mxu1 %v8000_v8 }
0x2393   :  { %v3908_v39 = vpop.xlane.xlu1 %3907 }
0x2394   :  { %v3910_v38 = vmul.f32 0.03125, %v3908_v39  ;;  %v3905_v37 = vpop.xlane.xlu0 %3904  ;;  %v3976_v39 = vld [vmem:[#allocation4 + $0x50] sm:$0xff] }
0x2395   :  { %v3909_v40 = vmul.f32 0.03125, %v3905_v37 }
0x2396   :  { %v3912_v47 = vadd.f32 1e-12, %v3910_v38  ;;  %v3980_v38 = vld [vmem:[#allocation4 + $0x70] sm:$0xff] }
0x2397   :  { %v3911_v48 = vadd.f32 1e-12, %v3909_v40 }
0x2398   :  { %7220 = vrsqrt.f32 %v3912_v47  ;;  %v4168_v47 = vld [vmem:[#allocation4 + $0x98] sm:$0xff] }
0x2399   :  { %7222 = vrsqrt.f32 %v3911_v48  ;;  %v4172_v48 = vld [vmem:[#allocation4 + $0xb8] sm:$0xff] }
0x23a2   :  { %v7221_v5 = vpop.eup %7220 }
0x23a3   :  { %v7223_v4 = vpop.eup %7222  ;;  %v3916_v25 = vmul.f32 %v7221_v5, %v8006_v28 }
0x23a4   :  { %v3915_v51 = vmul.f32 %v7223_v4, %v8008_v59  ;;  %v6562_v4 = vpack.c.bf16 %v3980_v38, %v3976_v39 }
0x23a5   :  { %v3918_v16 = vmul.f32 %v7360_v55, %v3916_v25 }
0x23a6   :  { %v3917_v22 = vmul.f32 %v7360_v55, %v3915_v51  ;;  %v8094_v51 = vpack.c.bf16 %v4172_v48, %v4168_v47  ;;  %v4167_v55 = vld [vmem:[#allocation4 + $0x90] sm:$0xff]  ;;  %v4224_v47 = vld [vmem:[#allocation4 + $0x258] sm:$0xff] }
0x23a7   :  { %v3920_v10 = vadd.f32 %v7361_v60, %v3918_v16  ;;  %v4171_v16 = vld [vmem:[#allocation4 + $0xb0] sm:$0xff]  ;;  %v4228_v48 = vld [vmem:[#allocation4 + $0x278] sm:$0xff] }
0x23a8   :  { %v3919_v44 = vadd.f32 %v7361_v60, %v3917_v22  ;;  %v4180_v22 = vld [vmem:[#allocation4 + $0xf8] sm:$0xff]  ;;  %v8099_v60 = vpack.c.bf16 %v4171_v16, %v4167_v55  ;;  %v4227_v55 = vld [vmem:[#allocation4 + $0x270] sm:$0xff] }
0x23a9   :  { %v3923_v63 = vrot.slane %v3920_v10, 7  ;;  %v3928_v28 = vrot.slane %v3920_v10, 6  ;;  %v3933_v62 = vrot.slane %v3920_v10, 5  ;;  %v3938_v59 = vrot.slane %v3920_v10, 4 }
0x23aa   :  { %v3927_v0 = vrot.slane %v3919_v44, 7  ;;  %v3932_v3 = vrot.slane %v3919_v44, 6  ;;  %v3937_v42 = vrot.slane %v3919_v44, 5  ;;  %v3942_v29 = vrot.slane %v3919_v44, 4 }
0x23ab   :  { %v3925_v2 = vsel %vm3924_vm8, %v3923_v63, %v3919_v44  ;;  %v3943_v53 = vrot.slane %v3920_v10, 3  ;;  %v3946_v12 = vrot.slane %v3919_v44, 3  ;;  %v3947_v13 = vrot.slane %v3920_v10, 2  ;;  %v4184_v63 = vld [vmem:[#allocation4 + $0x118] sm:$0xff] }
0x23ac   :  { %v3930_v17 = vsel %vm3929_vm9, %v3928_v28, %v3927_v0  ;;  %v3935_v32 = vsel %vm3934_vm10, %v3933_v62, %v3932_v3  ;;  %v3950_v11 = vrot.slane %v3919_v44, 2  ;;  %v3951_v24 = vrot.slane %v3920_v10, 1  ;;  %v4188_v28 = vld [vmem:[#allocation4 + $0x138] sm:$0xff] }
0x23ad   :  { %v3958_v14 = vsel %vm3957_vm12, %v3925_v2, %v3930_v17  ;;  %v3944_v20 = vsel %vm3924_vm8, %v3943_v53, %v3942_v29  ;;  %v3948_v54 = vsel %vm3929_vm9, %v3947_v13, %v3946_v12  ;;  %v3940_v26 = vsel %vm3939_vm11, %v3938_v59, %v3937_v42  ;;  %v4192_v0 = vld [vmem:[#allocation4 + $0x158] sm:$0xff]  ;;  %v4191_v2 = vld [vmem:[#allocation4 + $0x150] sm:$0xff] }
0x23ae   :  { %v3960_v31 = vsel %vm3959_vm13, %v3958_v14, %v3935_v32  ;;  %v3954_v33 = vrot.slane %v3919_v44, 1  ;;  %v3963_v35 = vsel %vm3957_vm12, %v3944_v20, %v3948_v54  ;;  %v3952_v40 = vsel %vm3934_vm10, %v3951_v24, %v3950_v11  ;;  %v4196_v3 = vld [vmem:[#allocation4 + $0x178] sm:$0xff]  ;;  %v4195_v53 = vld [vmem:[#allocation4 + $0x170] sm:$0xff] }
0x23af   :  { %v3962_v37 = vsel %vm3961_vm14, %v3960_v31, %v3940_v26  ;;  %v3964_v5 = vsel %vm3959_vm13, %v3963_v35, %v3952_v40  ;;  %v8102_v44 = vpack.c.bf16 %v4180_v22, %v4176_v41  ;;  %v8110_v59 = vpack.c.bf16 %v4188_v28, %v4184_v63  ;;  %v4200_v12 = vld [vmem:[#allocation4 + $0x198] sm:$0xff]  ;;  %v4203_v11 = vld [vmem:[#allocation4 + $0x1b0] sm:$0xff] }
0x23b0   :  { %5940 = vmatmul.mubr.msk.f32.vlgmr.msra.gmra.mrb[44].mxu0 %vm339_vm4, %v3962_v37  ;;  %v3955_v25 = vsel %vm3939_vm11, %v3920_v10, %v3954_v33  ;;  %v4175_v10 = vld [vmem:[#allocation4 + $0xd0] sm:$0xff]  ;;  %v8114_v42 = vpack.c.bf16 %v4187_v9, %v4183_v45  ;;  %v8118_v29 = vpack.c.bf16 %v4196_v3, %v4192_v0  ;;  %v4204_v13 = vld [vmem:[#allocation4 + $0x1b8] sm:$0xff]  ;;  %v8121_v17 = vpack.c.bf16 %v4195_v53, %v4191_v2 }
0x23b1   :  { %6559 = vmatpush1.bf16.msra.mxu0 %v6558_v58  ;;  %4081 = vmatprep.mubr.f32.mxu0 %v7417_v15  ;;  %v3965_v57 = vsel %vm3961_vm14, %v3964_v5, %v3955_v25  ;;  %v4179_v58 = vld [vmem:[#allocation4 + $0xf0] sm:$0xff]  ;;  %v8124_v32 = vpack.c.bf16 %v4204_v13, %v4200_v12  ;;  %v4208_v14 = vld [vmem:[#allocation4 + $0x1d8] sm:$0xff]  ;;  %v3995_v53 = vsub.s32 2, %v7547_v18  ;;  %v3999_v13 = vsub.s32 3, %v7547_v18 }
0x23b2   :  { %6561 = vmatprep.subr.bf16.mxu0 %v6560_v19  ;;  %v8107_v62 = vpack.c.bf16 %v4179_v58, %v4175_v10  ;;  %v4199_v19 = vld [vmem:[#allocation4 + $0x190] sm:$0xff]  ;;  %v4212_v20 = vld [vmem:[#allocation4 + $0x1f8] sm:$0xff]  ;;  %v3991_v58 = vsub.s32 1, %v7547_v18 }
0x23b3   :  { %v8127_v54 = vpack.c.bf16 %v4203_v11, %v4199_v19  ;;  %v8130_v24 = vpack.c.bf16 %v4212_v20, %v4208_v14  ;;  %v4207_v26 = vld [vmem:[#allocation4 + $0x1d0] sm:$0xff]  ;;  %v4216_v33 = vld [vmem:[#allocation4 + $0x218] sm:$0xff] }
0x23b4   :  { %5941 = vmatmul.mubr.msk.f32.gmra.mrb[46].mxu0 %vm339_vm4, %v3965_v57  ;;  %v4211_v31 = vld [vmem:[#allocation4 + $0x1f0] sm:$0xff]  ;;  %v4220_v35 = vld [vmem:[#allocation4 + $0x238] sm:$0xff] }
0x23b5   :  { %6563 = vmatpush1.bf16.msra.mxu0 %v6562_v4  ;;  %4152 = vmatprep.mubr.f32.mxu0 %v7417_v15  ;;  %v8133_v39 = vpack.c.bf16 %v4211_v31, %v4207_v26  ;;  %v8136_v38 = vpack.c.bf16 %v4220_v35, %v4216_v33  ;;  %v4219_v40 = vld [vmem:[#allocation4 + $0x230] sm:$0xff]  ;;  %v8142_v4 = vpack.c.bf16 %v4228_v48, %v4224_v47 }
0x23b6   :  { %6597 = vmatprep.subr.bf16.mxu0 %v8094_v51  ;;  %v4223_v25 = vld [vmem:[#allocation4 + $0x250] sm:$0xff] }
0x23b7   :  { %v8145_v16 = vpack.c.bf16 %v4227_v55, %v4223_v25  ;;  %v3983_v22 = vld [vmem:[#allocation4 + $0x280] ss:$8 sm:$0xf] }
0x23b8   :  { %5942 = vmatmul.mubr.msk.f32.vlgmr.msra.gmra.mrb[48].mxu0 %vm339_vm4, %v3962_v37  ;;  %v4215_v37 = vld [vmem:[#allocation4 + $0x210] sm:$0xff]  ;;  %v3988_v28 = vrot.slane %v3983_v22, %v7554_v23  ;;  %v3992_v45 = vrot.slane %v3983_v22, %v3991_v58  ;;  %v3996_v11 = vrot.slane %v3983_v22, %v3995_v53  ;;  %v4000_v14 = vrot.slane %v3983_v22, %v3999_v13 }
0x23b9   :  { %6599 = vmatpush1.bf16.msra.mxu0 %v8099_v60  ;;  %4158 = vmatprep.mubr.f32.mxu0 %v7417_v15  ;;  %v8139_v5 = vpack.c.bf16 %v4219_v40, %v4215_v37 }
0x23ba   :  { %6601 = vmatprep.subr.bf16.mxu0 %v8102_v44 }
0x23bc   :  { %5943 = vmatmul.mubr.msk.f32.gmra.mrb[50].mxu0 %vm339_vm4, %v3965_v57 }
0x23bd   :  { %6603 = vmatpush1.bf16.msra.mxu0 %v8107_v62  ;;  %4364 = vmatprep.mubr.f32.mxu0 %v7417_v15 }
0x23be   :  { %6605 = vmatprep.subr.bf16.mxu0 %v8110_v59 }
0x23c1   :  { %6607 = vmatpush1.bf16.msra.mxu0 %v8114_v42 }
0x23c2   :  { %6609 = vmatprep.subr.bf16.mxu0 %v8118_v29 }
0x23c5   :  { %6611 = vmatpush1.bf16.msra.mxu0 %v8121_v17 }
0x23c6   :  { %6613 = vmatprep.subr.bf16.mxu0 %v8124_v32 }
0x23c9   :  { %6615 = vmatpush1.bf16.msra.mxu0 %v8127_v54 }
0x23ca   :  { %6617 = vmatprep.subr.bf16.mxu0 %v8130_v24 }
0x23cd   :  { %6619 = vmatpush1.bf16.msra.mxu0 %v8133_v39 }
0x23ce   :  { %6621 = vmatprep.subr.bf16.mxu0 %v8136_v38 }
0x23d1   :  { %6623 = vmatpush1.bf16.msra.mxu0 %v8139_v5 }
0x23d2   :  { %6625 = vmatprep.subr.bf16.mxu0 %v8142_v4 }
0x23d5   :  { %6627 = vmatpush1.bf16.msra.mxu0 %v8145_v16 }
0x23d6   :  { %6661 = vmatprep.subr.bf16.mxu0 %v8094_v51 }
0x23d8   :  { %4365 = vmatmul.mubr.f32.vlgmr.msra.gmra.mrb[52].mxu0 %v7417_v15 }
0x23d9   :  { %6663 = vmatpush1.bf16.msra.mxu0 %v8099_v60  ;;  %4534 = vmatprep.mubr.f32.mxu0 %v7417_v15 }
0x23da   :  { %6665 = vmatprep.subr.bf16.mxu0 %v8102_v44 }
0x23dd   :  { %6667 = vmatpush1.bf16.msra.mxu0 %v8107_v62 }
0x23de   :  { %6669 = vmatprep.subr.bf16.mxu0 %v8110_v59 }
0x23e0   :  { %v4295_v57 = vpop.f32.mrb[40].mxu1 }
0x23e1   :  { %6671 = vmatpush1.bf16.msra.mxu0 %v8114_v42  ;;  %v4297_v41 = vpop.f32.mrb[41].mxu1 }
0x23e2   :  { %6673 = vmatprep.subr.bf16.mxu0 %v8118_v29 }
0x23e5   :  { %6675 = vmatpush1.bf16.msra.mxu0 %v8121_v17 }
0x23e6   :  { %6677 = vmatprep.subr.bf16.mxu0 %v8124_v32 }
0x23e9   :  { %6679 = vmatpush1.bf16.msra.mxu0 %v8127_v54 }
0x23ea   :  { %6681 = vmatprep.subr.bf16.mxu0 %v8130_v24 }
0x23ed   :  { %6683 = vmatpush1.bf16.msra.mxu0 %v8133_v39 }
0x23ee   :  { %6685 = vmatprep.subr.bf16.mxu0 %v8136_v38 }
0x23f1   :  { %6687 = vmatpush1.bf16.msra.mxu0 %v8139_v5 }
0x23f2   :  { %6689 = vmatprep.subr.bf16.mxu0 %v8142_v4 }
0x23f5   :  { %6691 = vmatpush1.bf16.msra.mxu0 %v8145_v16 }
0x23f6   :  { %6725 = vmatprep.subr.bf16.mxu0 %v8094_v51 }
0x2483   :  { %v4077_v10 = vpop.f32.mrb[44].mxu0 }
0x2484   :  { %v4079_v63 = vpop.f32.mrb[45].mxu0  ;;  %v8180_v33 = vadd.f32 %v4077_v10, %v3988_v28 }
0x2485   :  { %v8176_v26 = vadd.f32 %v4079_v63, %v3992_v45 }
0x2486   :  { %v4371_v40 = vadd.f32 %v4295_v57, %v8180_v33 }
0x2487   :  { %v4083_v9 = vpop.f32.mrb[46].mxu0  ;;  %v4372_v37 = vadd.f32 %v4297_v41, %v8176_v26 }
0x2488   :  { %v8170_v0 = vadd.f32 %v4083_v9, %v3988_v28  ;;  %v4085_v3 = vpop.f32.mrb[47].mxu0  ;;  %v5944_v48 = vmul.f32 -1.442695, %v4371_v40 }
0x2489   :  { %v8172_v2 = vadd.f32 %v4085_v3, %v3992_v45  ;;  %v5945_v47 = vmul.f32 -1.442695, %v4372_v37 }
0x248b   :  { %v4154_v12 = vpop.f32.mrb[48].mxu0  ;;  %7224 = vpow2.f32 %v5945_v47 }
0x248c   :  { %v4156_v19 = vpop.f32.mrb[49].mxu0  ;;  %7226 = vpow2.f32 %v5944_v48  ;;  %v8186_v58 = vadd.f32 %v4154_v12, %v3996_v11 }
0x248d   :  { %v8188_v63 = vadd.f32 %v4156_v19, %v4000_v14 }
0x248f   :  { %v4160_v20 = vpop.f32.mrb[50].mxu0 }
0x2490   :  { %v8178_v31 = vadd.f32 %v4160_v20, %v3996_v11  ;;  %v4162_v23 = vpop.f32.mrb[51].mxu0 }
0x2491   :  { %v8182_v35 = vadd.f32 %v4162_v23, %v4000_v14 }
0x2495   :  { %v7225_v18 = vpop.eup %7224 }
0x2496   :  { %v7227_v25 = vpop.eup %7226  ;;  %v4385_v55 = vadd.f32 1.0, %v7225_v18 }
0x2497   :  { %v4384_v22 = vadd.f32 1.0, %v7227_v25 }
0x2498   :  { %7228 = vrcp.f32 %v4385_v55 }
0x2499   :  { %7230 = vrcp.f32 %v4384_v22 }
0x24a2   :  { %v7229_v9 = vpop.eup %7228 }
0x24a3   :  { %v7231_v3 = vpop.eup %7230  ;;  %v4394_v20 = vmul.f32 0.0, %v7229_v9 }
0x24ab   :  { %v4366_v10 = vpop.f32.mrb[52].mxu0 }
0x24ac   :  { %v4373_v28 = vadd.f32 %v4366_v10, %v8186_v58  ;;  %v4368_v45 = vpop.f32.mrb[53].mxu0 }
0x24ad   :  { %v4374_v41 = vadd.f32 %v4368_v45, %v8188_v63 }
0x24ae   :  { %v5946_v57 = vmul.f32 -1.442695, %v4373_v28 }
0x24af   :  { %7232 = vtanh.f32 %v4374_v41 }
0x24b0   :  { %7234 = vpow2.f32 %v5946_v57 }
0x24b9   :  { %v7233_v53 = vpop.eup %7232 }
0x24ba   :  { %v7235_v13 = vpop.eup %7234  ;;  %v4395_v12 = vmul.f32 %v7233_v53, %v7231_v3 }
0x24bb   :  { %v4386_v11 = vadd.f32 1.0, %v7235_v13 }
0x24bc   :  { %v8192_v19 = vadd.f32 %v4395_v12, %v4394_v20 }
0x24bd   :  { %7236 = vrcp.f32 %v4386_v11 }
0x24be   :  { %7238 = vtanh.f32 %v8192_v19 }
0x24c7   :  { %v7237_v14 = vpop.eup %7236 }
0x24c8   :  { %v7239_v23 = vpop.eup %7238 }
0x24c9   :  { %v8195_v37 = vmul.f32 %v7239_v23, %v7237_v14 }
0x24cb   :  { %4464 = vmatmul.mubr.f32.vlgmr.msra.gmra.mrb[42].mxu1 %v8195_v37  ;;  %4535 = vmatmul.mubr.f32.vlgmr.msra.gmra.mrb[54].mxu0 %v8195_v37 }
0x24cc   :  { %6695 = vmatpush1.bf16.msra.mxu1 %v8002_v21  ;;  %6727 = vmatpush1.bf16.msra.mxu0 %v8099_v60 }
0x24cd   :  { %6697 = vmatprep.subr.bf16.mxu1 %v8016_v36  ;;  %6729 = vmatprep.subr.bf16.mxu0 %v8102_v44 }
0x24ce   :  { %4651 = vmatprep.mubr.f32.mxu1 %v7417_v15  ;;  %4722 = vmatprep.mubr.f32.mxu0 %v7417_v15 }
0x24d0   :  { %6699 = vmatpush1.bf16.msra.mxu1 %v8018_v43  ;;  %6731 = vmatpush1.bf16.msra.mxu0 %v8107_v62 }
0x24d1   :  { %6701 = vmatprep.subr.bf16.mxu1 %v8022_v6  ;;  %6733 = vmatprep.subr.bf16.mxu0 %v8110_v59 }
0x24d4   :  { %6703 = vmatpush1.bf16.msra.mxu1 %v8024_v49  ;;  %6735 = vmatpush1.bf16.msra.mxu0 %v8114_v42 }
0x24d5   :  { %6705 = vmatprep.subr.bf16.mxu1 %v8028_v52  ;;  %6737 = vmatprep.subr.bf16.mxu0 %v8118_v29 }
0x24d8   :  { %6707 = vmatpush1.bf16.msra.mxu1 %v8030_v56  ;;  %6739 = vmatpush1.bf16.msra.mxu0 %v8121_v17 }
0x24d9   :  { %6709 = vmatprep.subr.bf16.mxu1 %v8034_v46  ;;  %6741 = vmatprep.subr.bf16.mxu0 %v8124_v32 }
0x24dc   :  { %6711 = vmatpush1.bf16.msra.mxu1 %v8036_v27  ;;  %6743 = vmatpush1.bf16.msra.mxu0 %v8127_v54 }
0x24dd   :  { %6713 = vmatprep.subr.bf16.mxu1 %v8040_v1  ;;  %6745 = vmatprep.subr.bf16.mxu0 %v8130_v24 }
0x24e0   :  { %6715 = vmatpush1.bf16.msra.mxu1 %v8043_v50  ;;  %6747 = vmatpush1.bf16.msra.mxu0 %v8133_v39 }
0x24e1   :  { %6717 = vmatprep.subr.bf16.mxu1 %v8046_v7  ;;  %6749 = vmatprep.subr.bf16.mxu0 %v8136_v38 }
0x24e4   :  { %6719 = vmatpush1.bf16.msra.mxu1 %v8048_v34  ;;  %6751 = vmatpush1.bf16.msra.mxu0 %v8139_v5 }
0x24e5   :  { %6721 = vmatprep.subr.bf16.mxu1 %v8051_v30  ;;  %6753 = vmatprep.subr.bf16.mxu0 %v8142_v4 }
0x24e8   :  { %6723 = vmatpush1.bf16.msra.mxu1 %v8054_v61  ;;  %6755 = vmatpush1.bf16.msra.mxu0 %v8145_v16 }
0x24e9   :  { %6757 = vmatprep.subr.bf16.mxu1 %v8000_v8  ;;  %6789 = vmatprep.subr.bf16.mxu0 %v8094_v51 }
0x259e   :  { %v4465_v40 = vpop.f32.mrb[42].mxu1  ;;  %v4536_v47 = vpop.f32.mrb[54].mxu0 }
0x259f   :  { %v4545_v48 = vrot.slane %v4465_v40, 6  ;;  %v4467_v18 = vpop.f32.mrb[43].mxu1  ;;  %v4538_v25 = vpop.f32.mrb[55].mxu0  ;;  %v4547_v41 = vrot.slane %v4536_v47, 6  ;;  %v4577_v47 = vrot.slane %v8192_v19, 6 }
0x25a0   :  { %v4546_v55 = vrot.slane %v4467_v18, 6  ;;  %v4548_v57 = vrot.slane %v4538_v25, 6 }
0x25a1   :  { %v4553_v22 = vadd.f32 %v4545_v48, %v8180_v33  ;;  %v4555_v9 = vadd.f32 %v4547_v41, %v8186_v58 }
0x25a2   :  { %v4554_v10 = vadd.f32 %v4546_v55, %v8176_v26  ;;  %v4556_v3 = vadd.f32 %v4548_v57, %v8188_v63 }
0x25a3   :  { %v5947_v28 = vmul.f32 -1.442695, %v4553_v22  ;;  %v5949_v53 = vmul.f32 -1.442695, %v4555_v9 }
0x25a4   :  { %v5948_v45 = vmul.f32 -1.442695, %v4554_v10 }
0x25a5   :  { %7240 = vpow2.f32 %v5947_v28 }
0x25a6   :  { %7242 = vpow2.f32 %v5948_v45 }
0x25a7   :  { %7244 = vtanh.f32 %v4556_v3 }
0x25a8   :  { %7246 = vpow2.f32 %v5949_v53 }
0x25af   :  { %v7241_v13 = vpop.eup %7240 }
0x25b0   :  { %v4566_v20 = vadd.f32 1.0, %v7241_v13  ;;  %v7243_v12 = vpop.eup %7242 }
0x25b1   :  { %v4567_v11 = vadd.f32 1.0, %v7243_v12  ;;  %v7245_v14 = vpop.eup %7244 }
0x25b2   :  { %7248 = vrcp.f32 %v4566_v20  ;;  %v7247_v23 = vpop.eup %7246 }
0x25b3   :  { %7250 = vrcp.f32 %v4567_v11  ;;  %v4568_v25 = vadd.f32 1.0, %v7247_v23 }
0x25b5   :  { %7252 = vrcp.f32 %v4568_v25 }
0x25bc   :  { %v7249_v40 = vpop.eup %7248 }
0x25bd   :  { %v4580_v48 = vmul.f32 %v7249_v40, %v7245_v14  ;;  %v7251_v18 = vpop.eup %7250 }
0x25be   :  { %v4579_v55 = vmul.f32 %v7251_v18, %v4577_v47 }
0x25bf   :  { %v7253_v10 = vpop.eup %7252 }
0x25c0   :  { %v8238_v22 = vadd.f32 %v4580_v48, %v4579_v55 }
0x25c2   :  { %7254 = vtanh.f32 %v8238_v22 }
0x25cc   :  { %v7255_v28 = vpop.eup %7254 }
0x25cd   :  { %v8241_v45 = vmul.f32 %v7255_v28, %v7253_v10 }
0x25cf   :  { %v4585_v41 = vrot.slane %v8241_v45, 2 }
0x25d1   :  { %4652 = vmatmul.mubr.f32.vlgmr.msra.gmra.mrb[44].mxu1 %v4585_v41  ;;  %4723 = vmatmul.mubr.f32.vlgmr.msra.gmra.mrb[56].mxu0 %v4585_v41 }
0x25d2   :  { %6759 = vmatpush1.bf16.msra.mxu1 %v8002_v21  ;;  %6791 = vmatpush1.bf16.msra.mxu0 %v8099_v60 }
0x25d3   :  { %6761 = vmatprep.subr.bf16.mxu1 %v8016_v36  ;;  %6793 = vmatprep.subr.bf16.mxu0 %v8102_v44 }
0x25d4   :  { %4839 = vmatprep.mubr.f32.mxu1 %v7417_v15  ;;  %4910 = vmatprep.mubr.f32.mxu0 %v7417_v15 }
0x25d6   :  { %6763 = vmatpush1.bf16.msra.mxu1 %v8018_v43  ;;  %6795 = vmatpush1.bf16.msra.mxu0 %v8107_v62 }
0x25d7   :  { %6765 = vmatprep.subr.bf16.mxu1 %v8022_v6  ;;  %6797 = vmatprep.subr.bf16.mxu0 %v8110_v59 }
0x25da   :  { %6767 = vmatpush1.bf16.msra.mxu1 %v8024_v49  ;;  %6799 = vmatpush1.bf16.msra.mxu0 %v8114_v42 }
0x25db   :  { %6769 = vmatprep.subr.bf16.mxu1 %v8028_v52  ;;  %6801 = vmatprep.subr.bf16.mxu0 %v8118_v29 }
0x25de   :  { %6771 = vmatpush1.bf16.msra.mxu1 %v8030_v56  ;;  %6803 = vmatpush1.bf16.msra.mxu0 %v8121_v17 }
0x25df   :  { %6773 = vmatprep.subr.bf16.mxu1 %v8034_v46  ;;  %6805 = vmatprep.subr.bf16.mxu0 %v8124_v32 }
0x25e2   :  { %6775 = vmatpush1.bf16.msra.mxu1 %v8036_v27  ;;  %6807 = vmatpush1.bf16.msra.mxu0 %v8127_v54 }
0x25e3   :  { %6777 = vmatprep.subr.bf16.mxu1 %v8040_v1  ;;  %6809 = vmatprep.subr.bf16.mxu0 %v8130_v24 }
0x25e6   :  { %6779 = vmatpush1.bf16.msra.mxu1 %v8043_v50  ;;  %6811 = vmatpush1.bf16.msra.mxu0 %v8133_v39 }
0x25e7   :  { %6781 = vmatprep.subr.bf16.mxu1 %v8046_v7  ;;  %6813 = vmatprep.subr.bf16.mxu0 %v8136_v38 }
0x25ea   :  { %6783 = vmatpush1.bf16.msra.mxu1 %v8048_v34  ;;  %6815 = vmatpush1.bf16.msra.mxu0 %v8139_v5 }
0x25eb   :  { %6785 = vmatprep.subr.bf16.mxu1 %v8051_v30  ;;  %6817 = vmatprep.subr.bf16.mxu0 %v8142_v4 }
0x25ee   :  { %6787 = vmatpush1.bf16.msra.mxu1 %v8054_v61  ;;  %6819 = vmatpush1.bf16.msra.mxu0 %v8145_v16 }
0x25ef   :  { %6821 = vmatprep.subr.bf16.mxu1 %v8000_v8  ;;  %6853 = vmatprep.subr.bf16.mxu0 %v8094_v51 }
0x26a4   :  { %v4653_v19 = vpop.f32.mrb[44].mxu1  ;;  %v4724_v57 = vpop.f32.mrb[56].mxu0 }
0x26a5   :  { %v4733_v9 = vrot.slane %v4653_v19, 4  ;;  %v4655_v3 = vpop.f32.mrb[45].mxu1  ;;  %v4726_v53 = vpop.f32.mrb[57].mxu0  ;;  %v4735_v23 = vrot.slane %v4724_v57, 4  ;;  %v4765_v57 = vrot.slane %v8238_v22, 6 }
0x26a6   :  { %v4734_v13 = vrot.slane %v4655_v3, 4  ;;  %v4736_v40 = vrot.slane %v4726_v53, 4 }
0x26a7   :  { %v4741_v20 = vadd.f32 %v4733_v9, %v8180_v33  ;;  %v4743_v47 = vadd.f32 %v4735_v23, %v8186_v58 }
0x26a8   :  { %v4742_v12 = vadd.f32 %v4734_v13, %v8176_v26  ;;  %v4744_v48 = vadd.f32 %v4736_v40, %v8188_v63  ;;  %v5697_v40 = vsel %vm3957_vm12, %v8195_v37, %v8241_v45 }
0x26a9   :  { %v5950_v11 = vmul.f32 -1.442695, %v4741_v20  ;;  %v5952_v18 = vmul.f32 -1.442695, %v4743_v47 }
0x26aa   :  { %v5951_v14 = vmul.f32 -1.442695, %v4742_v12 }
0x26ab   :  { %7256 = vpow2.f32 %v5950_v11 }
0x26ac   :  { %7258 = vpow2.f32 %v5951_v14 }
0x26ad   :  { %7260 = vtanh.f32 %v4744_v48 }
0x26ae   :  { %7262 = vpow2.f32 %v5952_v18 }
0x26b5   :  { %v7257_v25 = vpop.eup %7256 }
0x26b6   :  { %v4754_v55 = vadd.f32 1.0, %v7257_v25  ;;  %v7259_v10 = vpop.eup %7258 }
0x26b7   :  { %v4755_v28 = vadd.f32 1.0, %v7259_v10  ;;  %v7261_v41 = vpop.eup %7260 }
0x26b8   :  { %7264 = vrcp.f32 %v4754_v55  ;;  %v7263_v19 = vpop.eup %7262 }
0x26b9   :  { %7266 = vrcp.f32 %v4755_v28  ;;  %v4756_v13 = vadd.f32 1.0, %v7263_v19 }
0x26bb   :  { %7268 = vrcp.f32 %v4756_v13 }
0x26c2   :  { %v7265_v9 = vpop.eup %7264 }
0x26c3   :  { %v4768_v3 = vmul.f32 %v7265_v9, %v7261_v41  ;;  %v7267_v53 = vpop.eup %7266 }
0x26c4   :  { %v4767_v20 = vmul.f32 %v7267_v53, %v4765_v57 }
0x26c5   :  { %v7269_v11 = vpop.eup %7268 }
0x26c6   :  { %v8283_v12 = vadd.f32 %v4768_v3, %v4767_v20 }
0x26c8   :  { %7270 = vtanh.f32 %v8283_v12 }
0x26d2   :  { %v7271_v14 = vpop.eup %7270 }
0x26d3   :  { %v4771_v23 = vmul.f32 %v7271_v14, %v7269_v11 }
0x26d5   :  { %v4773_v47 = vrot.slane %v4771_v23, 4  ;;  %v8290_v48 = vsel %vm3959_vm13, %v5697_v40, %v4771_v23 }
0x26d7   :  { %4840 = vmatmul.mubr.f32.vlgmr.msra.gmra.mrb[46].mxu1 %v4773_v47  ;;  %4911 = vmatmul.mubr.f32.vlgmr.msra.gmra.mrb[58].mxu0 %v4773_v47  ;;  %v4953_v47 = vrot.slane %v8283_v12, 6 }
0x26d8   :  { %6823 = vmatpush1.bf16.msra.mxu1 %v8002_v21  ;;  %6855 = vmatpush1.bf16.msra.mxu0 %v8099_v60 }
0x26d9   :  { %6825 = vmatprep.subr.bf16.mxu1 %v8016_v36  ;;  %6857 = vmatprep.subr.bf16.mxu0 %v8102_v44 }
0x26da   :  { %5027 = vmatprep.mubr.f32.mxu1 %v7417_v15  ;;  %5098 = vmatprep.mubr.f32.mxu0 %v7417_v15 }
0x26dc   :  { %6827 = vmatpush1.bf16.msra.mxu1 %v8018_v43  ;;  %6859 = vmatpush1.bf16.msra.mxu0 %v8107_v62 }
0x26dd   :  { %6829 = vmatprep.subr.bf16.mxu1 %v8022_v6  ;;  %6861 = vmatprep.subr.bf16.mxu0 %v8110_v59 }
0x26e0   :  { %6831 = vmatpush1.bf16.msra.mxu1 %v8024_v49  ;;  %6863 = vmatpush1.bf16.msra.mxu0 %v8114_v42 }
0x26e1   :  { %6833 = vmatprep.subr.bf16.mxu1 %v8028_v52  ;;  %6865 = vmatprep.subr.bf16.mxu0 %v8118_v29 }
0x26e4   :  { %6835 = vmatpush1.bf16.msra.mxu1 %v8030_v56  ;;  %6867 = vmatpush1.bf16.msra.mxu0 %v8121_v17 }
0x26e5   :  { %6837 = vmatprep.subr.bf16.mxu1 %v8034_v46  ;;  %6869 = vmatprep.subr.bf16.mxu0 %v8124_v32 }
0x26e8   :  { %6839 = vmatpush1.bf16.msra.mxu1 %v8036_v27  ;;  %6871 = vmatpush1.bf16.msra.mxu0 %v8127_v54 }
0x26e9   :  { %6841 = vmatprep.subr.bf16.mxu1 %v8040_v1  ;;  %6873 = vmatprep.subr.bf16.mxu0 %v8130_v24 }
0x26ec   :  { %6843 = vmatpush1.bf16.msra.mxu1 %v8043_v50  ;;  %6875 = vmatpush1.bf16.msra.mxu0 %v8133_v39 }
0x26ed   :  { %6845 = vmatprep.subr.bf16.mxu1 %v8046_v7  ;;  %6877 = vmatprep.subr.bf16.mxu0 %v8136_v38 }
0x26f0   :  { %6847 = vmatpush1.bf16.msra.mxu1 %v8048_v34  ;;  %6879 = vmatpush1.bf16.msra.mxu0 %v8139_v5 }
0x26f1   :  { %6849 = vmatprep.subr.bf16.mxu1 %v8051_v30  ;;  %6881 = vmatprep.subr.bf16.mxu0 %v8142_v4 }
0x26f4   :  { %6851 = vmatpush1.bf16.msra.mxu1 %v8054_v61  ;;  %6883 = vmatpush1.bf16.msra.mxu0 %v8145_v16 }
0x26f5   :  { %6885 = vmatprep.subr.bf16.mxu1 %v8000_v8  ;;  %6917 = vmatprep.subr.bf16.mxu0 %v8094_v51 }
0x27aa   :  { %v4841_v37 = vpop.f32.mrb[46].mxu1  ;;  %v4912_v22 = vpop.f32.mrb[58].mxu0 }
0x27ab   :  { %v4921_v45 = vrot.slane %v4841_v37, 2  ;;  %v4843_v18 = vpop.f32.mrb[47].mxu1  ;;  %v4914_v25 = vpop.f32.mrb[59].mxu0  ;;  %v4923_v9 = vrot.slane %v4912_v22, 2 }
0x27ac   :  { %v4922_v55 = vrot.slane %v4843_v18, 2  ;;  %v4924_v57 = vrot.slane %v4914_v25, 2 }
0x27ad   :  { %v4929_v10 = vadd.f32 %v4921_v45, %v8180_v33  ;;  %v4931_v3 = vadd.f32 %v4923_v9, %v8186_v58 }
0x27ae   :  { %v4930_v28 = vadd.f32 %v4922_v55, %v8176_v26  ;;  %v4932_v53 = vadd.f32 %v4924_v57, %v8188_v63 }
0x27af   :  { %v5953_v41 = vmul.f32 -1.442695, %v4929_v10  ;;  %v5955_v13 = vmul.f32 -1.442695, %v4931_v3 }
0x27b0   :  { %v5954_v19 = vmul.f32 -1.442695, %v4930_v28 }
0x27b1   :  { %7272 = vpow2.f32 %v5953_v41 }
0x27b2   :  { %7274 = vpow2.f32 %v5954_v19 }
0x27b3   :  { %7276 = vtanh.f32 %v4932_v53 }
0x27b4   :  { %7278 = vpow2.f32 %v5955_v13 }
0x27bb   :  { %v7273_v20 = vpop.eup %7272 }
0x27bc   :  { %v4942_v11 = vadd.f32 1.0, %v7273_v20  ;;  %v7275_v14 = vpop.eup %7274 }
0x27bd   :  { %v4943_v33 = vadd.f32 1.0, %v7275_v14  ;;  %v7277_v26 = vpop.eup %7276 }
0x27be   :  { %7280 = vrcp.f32 %v4942_v11  ;;  %v7279_v23 = vpop.eup %7278 }
0x27bf   :  { %7282 = vrcp.f32 %v4943_v33  ;;  %v4944_v45 = vadd.f32 1.0, %v7279_v23 }
0x27c1   :  { %7284 = vrcp.f32 %v4944_v45 }
0x27c8   :  { %v7281_v40 = vpop.eup %7280 }
0x27c9   :  { %v4956_v37 = vmul.f32 %v7281_v40, %v7277_v26  ;;  %v7283_v22 = vpop.eup %7282 }
0x27ca   :  { %v4955_v58 = vmul.f32 %v7283_v22, %v4953_v47 }
0x27cb   :  { %v7285_v63 = vpop.eup %7284 }
0x27cc   :  { %v8331_v18 = vadd.f32 %v4956_v37, %v4955_v58 }
0x27ce   :  { %7286 = vtanh.f32 %v8331_v18 }
0x27d8   :  { %v7287_v25 = vpop.eup %7286 }
0x27d9   :  { %v4959_v55 = vmul.f32 %v7287_v25, %v7285_v63  ;;  %v5129_v25 = vrot.slane %v8331_v18, 6 }
0x27db   :  { %v5699_v10 = vsel %vm3961_vm14, %v8290_v48, %v4959_v55  ;;  %v4961_v28 = vrot.slane %v4959_v55, 6 }
0x27dc   :  { %5703 = vadd.xlane.f32.xlu0 %v5699_v10 }
0x27dd   :  { %5028 = vmatmul.mubr.f32.vlgmr.msra.gmra.mrb[48].mxu1 %v4961_v28  ;;  %5099 = vmatmul.mubr.f32.vlgmr.msra.gmra.mrb[60].mxu0 %v4961_v28 }
0x27de   :  { %6887 = vmatpush1.bf16.msra.mxu1 %v8002_v21  ;;  %6919 = vmatpush1.bf16.msra.mxu0 %v8099_v60 }
0x27df   :  { %6889 = vmatprep.subr.bf16.mxu1 %v8016_v36  ;;  %6921 = vmatprep.subr.bf16.mxu0 %v8102_v44 }
0x27e0   :  { %5200 = vmatprep.mubr.f32.mxu1 %v7417_v15  ;;  %5271 = vmatprep.mubr.f32.mxu0 %v7417_v15 }
0x27e2   :  { %6891 = vmatpush1.bf16.msra.mxu1 %v8018_v43  ;;  %6923 = vmatpush1.bf16.msra.mxu0 %v8107_v62 }
0x27e3   :  { %6893 = vmatprep.subr.bf16.mxu1 %v8022_v6  ;;  %6925 = vmatprep.subr.bf16.mxu0 %v8110_v59 }
0x27e6   :  { %6895 = vmatpush1.bf16.msra.mxu1 %v8024_v49  ;;  %6927 = vmatpush1.bf16.msra.mxu0 %v8114_v42 }
0x27e7   :  { %6897 = vmatprep.subr.bf16.mxu1 %v8028_v52  ;;  %6929 = vmatprep.subr.bf16.mxu0 %v8118_v29 }
0x27ea   :  { %6899 = vmatpush1.bf16.msra.mxu1 %v8030_v56  ;;  %6931 = vmatpush1.bf16.msra.mxu0 %v8121_v17 }
0x27eb   :  { %6901 = vmatprep.subr.bf16.mxu1 %v8034_v46  ;;  %6933 = vmatprep.subr.bf16.mxu0 %v8124_v32 }
0x27ee   :  { %6903 = vmatpush1.bf16.msra.mxu1 %v8036_v27  ;;  %6935 = vmatpush1.bf16.msra.mxu0 %v8127_v54 }
0x27ef   :  { %6905 = vmatprep.subr.bf16.mxu1 %v8040_v1  ;;  %6937 = vmatprep.subr.bf16.mxu0 %v8130_v24 }
0x27f2   :  { %6907 = vmatpush1.bf16.msra.mxu1 %v8043_v50  ;;  %6939 = vmatpush1.bf16.msra.mxu0 %v8133_v39 }
0x27f3   :  { %6909 = vmatprep.subr.bf16.mxu1 %v8046_v7  ;;  %6941 = vmatprep.subr.bf16.mxu0 %v8136_v38 }
0x27f6   :  { %6911 = vmatpush1.bf16.msra.mxu1 %v8048_v34  ;;  %6943 = vmatpush1.bf16.msra.mxu0 %v8139_v5 }
0x27f7   :  { %6913 = vmatprep.subr.bf16.mxu1 %v8051_v30  ;;  %6945 = vmatprep.subr.bf16.mxu0 %v8142_v4 }
0x27fa   :  { %6915 = vmatpush1.bf16.msra.mxu1 %v8054_v61  ;;  %6947 = vmatpush1.bf16.msra.mxu0 %v8145_v16 }
0x27fb   :  { %6949 = vmatprep.subr.bf16.mxu1 %v8000_v8  ;;  %6981 = vmatprep.subr.bf16.mxu0 %v8094_v51 }
0x2869   :  { %v5704_v12 = vpop.xlane.xlu0 %5703 }
0x286a   :  { %v5708_v48 = vmul.f32 0.0078125, %v5704_v12 }
0x286c   :  { %v8370_v41 = vsub.f32 %v5699_v10, %v5708_v48 }
0x286e   :  { %v5712_v19 = vmul.f32 %v8370_v41, %v8370_v41 }
0x2870   :  { %5714 = vadd.xlane.f32.xlu0 %v5712_v19 }
0x28b0   :  { %v5029_v9 = vpop.f32.mrb[48].mxu1  ;;  %v5100_v57 = vpop.f32.mrb[60].mxu0 }
0x28b1   :  { %v5105_v3 = vadd.f32 %v5029_v9, %v8170_v0  ;;  %v5031_v53 = vpop.f32.mrb[49].mxu1  ;;  %v5102_v13 = vpop.f32.mrb[61].mxu0  ;;  %v5107_v33 = vadd.f32 %v5100_v57, %v8178_v31 }
0x28b2   :  { %v5106_v20 = vadd.f32 %v5031_v53, %v8172_v2  ;;  %v5108_v26 = vadd.f32 %v5102_v13, %v8182_v35 }
0x28b3   :  { %v5956_v11 = vmul.f32 -1.442695, %v5105_v3  ;;  %v5958_v23 = vmul.f32 -1.442695, %v5107_v33 }
0x28b4   :  { %v5957_v14 = vmul.f32 -1.442695, %v5106_v20 }
0x28b5   :  { %7288 = vpow2.f32 %v5956_v11 }
0x28b6   :  { %7290 = vpow2.f32 %v5957_v14 }
0x28b7   :  { %7292 = vtanh.f32 %v5108_v26 }
0x28b8   :  { %7294 = vpow2.f32 %v5958_v23 }
0x28bf   :  { %v7289_v40 = vpop.eup %7288 }
0x28c0   :  { %v5118_v47 = vadd.f32 1.0, %v7289_v40  ;;  %v7291_v37 = vpop.eup %7290 }
0x28c1   :  { %v5119_v22 = vadd.f32 1.0, %v7291_v37  ;;  %v7293_v45 = vpop.eup %7292 }
0x28c2   :  { %7296 = vrcp.f32 %v5118_v47  ;;  %v7295_v58 = vpop.eup %7294 }
0x28c3   :  { %7298 = vrcp.f32 %v5119_v22  ;;  %v5120_v28 = vadd.f32 1.0, %v7295_v58 }
0x28c5   :  { %7300 = vrcp.f32 %v5120_v28 }
0x28cc   :  { %v7297_v63 = vpop.eup %7296 }
0x28cd   :  { %v5132_v55 = vmul.f32 %v7297_v63, %v7293_v45  ;;  %v7299_v10 = vpop.eup %7298 }
0x28ce   :  { %v5131_v12 = vmul.f32 %v7299_v10, %v5129_v25 }
0x28cf   :  { %v7301_v19 = vpop.eup %7300 }
0x28d0   :  { %v8379_v48 = vadd.f32 %v5132_v55, %v5131_v12 }
0x28d2   :  { %7302 = vtanh.f32 %v8379_v48  ;;  %v5314_v28 = vrot.slane %v8379_v48, 6 }
0x28dc   :  { %v7303_v9 = vpop.eup %7302 }
0x28dd   :  { %v8382_v57 = vmul.f32 %v7303_v9, %v7301_v19 }
0x28df   :  { %5201 = vmatmul.mubr.f32.vlgmr.msra.gmra.mrb[50].mxu1 %v8382_v57  ;;  %5272 = vmatmul.mubr.f32.vlgmr.msra.gmra.mrb[62].mxu0 %v8382_v57 }
0x28e0   :  { %6951 = vmatpush1.bf16.msra.mxu1 %v8002_v21  ;;  %6983 = vmatpush1.bf16.msra.mxu0 %v8099_v60 }
0x28e1   :  { %6953 = vmatprep.subr.bf16.mxu1 %v8016_v36  ;;  %6985 = vmatprep.subr.bf16.mxu0 %v8102_v44 }
0x28e2   :  { %5388 = vmatprep.mubr.f32.mxu1 %v7417_v15  ;;  %5459 = vmatprep.mubr.f32.mxu0 %v7417_v15 }
0x28e4   :  { %6955 = vmatpush1.bf16.msra.mxu1 %v8018_v43  ;;  %6987 = vmatpush1.bf16.msra.mxu0 %v8107_v62 }
0x28e5   :  { %6957 = vmatprep.subr.bf16.mxu1 %v8022_v6  ;;  %6989 = vmatprep.subr.bf16.mxu0 %v8110_v59 }
0x28e8   :  { %6959 = vmatpush1.bf16.msra.mxu1 %v8024_v49  ;;  %6991 = vmatpush1.bf16.msra.mxu0 %v8114_v42 }
0x28e9   :  { %6961 = vmatprep.subr.bf16.mxu1 %v8028_v52  ;;  %6993 = vmatprep.subr.bf16.mxu0 %v8118_v29 }
0x28ec   :  { %6963 = vmatpush1.bf16.msra.mxu1 %v8030_v56  ;;  %6995 = vmatpush1.bf16.msra.mxu0 %v8121_v17 }
0x28ed   :  { %6965 = vmatprep.subr.bf16.mxu1 %v8034_v46  ;;  %6997 = vmatprep.subr.bf16.mxu0 %v8124_v32 }
0x28f0   :  { %6967 = vmatpush1.bf16.msra.mxu1 %v8036_v27  ;;  %6999 = vmatpush1.bf16.msra.mxu0 %v8127_v54 }
0x28f1   :  { %6969 = vmatprep.subr.bf16.mxu1 %v8040_v1  ;;  %7001 = vmatprep.subr.bf16.mxu0 %v8130_v24 }
0x28f4   :  { %6971 = vmatpush1.bf16.msra.mxu1 %v8043_v50  ;;  %7003 = vmatpush1.bf16.msra.mxu0 %v8133_v39 }
0x28f5   :  { %6973 = vmatprep.subr.bf16.mxu1 %v8046_v7  ;;  %7005 = vmatprep.subr.bf16.mxu0 %v8136_v38 }
0x28f8   :  { %6975 = vmatpush1.bf16.msra.mxu1 %v8048_v34  ;;  %7007 = vmatpush1.bf16.msra.mxu0 %v8139_v5 }
0x28f9   :  { %6977 = vmatprep.subr.bf16.mxu1 %v8051_v30  ;;  %7009 = vmatprep.subr.bf16.mxu0 %v8142_v4 }
0x28fc   :  { %6979 = vmatpush1.bf16.msra.mxu1 %v8054_v61  ;;  %7011 = vmatpush1.bf16.msra.mxu0 %v8145_v16 }
0x28fd   :  { %7013 = vmatprep.subr.bf16.mxu1 %v8000_v8  ;;  %7045 = vmatprep.subr.bf16.mxu0 %v8094_v51 }
0x29b2   :  { %v5202_v18 = vpop.f32.mrb[50].mxu1  ;;  %v5273_v3 = vpop.f32.mrb[62].mxu0 }
0x29b3   :  { %v5282_v53 = vrot.slane %v5202_v18, 6  ;;  %v5204_v13 = vpop.f32.mrb[51].mxu1  ;;  %v5275_v20 = vpop.f32.mrb[63].mxu0  ;;  %v5284_v40 = vrot.slane %v5273_v3, 6 }
0x29b4   :  { %v5283_v11 = vrot.slane %v5204_v13, 6  ;;  %v5285_v47 = vrot.slane %v5275_v20, 6 }
0x29b5   :  { %v5290_v14 = vadd.f32 %v5282_v53, %v8170_v0  ;;  %v5292_v8 = vadd.f32 %v5284_v40, %v8178_v31 }
0x29b6   :  { %v5291_v33 = vadd.f32 %v5283_v11, %v8172_v2  ;;  %v5293_v51 = vadd.f32 %v5285_v47, %v8182_v35 }
0x29b7   :  { %v5959_v26 = vmul.f32 -1.442695, %v5290_v14  ;;  %v5961_v37 = vmul.f32 -1.442695, %v5292_v8  ;;  %v8469_v8 = vld [vmem:[#allocation2 + $0x140] ss:$0 sm:$0xff] }
0x29b8   :  { %v5960_v23 = vmul.f32 -1.442695, %v5291_v33 }
0x29b9   :  { %7304 = vpow2.f32 %v5959_v26 }
0x29ba   :  { %7306 = vpow2.f32 %v5960_v23 }
0x29bb   :  { %7308 = vtanh.f32 %v5293_v51 }
0x29bc   :  { %7310 = vpow2.f32 %v5961_v37 }
0x29c3   :  { %v7305_v22 = vpop.eup %7304 }
0x29c4   :  { %v5303_v45 = vadd.f32 1.0, %v7305_v22  ;;  %v7307_v58 = vpop.eup %7306 }
0x29c5   :  { %v5304_v63 = vadd.f32 1.0, %v7307_v58  ;;  %v7309_v25 = vpop.eup %7308  ;;  %v8472_v58 = vld [vmem:[#allocation2 + $0x141] ss:$0 sm:$0xff] }
0x29c6   :  { %7312 = vrcp.f32 %v5303_v45  ;;  %v7311_v55 = vpop.eup %7310 }
0x29c7   :  { %7314 = vrcp.f32 %v5304_v63  ;;  %v5305_v9 = vadd.f32 1.0, %v7311_v55 }
0x29c9   :  { %7316 = vrcp.f32 %v5305_v9 }
0x29d0   :  { %v7313_v10 = vpop.eup %7312 }
0x29d1   :  { %v5317_v12 = vmul.f32 %v7313_v10, %v7309_v25  ;;  %v7315_v19 = vpop.eup %7314 }
0x29d2   :  { %v5316_v18 = vmul.f32 %v7315_v19, %v5314_v28 }
0x29d3   :  { %v7317_v53 = vpop.eup %7316 }
0x29d4   :  { %v8425_v3 = vadd.f32 %v5317_v12, %v5316_v18 }
0x29d6   :  { %7318 = vtanh.f32 %v8425_v3 }
0x29e0   :  { %v7319_v13 = vpop.eup %7318 }
0x29e1   :  { %v8428_v20 = vmul.f32 %v7319_v13, %v7317_v53 }
0x29e3   :  { %v5322_v11 = vrot.slane %v8428_v20, 2  ;;  %v5700_v63 = vsel %vm3957_vm12, %v8382_v57, %v8428_v20 }
0x29e5   :  { %5389 = vmatmul.mubr.f32.vlgmr.msra.gmra.mrb[52].mxu1 %v5322_v11  ;;  %5460 = vmatmul.mubr.f32.vlgmr.msra.gmra.mrb[64].mxu0 %v5322_v11 }
0x29e6   :  { %7015 = vmatpush1.bf16.msra.mxu1 %v8002_v21  ;;  %7047 = vmatpush1.bf16.msra.mxu0 %v8099_v60 }
0x29e7   :  { %7017 = vmatprep.subr.bf16.mxu1 %v8016_v36  ;;  %7049 = vmatprep.subr.bf16.mxu0 %v8102_v44 }
0x29e8   :  { %5576 = vmatprep.mubr.f32.mxu1 %v7417_v15  ;;  %5647 = vmatprep.mubr.f32.mxu0 %v7417_v15  ;;  %v5715_v15 = vpop.xlane.xlu0 %5714 }
0x29e9   :  { %v5718_v21 = vmul.f32 0.007874016, %v5715_v15 }
0x29ea   :  { %7019 = vmatpush1.bf16.msra.mxu1 %v8018_v43  ;;  %7051 = vmatpush1.bf16.msra.mxu0 %v8107_v62 }
0x29eb   :  { %7021 = vmatprep.subr.bf16.mxu1 %v8022_v6  ;;  %7053 = vmatprep.subr.bf16.mxu0 %v8110_v59  ;;  %7320 = vrsqrt.f32 %v5718_v21  ;;  %vm5722_vm15 = vcmp.eq.f32.partialorder %v5718_v21, inf  ;;  %vm5724_vm0 = vcmp.eq.f32.partialorder %v5718_v21, 0.0 }
0x29ee   :  { %7023 = vmatpush1.bf16.msra.mxu1 %v8024_v49  ;;  %7055 = vmatpush1.bf16.msra.mxu0 %v8114_v42 }
0x29ef   :  { %7025 = vmatprep.subr.bf16.mxu1 %v8028_v52  ;;  %7057 = vmatprep.subr.bf16.mxu0 %v8118_v29 }
0x29f2   :  { %7027 = vmatpush1.bf16.msra.mxu1 %v8030_v56  ;;  %7059 = vmatpush1.bf16.msra.mxu0 %v8121_v17 }
0x29f3   :  { %7029 = vmatprep.subr.bf16.mxu1 %v8034_v46  ;;  %7061 = vmatprep.subr.bf16.mxu0 %v8124_v32 }
0x29f6   :  { %7031 = vmatpush1.bf16.msra.mxu1 %v8036_v27  ;;  %7063 = vmatpush1.bf16.msra.mxu0 %v8127_v54  ;;  %v5725_v54 = vand.u32 2147483648, %v5718_v21 }
0x29f7   :  { %7033 = vmatprep.subr.bf16.mxu1 %v8040_v1  ;;  %7065 = vmatprep.subr.bf16.mxu0 %v8130_v24 }
0x29fa   :  { %7035 = vmatpush1.bf16.msra.mxu1 %v8043_v50  ;;  %7067 = vmatpush1.bf16.msra.mxu0 %v8133_v39 }
0x29fb   :  { %7037 = vmatprep.subr.bf16.mxu1 %v8046_v7  ;;  %7069 = vmatprep.subr.bf16.mxu0 %v8136_v38 }
0x29fe   :  { %7039 = vmatpush1.bf16.msra.mxu1 %v8048_v34  ;;  %7071 = vmatpush1.bf16.msra.mxu0 %v8139_v5 }
0x29ff   :  { %7041 = vmatprep.subr.bf16.mxu1 %v8051_v30  ;;  %7073 = vmatprep.subr.bf16.mxu0 %v8142_v4 }
0x2a02   :  { %7043 = vmatpush1.bf16.msra.mxu1 %v8054_v61  ;;  %7075 = vmatpush1.bf16.msra.mxu0 %v8145_v16  ;;  %v7321_v61 = vpop.eup %7320  ;;  %v5502_v16 = vrot.slane %v8425_v3, 6 }
0x2a03   :  { %v5721_v62 = vmul.f32 %v7321_v61, %v5718_v21 }
0x2a05   :  { %v5723_v17 = vsel %vm5722_vm15, %v5718_v21, %v5721_v62 }
0x2a06   :  { %v5726_v24 = vsel %vm5724_vm0, %v5725_v54, %v5723_v17  ;;  %v5757_v54 = vld [vmem:[#allocation2 + $0x160] sm:$0xff] }
0x2a07   :  { %v5734_v39 = vmax.f32 %v5726_v24, 1e-06 }
0x2ab8   :  { %v5390_v36 = vpop.f32.mrb[52].mxu1  ;;  %v5461_v43 = vpop.f32.mrb[64].mxu0 }
0x2ab9   :  { %v5470_v6 = vrot.slane %v5390_v36, 4  ;;  %v5392_v49 = vpop.f32.mrb[53].mxu1  ;;  %v5463_v52 = vpop.f32.mrb[65].mxu0  ;;  %v5472_v7 = vrot.slane %v5461_v43, 4 }
0x2aba   :  { %v5471_v56 = vrot.slane %v5392_v49, 4  ;;  %v5473_v34 = vrot.slane %v5463_v52, 4 }
0x2abb   :  { %v5478_v46 = vadd.f32 %v5470_v6, %v8170_v0  ;;  %v5480_v30 = vadd.f32 %v5472_v7, %v8178_v31 }
0x2abc   :  { %v5479_v27 = vadd.f32 %v5471_v56, %v8172_v2  ;;  %v5481_v60 = vadd.f32 %v5473_v34, %v8182_v35 }
0x2abd   :  { %v5962_v1 = vmul.f32 -1.442695, %v5478_v46  ;;  %v5964_v44 = vmul.f32 -1.442695, %v5480_v30 }
0x2abe   :  { %v5963_v50 = vmul.f32 -1.442695, %v5479_v27 }
0x2abf   :  { %7322 = vpow2.f32 %v5962_v1 }
0x2ac0   :  { %7324 = vpow2.f32 %v5963_v50 }
0x2ac1   :  { %7326 = vtanh.f32 %v5481_v60 }
0x2ac2   :  { %7328 = vpow2.f32 %v5964_v44 }
0x2ac9   :  { %v7323_v59 = vpop.eup %7322 }
0x2aca   :  { %v5491_v42 = vadd.f32 1.0, %v7323_v59  ;;  %v7325_v29 = vpop.eup %7324 }
0x2acb   :  { %v5492_v32 = vadd.f32 1.0, %v7325_v29  ;;  %v7327_v38 = vpop.eup %7326  ;;  %v5755_v29 = vld [vmem:[#allocation2 + $0x150] sm:$0xff] }
0x2acc   :  { %7330 = vrcp.f32 %v5491_v42  ;;  %v7329_v5 = vpop.eup %7328  ;;  %v5754_v42 = vld [vmem:[#allocation2 + $0x148] sm:$0xff] }
0x2acd   :  { %7332 = vrcp.f32 %v5492_v32  ;;  %v5493_v33 = vadd.f32 1.0, %v7329_v5  ;;  %v7076_v17 = vpack.c.bf16 %v5755_v29, %v5754_v42  ;;  %v5756_v32 = vld [vmem:[#allocation2 + $0x158] sm:$0xff] }
0x2ace   :  { %7334 = vrcp.f32 %v5734_v39  ;;  %v7080_v24 = vpack.c.bf16 %v5757_v54, %v5756_v32  ;;  %v5758_v39 = vld [vmem:[#allocation2 + $0x168] sm:$0xff] }
0x2acf   :  { %7336 = vrcp.f32 %v5493_v33  ;;  %7077 = vmatprep.subr.bf16.mxu1 %v7076_v17  ;;  %v5763_v33 = vld [vmem:[#allocation2 + $0x190] sm:$0xff] }
0x2ad6   :  { %v7331_v4 = vpop.eup %7330 }
0x2ad7   :  { %v5505_v48 = vmul.f32 %v7331_v4, %v7327_v38  ;;  %v7333_v14 = vpop.eup %7332  ;;  %v5759_v38 = vld [vmem:[#allocation2 + $0x170] sm:$0xff]  ;;  %v5760_v4 = vld [vmem:[#allocation2 + $0x178] sm:$0xff] }
0x2ad8   :  { %v5504_v26 = vmul.f32 %v7333_v14, %v5502_v16  ;;  %v7335_v40 = vpop.eup %7334  ;;  %v7084_v5 = vpack.c.bf16 %v5759_v38, %v5758_v39  ;;  %v5761_v16 = vld [vmem:[#allocation2 + $0x180] sm:$0xff]  ;;  %v5762_v14 = vld [vmem:[#allocation2 + $0x188] sm:$0xff] }
0x2ad9   :  { %v5738_v47 = vmul.f32 %v7335_v40, %v8370_v41  ;;  %v7337_v51 = vpop.eup %7336  ;;  %v5765_v40 = vld [vmem:[#allocation2 + $0x1a0] sm:$0xff] }
0x2ada   :  { %v5506_v23 = vadd.f32 %v5505_v48, %v5504_v26  ;;  %v7088_v48 = vpack.c.bf16 %v5761_v16, %v5760_v4  ;;  %v7092_v26 = vpack.c.bf16 %v5763_v33, %v5762_v14 }
0x2adb   :  { %v5745_v22 = vmul.f32 %v8469_v8, %v5738_v47  ;;  %v5766_v47 = vld [vmem:[#allocation2 + $0x1a8] sm:$0xff] }
0x2adc   :  { %7338 = vtanh.f32 %v5506_v23  ;;  %v5690_v46 = vrot.slane %v5506_v23, 6  ;;  %v5764_v23 = vld [vmem:[#allocation2 + $0x198] sm:$0xff] }
0x2add   :  { %v5752_v10 = vadd.f32 %v8472_v58, %v5745_v22 }
0x2ae6   :  { %v7339_v37 = vpop.eup %7338 }
0x2ae7   :  { %v5508_v45 = vmul.f32 %v7339_v37, %v7337_v51  ;;  %v7096_v51 = vpack.c.bf16 %v5765_v40, %v5764_v23  ;;  %v5767_v37 = vld [vmem:[#allocation2 + $0x1b0] sm:$0xff] }
0x2ae8   :  { %v7100_v22 = vpack.c.bf16 %v5767_v37, %v5766_v47 }
0x2ae9   :  { %v5510_v25 = vrot.slane %v5508_v45, 4  ;;  %v5701_v55 = vsel %vm3959_vm13, %v5700_v63, %v5508_v45  ;;  %v5768_v45 = vld [vmem:[#allocation2 + $0x1b8] sm:$0xff]  ;;  %v5769_v63 = vld [vmem:[#allocation2 + $0x1c0] sm:$0xff] }
0x2aeb   :  { %5577 = vmatmul.mubr.f32.vlgmr.msra.gmra.mrb[54].mxu1 %v5510_v25  ;;  %5648 = vmatmul.mubr.f32.vlgmr.msra.gmra.mrb[66].mxu0 %v5510_v25  ;;  %v7104_v25 = vpack.c.bf16 %v5769_v63, %v5768_v45 }
0x2aec   :  { %6445 = vmatprep.mubr.f32.mxu1 %v5752_v10  ;;  %7079 = vmatpush3.bf16.msra.mxu1 %v7076_v17 }
0x2aed   :  { %7081 = vmatprep.subr.bf16.mxu1 %v7080_v24 }
0x2af0   :  { %7083 = vmatpush3.bf16.msra.mxu1 %v7080_v24 }
0x2af1   :  { %7085 = vmatprep.subr.bf16.mxu1 %v7084_v5 }
0x2af4   :  { %7087 = vmatpush3.bf16.msra.mxu1 %v7084_v5 }
0x2af5   :  { %7089 = vmatprep.subr.bf16.mxu1 %v7088_v48 }
0x2af8   :  { %7091 = vmatpush3.bf16.msra.mxu1 %v7088_v48 }
0x2af9   :  { %7093 = vmatprep.subr.bf16.mxu1 %v7092_v26 }
0x2afc   :  { %7095 = vmatpush3.bf16.msra.mxu1 %v7092_v26 }
0x2afd   :  { %7097 = vmatprep.subr.bf16.mxu1 %v7096_v51 }
0x2b00   :  { %7099 = vmatpush3.bf16.msra.mxu1 %v7096_v51 }
0x2b01   :  { %7101 = vmatprep.subr.bf16.mxu1 %v7100_v22 }
0x2b04   :  { %7103 = vmatpush3.bf16.msra.mxu1 %v7100_v22 }
0x2b05   :  { %7105 = vmatprep.subr.bf16.mxu1 %v7104_v25 }
0x2b08   :  { %7107 = vmatpush3.bf16.msra.mxu1 %v7104_v25 }
0x2bbe   :  { %v5578_v41 = vpop.f32.mrb[54].mxu1  ;;  %v5649_v28 = vpop.f32.mrb[66].mxu0 }
0x2bbf   :  { %v5658_v12 = vrot.slane %v5578_v41, 2  ;;  %v5580_v19 = vpop.f32.mrb[55].mxu1  ;;  %v5651_v9 = vpop.f32.mrb[67].mxu0  ;;  %v5660_v20 = vrot.slane %v5649_v28, 2 }
0x2bc0   :  { %v5659_v18 = vrot.slane %v5580_v19, 2  ;;  %v5661_v11 = vrot.slane %v5651_v9, 2 }
0x2bc1   :  { %v5666_v3 = vadd.f32 %v5658_v12, %v8170_v0  ;;  %v5668_v15 = vadd.f32 %v5660_v20, %v8178_v31  ;;  %v5970_v20 = vld [vmem:[#allocation2 + $0x1c8] ss:$0 sm:$0xff] }
0x2bc2   :  { %v5667_v53 = vadd.f32 %v5659_v18, %v8172_v2  ;;  %v5669_v21 = vadd.f32 %v5661_v11, %v8182_v35 }
0x2bc3   :  { %v5965_v13 = vmul.f32 -1.442695, %v5666_v3  ;;  %v5967_v36 = vmul.f32 -1.442695, %v5668_v15 }
0x2bc4   :  { %v5966_v57 = vmul.f32 -1.442695, %v5667_v53 }
0x2bc5   :  { %7340 = vpow2.f32 %v5965_v13 }
0x2bc6   :  { %7342 = vpow2.f32 %v5966_v57 }
0x2bc7   :  { %7344 = vtanh.f32 %v5669_v21 }
0x2bc8   :  { %7346 = vpow2.f32 %v5967_v36 }
0x2bcf   :  { %v7341_v43 = vpop.eup %7340 }
0x2bd0   :  { %v5679_v6 = vadd.f32 1.0, %v7341_v43  ;;  %v7343_v49 = vpop.eup %7342 }
0x2bd1   :  { %v5680_v0 = vadd.f32 1.0, %v7343_v49  ;;  %v7345_v2 = vpop.eup %7344 }
0x2bd2   :  { %7348 = vrcp.f32 %v5679_v6  ;;  %v7347_v52 = vpop.eup %7346 }
0x2bd3   :  { %7350 = vrcp.f32 %v5680_v0  ;;  %v5681_v50 = vadd.f32 1.0, %v7347_v52 }
0x2bd5   :  { %7352 = vrcp.f32 %v5681_v50 }
0x2bdc   :  { %v7349_v56 = vpop.eup %7348 }
0x2bdd   :  { %v5693_v27 = vmul.f32 %v7349_v56, %v7345_v2  ;;  %v7351_v1 = vpop.eup %7350 }
0x2bde   :  { %v5692_v7 = vmul.f32 %v7351_v1, %v5690_v46 }
0x2bdf   :  { %v7353_v35 = vpop.eup %7352 }
0x2be0   :  { %v5694_v31 = vadd.f32 %v5693_v27, %v5692_v7 }
0x2be2   :  { %7354 = vtanh.f32 %v5694_v31 }
0x2bec   :  { %v7355_v34 = vpop.eup %7354 }
0x2bed   :  { %v5696_v30 = vmul.f32 %v7355_v34, %v7353_v35 }
0x2bef   :  { %v5702_v61 = vsel %vm3961_vm14, %v5701_v55, %v5696_v30 }
0x2bf0   :  { %5705 = vadd.xlane.f32.xlu1 %v5702_v61 }
0x2c7d   :  { %v5706_v60 = vpop.xlane.xlu1 %5705 }
0x2c7e   :  { %v5709_v44 = vmul.f32 0.0078125, %v5706_v60 }
0x2c80   :  { %v5711_v62 = vsub.f32 %v5702_v61, %v5709_v44 }
0x2c82   :  { %v5713_v59 = vmul.f32 %v5711_v62, %v5711_v62 }
0x2c84   :  { %5716 = vadd.xlane.f32.xlu1 %v5713_v59 }
0x2d11   :  { %v5717_v55 = vpop.xlane.xlu1 %5716 }
0x2d12   :  { %v5719_v10 = vmul.f32 0.007874016, %v5717_v55 }
0x2d14   :  { %7356 = vrsqrt.f32 %v5719_v10  ;;  %vm5729_vm1 = vcmp.eq.f32.partialorder %v5719_v10, inf  ;;  %v5732_v12 = vand.u32 2147483648, %v5719_v10  ;;  %vm5731_vm2 = vcmp.eq.f32.partialorder %v5719_v10, 0.0 }
0x2d1e   :  { %v7357_v41 = vpop.eup %7356 }
0x2d1f   :  { %v5728_v28 = vmul.f32 %v7357_v41, %v5719_v10 }
0x2d21   :  { %v5730_v19 = vsel %vm5729_vm1, %v5719_v10, %v5728_v28 }
0x2d22   :  { %v5733_v9 = vsel %vm5731_vm2, %v5732_v12, %v5730_v19 }
0x2d23   :  { %v5735_v18 = vmax.f32 %v5733_v9, 1e-06 }
0x2d25   :  { %7358 = vrcp.f32 %v5735_v18 }
0x2d2f   :  { %v7359_v3 = vpop.eup %7358 }
0x2d30   :  { %v5739_v53 = vmul.f32 %v7359_v3, %v5711_v62 }
0x2d32   :  { %v5746_v13 = vmul.f32 %v8469_v8, %v5739_v53 }
0x2d34   :  { %v5753_v57 = vadd.f32 %v8472_v58, %v5746_v13 }
0x2d36   :  { %6446 = vmatmul.mubr.f32.vlgmr.msra.gmra.mrb[56].mxu1 %v5753_v57 }
0x2e09   :  { %v6447_v11 = vpop.f32.mrb[56].mxu1 }
0x2e0a   :  { %v5847_v15 = vadd.f32 %v6447_v11, %v5970_v20  ;;  %v5841_v21 = vpop.f32.mrb[57].mxu1 }
0x2e0b   :  { %v5842_v36 = vadd.f32 %v5970_v20, %v5841_v21 }
0x2e0c   :  { %5851 = vst [vmem:[%s8496_s4 + $0x8] sm:$0xff] %v5847_v15 }
0x2e0d   :  { %5850 = vst [vmem:[%s8496_s4] sm:$0xff] %v5842_v36 }
0x2e0e   :  { %5856 = vsyncpa [#allocation3], 1 }
0x2e0f   :  { %5857 = vsyncpa [#allocation5], 1 }

</bundles_post_ra>
